<compile_context>
chip_gen: v6e
topology: v6e:2x2x1
jax: 0.10.0
libtpu: 0.0.40
codegen_flags: <defaults>
</compile_context>

<pallas_src>
import functools

import jax
import jax.numpy as jnp
import numpy as np
from jax.experimental import pallas as pl
from jax.experimental.pallas import tpu as pltpu

ANG_TO_NM_SCALE = 0.1
_LANE = 128


def _round_up(x, m):
    return (x + m - 1) // m * m


# --------------------------------------------------------------------------- #
# Pallas kernel: full BuildingBlockEmbedder forward for Bb batch elements.
# --------------------------------------------------------------------------- #
def _bb_embedder_kernel(
    h0_ref,        # (Bb, N, Dp)     f32   initial node embeddings (D zero-padded)
    c_ref,         # (Bb, N, 3)      f32   local coords (angstrom)
    bbr_ref,       # (N, 1, 1)       i32   building-block id, row (i) oriented
    bbc_ref,       # (1, N, 1)       i32   building-block id, col (j) oriented
    idr_ref,       # (N, 1, 1)       i32   node index, row oriented
    idc_ref,       # (1, N, 1)       i32   node index, col oriented
    offs_ref,      # (1, De+1)       f32   Gaussian offsets (+ dummy for radial col)
    pool_ref,      # (Bb*M, Bb*N)    f32   block-diagonal per-bb mean-pool matrix
    Wh_ref,        # (L, Dp, 3*Hp)   bf16  fused [W1_src | W1_tgt | W3_h] (zero-padded)
    We_ref,        # (De+1, L*Hp)    bf16  all layers' [W1_edgeattr ; W1_radial]
    b1_ref,        # (L, 1, Hp)      f32   edge_mlp layer 0 bias
    W2_ref, b2_ref,    # (L, Hp, Hp) bf16 / (L, 1, Hp) f32   edge_mlp layer 1
    W3b_ref, b3_ref,   # (L, Hp, Hp) bf16 / (L, 1, Hp) f32   node_mlp layer 0 (agg part)
    W4_ref, b4_ref,    # (L, Hp, Dp) bf16 / (L, 1, Dp) f32   node_mlp layer 1
    out_ref,       # (Bb, M, Dp)     f32
    *,
    r2, gauss_coeff,
):
    Bb, N, Dp = h0_ref.shape
    Hp = W2_ref.shape[-1]
    L = Wh_ref.shape[0]
    De1 = We_ref.shape[0]                   # c_edge_dim + 1 (radial folded as last col)
    BN = Bb * N
    P = Bb * N * N

    h = h0_ref[...].reshape(BN, Dp)         # f32 node state, lane-dense (Dp = 128)
    c = c_ref[...]                          # (Bb, N, 3)

    # ---- pairwise squared distances (j on sublanes), no (Bb,N,N,3) diff ---- #
    d2 = jnp.zeros((Bb, N, N, 1), jnp.float32)
    for k in range(3):                      # static 3-way unroll over x/y/z
        ck = c[:, :, k:k + 1]                                # (Bb, N, 1)
        dk = ck[:, :, None, :] - ck[:, None, :, :]           # (Bb, N, N, 1)
        d2 = d2 + dk * dk

    # ---- radius_graph(r, loop=False) restricted to intra-bb pairs --------- #
    # Boolean mask (no f32 pair mask resident); squared-distance compare
    # (no sqrt on the mask path); <= r matches torch_cluster's inclusive test.
    bb_ok = jnp.logical_and(bbr_ref[...] == bbc_ref[...],
                            idr_ref[...] != idc_ref[...])    # (N, N, 1)  bool
    mask = jnp.logical_and(d2 <= r2, bb_ok)                  # (Bb, N, N, 1) bool

    # ---- layer-invariant edge slab [GaussianSmearing(dist) | radial] ------ #
    # Built as one (P, De+1) tensor via a lane-index select (no narrow concat,
    # no ones/bias column — b1 is applied as an f32 add inside the loop).
    dist = jnp.sqrt(d2).reshape(P, 1)
    radial = (ANG_TO_NM_SCALE * ANG_TO_NM_SCALE) * d2.reshape(P, 1)
    lane = jax.lax.broadcasted_iota(jnp.int32, (1, De1), 1)
    gauss = jnp.exp(gauss_coeff * (dist - offs_ref[...]) ** 2)       # (P, De+1)
    edge_in = jnp.where(lane < De1 - 1, gauss, radial).astype(jnp.bfloat16)

    # All layers' layer-invariant first-linear pre-activations in ONE MXU pass
    # (L*Hp = 256 output lanes at this config: full col-tiles, unmasked stores).
    pre_all = jnp.dot(edge_in, We_ref[...],
                      preferred_element_type=jnp.float32)            # (P, L*Hp)

    for l in range(L):   # static loop; TODO(synk): lax.fori_loop if L grows past ~4
        # fused h projections [src | tgt | node-mlp h-part]; slices are 128-aligned
        hproj = jnp.dot(h.astype(jnp.bfloat16), Wh_ref[l],
                        preferred_element_type=jnp.float32)          # (BN, 3*Hp)
        src = hproj[:, 0:Hp].reshape(Bb, N, Hp)       # depends on i (row node)
        tgt = hproj[:, Hp:2 * Hp].reshape(Bb, N, Hp)  # depends on j (col node)
        nh = hproj[:, 2 * Hp:3 * Hp]                  # (BN, Hp) node-mlp h-part

        # edge MLP: relu(W1 . [h_i, h_j, radial, ef] + b1), b1 added in f32
        pre = pre_all[:, l * Hp:(l + 1) * Hp].reshape(Bb, N, N, Hp)
        x1 = jnp.maximum(
            pre + b1_ref[l] + src[:, :, None, :] + tgt[:, None, :, :], 0.0)
        m = jnp.maximum(
            jnp.dot(x1.reshape(P, Hp).astype(jnp.bfloat16), W2_ref[l],
                    preferred_element_type=jnp.float32) + b2_ref[l], 0.0)
        m = jnp.where(mask, m.reshape(Bb, N, N, Hp), 0.0)    # zero non-edges

        # unsorted_segment_sum over neighbours j of node i
        agg = jnp.sum(m, axis=2).reshape(BN, Hp)             # (BN, Hp)

        # node MLP on cat[h, agg] (h-part reused from the fused projection)
        n1 = jnp.maximum(
            nh + jnp.dot(agg.astype(jnp.bfloat16), W3b_ref[l],
                         preferred_element_type=jnp.float32) + b3_ref[l], 0.0)
        upd = jnp.dot(n1.astype(jnp.bfloat16), W4_ref[l],
                      preferred_element_type=jnp.float32) + b4_ref[l]  # (BN, Dp)

        # E_GCL internal residual + outer residual in forward()
        h = h + (h + upd)

    # global_mean_pool over building blocks for the whole batch block in one
    # block-diagonal matmul; lane-dense Dp-wide output (padding stripped outside)
    out_ref[...] = jnp.dot(pool_ref[...], h,
                           preferred_element_type=jnp.float32).reshape(out_ref.shape)


# --------------------------------------------------------------------------- #
# Host-side weight packing (fusion + zero-padding to 128 lanes + bf16 cast).
# --------------------------------------------------------------------------- #
def _pack_weights(params, cfg, Dp, Hp):
    D, De = cfg["c_node_dim"], cfg["c_edge_dim"]
    L = cfg["num_layers"]
    W1, W3 = params["W1"], params["W3"]

    def padw(x, rows, cols):   # zero-pad the last two dims of an (L, r, c) weight
        return jnp.pad(x, ((0, 0), (0, rows - x.shape[1]), (0, cols - x.shape[2])))

    def padb(b, cols):         # zero-pad an (L, 1, c) bias, keep f32
        return jnp.pad(b, ((0, 0), (0, 0), (0, cols - b.shape[2]))).astype(jnp.float32)

    bf16 = lambda x: x.astype(jnp.bfloat16)

    # fused per-node projection: [W1 rows for h_i | W1 rows for h_j | W3 rows for h]
    Wh = jnp.concatenate([padw(W1[:, 0:D, :], Dp, Hp),
                          padw(W1[:, D:2 * D, :], Dp, Hp),
                          padw(W3[:, 0:D, :], Dp, Hp)], axis=-1)       # (L, Dp, 3Hp)

    # layer-invariant edge weight: rows = [edge_attr (De) ; radial (1)], all L
    # layers fused along the output columns -> (De+1, L*Hp)
    We = jnp.concatenate([W1[:, 2 * D + 1:, :], W1[:, 2 * D:2 * D + 1, :]], axis=1)
    We = padw(We, De + 1, Hp)
    We = jnp.transpose(We, (1, 0, 2)).reshape(De + 1, L * Hp)

    return (bf16(Wh), bf16(We),
            padb(params["b1"], Hp),
            bf16(padw(params["W2"], Hp, Hp)), padb(params["b2"], Hp),
            bf16(padw(W3[:, D:, :], Hp, Hp)), padb(params["b3"], Hp),
            bf16(padw(params["W4"], Hp, Dp)), padb(params["b4"], Dp))


def _vmem_limit_bytes():
    # ~75% of physical VMEM, capped at 100 MiB: ~96 MiB on v5e/v6e (128 MiB),
    # ~48 MiB on v7x (64 MiB).  Overrides the small default scoped limit.
    try:
        cap = pltpu.get_tpu_info().vmem_capacity_bytes
    except Exception:
        cap = 128 * 1024 * 1024
    return int(min(cap * 3 // 4, 100 * 1024 * 1024))


def _pick_batch_block(B, requested):
    if requested is not None:
        assert B % requested == 0, "batch size must be divisible by batch_block"
        return requested
    # Largest block <= 8 dividing B while keeping >= 2 grid steps, so the
    # 'parallel' grid axis can shard across both TensorCores on v7x.
    for cand in range(min(B, 8), 0, -1):
        if B % cand == 0 and (B // cand >= 2 or B == 1):
            return cand
    return 1


# --------------------------------------------------------------------------- #
# Wrapper: embedding gather + bb metadata glue + pallas_call.
# --------------------------------------------------------------------------- #
def building_block_embedder(atom_types, local_coords, bb_num_vec, params, cfg,
                            batch_block=None):
    B, N = atom_types.shape
    D, De, H = cfg["c_node_dim"], cfg["c_edge_dim"], cfg["c_hidden_dim"]
    L = cfg["num_layers"]
    r = float(cfg["max_radius"])
    M = len(bb_num_vec)
    Dp = _round_up(D, _LANE)
    Hp = _round_up(H, _LANE)
    Bb = _pick_batch_block(B, batch_block)

    # glue: embedding lookup (gather) + zero-pad node features D -> Dp
    h0 = jnp.take(params["embed"], atom_types - 1, axis=0).astype(jnp.float32)
    h0 = jnp.pad(h0, ((0, 0), (0, 0), (0, Dp - D)))
    coords = local_coords.astype(jnp.float32)

    # glue: batch-independent building-block metadata (tiny int vectors) and a
    # block-diagonal mean-pool matrix covering one batch block.
    bb_id = np.concatenate([np.full((n,), i, np.int32)
                            for i, n in enumerate(bb_num_vec)])
    counts = np.array([(bb_id == m).sum() for m in range(M)], np.float32)
    pool = (bb_id[None, :] == np.arange(M)[:, None]).astype(np.float32) / counts[:, None]
    pool_blk = jnp.asarray(np.kron(np.eye(Bb, dtype=np.float32), pool))  # (Bb*M, Bb*N)
    idx = np.arange(N, dtype=np.int32)

    bb_row = jnp.asarray(bb_id.reshape(N, 1, 1))
    bb_col = jnp.asarray(bb_id.reshape(1, N, 1))
    id_row = jnp.asarray(idx.reshape(N, 1, 1))
    id_col = jnp.asarray(idx.reshape(1, N, 1))
    offs = jnp.concatenate([jnp.asarray(params["gauss_offset"], jnp.float32),
                            jnp.zeros((1,), jnp.float32)]).reshape(1, De + 1)

    Wh, We, b1, W2, b2, W3b, b3, W4, b4 = _pack_weights(params, cfg, Dp, Hp)

    kernel = functools.partial(
        _bb_embedder_kernel, r2=r * r, gauss_coeff=float(params["gauss_coeff"]))

    def batch_spec(shape):
        nd = len(shape)
        return pl.BlockSpec(shape, lambda g: (g,) + (0,) * (nd - 1))

    def const_spec(shape):
        nd = len(shape)
        return pl.BlockSpec(shape, lambda g: (0,) * nd)

    in_specs = [
        batch_spec((Bb, N, Dp)),           # h0
        batch_spec((Bb, N, 3)),            # coords
        const_spec((N, 1, 1)),             # bb_row
        const_spec((1, N, 1)),             # bb_col
        const_spec((N, 1, 1)),             # id_row
        const_spec((1, N, 1)),             # id_col
        const_spec((1, De + 1)),           # gaussian offsets (+ radial dummy)
        const_spec((Bb * M, Bb * N)),      # block-diagonal pool matrix
        const_spec((L, Dp, 3 * Hp)),       # Wh  (fused h projections)
        const_spec((De + 1, L * Hp)),      # We  (edge feats + radial, all layers)
        const_spec((L, 1, Hp)),            # b1
        const_spec((L, Hp, Hp)),           # W2
        const_spec((L, 1, Hp)),            # b2
        const_spec((L, Hp, Hp)),           # W3b
        const_spec((L, 1, Hp)),            # b3
        const_spec((L, Hp, Dp)),           # W4
        const_spec((L, 1, Dp)),            # b4
    ]

    out = pl.pallas_call(
        kernel,
        out_shape=jax.ShapeDtypeStruct((B, M, Dp), jnp.float32),
        grid=(B // Bb,),
        in_specs=in_specs,
        out_specs=batch_spec((Bb, M, Dp)),
        compiler_params=pltpu.CompilerParams(
            dimension_semantics=("parallel",),
            vmem_limit_bytes=_vmem_limit_bytes()),
    )(h0, coords, bb_row, bb_col, id_row, id_col, offs, pool_blk,
      Wh, We, b1, W2, b2, W3b, b3, W4, b4)

    return out[:, :, :D]   # strip the lane-padding columns


# --------------------------------------------------------------------------- #
# Deterministic synthetic parameters (shapes from the module's __init__).
# --------------------------------------------------------------------------- #
def init_params(key, cfg):
    D, De, H = cfg["c_node_dim"], cfg["c_edge_dim"], cfg["c_hidden_dim"]
    L = cfg["num_layers"]
    F = 2 * D + 1 + De
    ks = jax.random.split(key, 9)

    def lin(k, shape):
        return jax.random.normal(k, shape, jnp.float32) / np.sqrt(shape[-2])

    offset = np.linspace(0.0, cfg["max_radius"], De).astype(np.float32)
    coeff = -0.5 / float(offset[1] - offset[0]) ** 2
    return dict(
        embed=jax.random.normal(ks[0], (cfg["max_atoms"], D), jnp.float32),
        gauss_offset=jnp.asarray(offset),
        gauss_coeff=coeff,
        W1=lin(ks[1], (L, F, H)),
        b1=0.05 * jax.random.normal(ks[2], (L, 1, H), jnp.float32),
        W2=lin(ks[3], (L, H, H)),
        b2=0.05 * jax.random.normal(ks[4], (L, 1, H), jnp.float32),
        W3=lin(ks[5], (L, D + H, H)),
        b3=0.05 * jax.random.normal(ks[6], (L, 1, H), jnp.float32),
        W4=lin(ks[7], (L, H, D)),
        b4=0.05 * jax.random.normal(ks[8], (L, 1, D), jnp.float32),
    )


# --------------------------------------------------------------------------- #
# Pure-JAX dense f32 reference (mirrors the PyTorch forward) for validation.
# --------------------------------------------------------------------------- #
def reference_forward(atom_types, local_coords, bb_num_vec, params, cfg):
    B, N = atom_types.shape
    D = cfg["c_node_dim"]
    L, r = cfg["num_layers"], float(cfg["max_radius"])
    M = len(bb_num_vec)
    offs = params["gauss_offset"]
    coeff = params["gauss_coeff"]
    relu = lambda x: jnp.maximum(x, 0.0)
    PH = jax.lax.Precision.HIGHEST

    h = jnp.take(params["embed"], atom_types - 1, axis=0).astype(jnp.float32)
    coords = local_coords.astype(jnp.float32)
    diff = coords[:, :, None, :] - coords[:, None, :, :]
    d2 = jnp.sum(diff * diff, axis=-1)                                # [B,N,N]
    dist = jnp.sqrt(d2)
    ef = jnp.exp(coeff * (dist[..., None] - offs) ** 2)               # [B,N,N,De]

    bb_id = np.concatenate([np.full((n,), i) for i, n in enumerate(bb_num_vec)])
    same = (bb_id[:, None] == bb_id[None, :]) & ~np.eye(N, dtype=bool)
    adj = jnp.asarray(same, jnp.float32)[None] * (d2 <= r * r).astype(jnp.float32)
    radial = (ANG_TO_NM_SCALE * ANG_TO_NM_SCALE) * d2                 # [B,N,N]

    for l in range(L):
        hi = jnp.broadcast_to(h[:, :, None, :], (B, N, N, D))
        hj = jnp.broadcast_to(h[:, None, :, :], (B, N, N, D))
        e_in = jnp.concatenate([hi, hj, radial[..., None], ef], axis=-1)
        x1 = relu(jnp.matmul(e_in, params["W1"][l], precision=PH)
                  + params["b1"][l][0])
        m = relu(jnp.matmul(x1, params["W2"][l], precision=PH)
                 + params["b2"][l][0]) * adj[..., None]
        agg = jnp.sum(m, axis=2)
        n1 = relu(jnp.matmul(jnp.concatenate([h, agg], axis=-1),
                             params["W3"][l], precision=PH)
                  + params["b3"][l][0])
        upd = jnp.matmul(n1, params["W4"][l], precision=PH) + params["b4"][l][0]
        h = h + (h + upd)

    counts = np.array([(bb_id == m).sum() for m in range(M)], np.float32)
    pool = (bb_id[None, :] == np.arange(M)[:, None]).astype(np.float32) / counts[:, None]
    return jnp.einsum("mn,bnd->bmd", jnp.asarray(pool), h, precision=PH)


if __name__ == "__main__":
    cfg = dict(max_atoms=10, c_node_dim=32, c_edge_dim=16, c_hidden_dim=32,
               num_layers=2, max_radius=5.0)
    bb_num_vec = (3, 5)                      # 2 building blocks, 8 atoms
    B, N = 4, sum(bb_num_vec)

    key = jax.random.PRNGKey(0)
    k_at, k_c, k_p = jax.random.split(key, 3)
    atom_types = jax.random.randint(k_at, (B, N), 1, cfg["max_atoms"] + 1,
                                    dtype=jnp.int32)
    local_coords = 2.0 * jax.random.normal(k_c, (B, N, 3), jnp.float32)
    params = init_params(k_p, cfg)

    out = building_block_embedder(atom_types, local_coords, bb_num_vec, params, cfg)
    out = jax.block_until_ready(out)

    ref = reference_forward(atom_types, local_coords, bb_num_vec, params, cfg)
    # bf16 MXU inputs with f32 accumulation and f32 biases vs f32-highest ref.
    np.testing.assert_allclose(np.asarray(out), np.asarray(ref),
                               rtol=5e-2, atol=5e-2)
    print("KERNEL_OK")
</pallas_src>

<mosaic_0001>
module attributes {stable_mosaic.version = 11 : i64} {
  func.func @_bb_embedder_kernel(%arg0: i32, %arg1: memref<2x8x128xf32, #tpu.memory_space<vmem>>, %arg2: memref<2x8x3xf32, #tpu.memory_space<vmem>>, %arg3: memref<8x1x1xi32, #tpu.memory_space<vmem>>, %arg4: memref<1x8x1xi32, #tpu.memory_space<vmem>>, %arg5: memref<8x1x1xi32, #tpu.memory_space<vmem>>, %arg6: memref<1x8x1xi32, #tpu.memory_space<vmem>>, %arg7: memref<1x17xf32, #tpu.memory_space<vmem>>, %arg8: memref<4x16xf32, #tpu.memory_space<vmem>>, %arg9: memref<2x128x384xbf16, #tpu.memory_space<vmem>>, %arg10: memref<17x256xbf16, #tpu.memory_space<vmem>>, %arg11: memref<2x1x128xf32, #tpu.memory_space<vmem>>, %arg12: memref<2x128x128xbf16, #tpu.memory_space<vmem>>, %arg13: memref<2x1x128xf32, #tpu.memory_space<vmem>>, %arg14: memref<2x128x128xbf16, #tpu.memory_space<vmem>>, %arg15: memref<2x1x128xf32, #tpu.memory_space<vmem>>, %arg16: memref<2x128x128xbf16, #tpu.memory_space<vmem>>, %arg17: memref<2x1x128xf32, #tpu.memory_space<vmem>>, %arg18: memref<2x2x128xf32, #tpu.memory_space<vmem>>) attributes {dimension_semantics = [#tpu.dimension_semantics<parallel>], iteration_bounds = array<i64: 2>, scalar_prefetch = 0 : i64, scratch_operands = 0 : i64, tpu.core_type = #tpu.core_type<tc>, window_params = [{transform_indices = @transform_0, window_bounds = array<i64: 2, 8, 128>}, {transform_indices = @transform_1, window_bounds = array<i64: 2, 8, 3>}, {pipeline_mode = #tpu.pipeline_mode<synchronous>, transform_indices = @transform_2, window_bounds = array<i64: 8, 1, 1>}, {pipeline_mode = #tpu.pipeline_mode<synchronous>, transform_indices = @transform_3, window_bounds = array<i64: 1, 8, 1>}, {pipeline_mode = #tpu.pipeline_mode<synchronous>, transform_indices = @transform_4, window_bounds = array<i64: 8, 1, 1>}, {pipeline_mode = #tpu.pipeline_mode<synchronous>, transform_indices = @transform_5, window_bounds = array<i64: 1, 8, 1>}, {pipeline_mode = #tpu.pipeline_mode<synchronous>, transform_indices = @transform_6, window_bounds = array<i64: 1, 17>}, {pipeline_mode = #tpu.pipeline_mode<synchronous>, transform_indices = @transform_7, window_bounds = array<i64: 4, 16>}, {pipeline_mode = #tpu.pipeline_mode<synchronous>, transform_indices = @transform_8, window_bounds = array<i64: 2, 128, 384>}, {pipeline_mode = #tpu.pipeline_mode<synchronous>, transform_indices = @transform_9, window_bounds = array<i64: 17, 256>}, {pipeline_mode = #tpu.pipeline_mode<synchronous>, transform_indices = @transform_10, window_bounds = array<i64: 2, 1, 128>}, {pipeline_mode = #tpu.pipeline_mode<synchronous>, transform_indices = @transform_11, window_bounds = array<i64: 2, 128, 128>}, {pipeline_mode = #tpu.pipeline_mode<synchronous>, transform_indices = @transform_12, window_bounds = array<i64: 2, 1, 128>}, {pipeline_mode = #tpu.pipeline_mode<synchronous>, transform_indices = @transform_13, window_bounds = array<i64: 2, 128, 128>}, {pipeline_mode = #tpu.pipeline_mode<synchronous>, transform_indices = @transform_14, window_bounds = array<i64: 2, 1, 128>}, {pipeline_mode = #tpu.pipeline_mode<synchronous>, transform_indices = @transform_15, window_bounds = array<i64: 2, 128, 128>}, {pipeline_mode = #tpu.pipeline_mode<synchronous>, transform_indices = @transform_16, window_bounds = array<i64: 2, 1, 128>}, {transform_indices = @transform_17, window_bounds = array<i64: 2, 2, 128>}]} {
    %c0 = arith.constant 0 : index
    %c0_0 = arith.constant 0 : index
    %c0_1 = arith.constant 0 : index
    %0 = vector.load %arg1[%c0, %c0_0, %c0_1] : memref<2x8x128xf32, #tpu.memory_space<vmem>>, vector<2x8x128xf32>
    %1 = vector.shape_cast %0 : vector<2x8x128xf32> to vector<16x128xf32>
    %c0_2 = arith.constant 0 : index
    %c0_3 = arith.constant 0 : index
    %c0_4 = arith.constant 0 : index
    %2 = vector.load %arg2[%c0_2, %c0_3, %c0_4] : memref<2x8x3xf32, #tpu.memory_space<vmem>>, vector<2x8x3xf32>
    %cst = arith.constant 0.000000e+00 : f32
    %3 = vector.broadcast %cst : f32 to vector<2x8x8x1xf32>
    %4 = vector.extract_strided_slice %2 {offsets = [0, 0, 0], sizes = [2, 8, 1], strides = [1, 1, 1]} : vector<2x8x3xf32> to vector<2x8x1xf32>
    %5 = vector.shape_cast %4 : vector<2x8x1xf32> to vector<2x8x1x1xf32>
    %6 = vector.shape_cast %4 : vector<2x8x1xf32> to vector<2x1x8x1xf32>
    %7 = vector.broadcast %5 : vector<2x8x1x1xf32> to vector<2x8x8x1xf32>
    %8 = vector.broadcast %6 : vector<2x1x8x1xf32> to vector<2x8x8x1xf32>
    %9 = arith.subf %7, %8 : vector<2x8x8x1xf32>
    %10 = arith.mulf %9, %9 : vector<2x8x8x1xf32>
    %11 = arith.addf %3, %10 : vector<2x8x8x1xf32>
    %12 = vector.extract_strided_slice %2 {offsets = [0, 0, 1], sizes = [2, 8, 1], strides = [1, 1, 1]} : vector<2x8x3xf32> to vector<2x8x1xf32>
    %13 = vector.shape_cast %12 : vector<2x8x1xf32> to vector<2x8x1x1xf32>
    %14 = vector.shape_cast %12 : vector<2x8x1xf32> to vector<2x1x8x1xf32>
    %15 = vector.broadcast %13 : vector<2x8x1x1xf32> to vector<2x8x8x1xf32>
    %16 = vector.broadcast %14 : vector<2x1x8x1xf32> to vector<2x8x8x1xf32>
    %17 = arith.subf %15, %16 : vector<2x8x8x1xf32>
    %18 = arith.mulf %17, %17 : vector<2x8x8x1xf32>
    %19 = arith.addf %11, %18 : vector<2x8x8x1xf32>
    %20 = vector.extract_strided_slice %2 {offsets = [0, 0, 2], sizes = [2, 8, 1], strides = [1, 1, 1]} : vector<2x8x3xf32> to vector<2x8x1xf32>
    %21 = vector.shape_cast %20 : vector<2x8x1xf32> to vector<2x8x1x1xf32>
    %22 = vector.shape_cast %20 : vector<2x8x1xf32> to vector<2x1x8x1xf32>
    %23 = vector.broadcast %21 : vector<2x8x1x1xf32> to vector<2x8x8x1xf32>
    %24 = vector.broadcast %22 : vector<2x1x8x1xf32> to vector<2x8x8x1xf32>
    %25 = arith.subf %23, %24 : vector<2x8x8x1xf32>
    %26 = arith.mulf %25, %25 : vector<2x8x8x1xf32>
    %27 = arith.addf %19, %26 : vector<2x8x8x1xf32>
    %c0_5 = arith.constant 0 : index
    %c0_6 = arith.constant 0 : index
    %c0_7 = arith.constant 0 : index
    %28 = vector.load %arg3[%c0_5, %c0_6, %c0_7] : memref<8x1x1xi32, #tpu.memory_space<vmem>>, vector<8x1x1xi32>
    %c0_8 = arith.constant 0 : index
    %c0_9 = arith.constant 0 : index
    %c0_10 = arith.constant 0 : index
    %29 = vector.load %arg4[%c0_8, %c0_9, %c0_10] : memref<1x8x1xi32, #tpu.memory_space<vmem>>, vector<1x8x1xi32>
    %30 = vector.broadcast %28 : vector<8x1x1xi32> to vector<8x8x1xi32>
    %31 = vector.broadcast %29 : vector<1x8x1xi32> to vector<8x8x1xi32>
    %32 = arith.cmpi eq, %30, %31 : vector<8x8x1xi32>
    %c0_11 = arith.constant 0 : index
    %c0_12 = arith.constant 0 : index
    %c0_13 = arith.constant 0 : index
    %33 = vector.load %arg5[%c0_11, %c0_12, %c0_13] : memref<8x1x1xi32, #tpu.memory_space<vmem>>, vector<8x1x1xi32>
    %c0_14 = arith.constant 0 : index
    %c0_15 = arith.constant 0 : index
    %c0_16 = arith.constant 0 : index
    %34 = vector.load %arg6[%c0_14, %c0_15, %c0_16] : memref<1x8x1xi32, #tpu.memory_space<vmem>>, vector<1x8x1xi32>
    %35 = vector.broadcast %33 : vector<8x1x1xi32> to vector<8x8x1xi32>
    %36 = vector.broadcast %34 : vector<1x8x1xi32> to vector<8x8x1xi32>
    %37 = arith.cmpi ne, %35, %36 : vector<8x8x1xi32>
    %38 = arith.andi %32, %37 : vector<8x8x1xi1>
    %cst_17 = arith.constant 2.500000e+01 : f32
    %39 = vector.broadcast %cst_17 : f32 to vector<2x8x8x1xf32>
    %40 = arith.cmpf ole, %27, %39 : vector<2x8x8x1xf32>
    %41 = vector.shape_cast %38 : vector<8x8x1xi1> to vector<1x8x8x1xi1>
    %42 = vector.broadcast %41 : vector<1x8x8x1xi1> to vector<2x8x8x1xi1>
    %43 = arith.andi %40, %42 : vector<2x8x8x1xi1>
    %44 = math.sqrt %27 : vector<2x8x8x1xf32>
    %45 = vector.shape_cast %44 : vector<2x8x8x1xf32> to vector<128x1xf32>
    %46 = vector.shape_cast %27 : vector<2x8x8x1xf32> to vector<128x1xf32>
    %cst_18 = arith.constant 0.00999999977 : f32
    %47 = vector.broadcast %cst_18 : f32 to vector<128x1xf32>
    %48 = arith.mulf %47, %46 : vector<128x1xf32>
    %49 = tpu.iota {dimensions = array<i32: 1>} : vector<1x17xi32>
    %c0_19 = arith.constant 0 : index
    %c0_20 = arith.constant 0 : index
    %50 = vector.load %arg7[%c0_19, %c0_20] : memref<1x17xf32, #tpu.memory_space<vmem>>, vector<1x17xf32>
    %51 = vector.broadcast %45 : vector<128x1xf32> to vector<128x17xf32>
    %52 = vector.broadcast %50 : vector<1x17xf32> to vector<128x17xf32>
    %53 = arith.subf %51, %52 : vector<128x17xf32>
    %54 = arith.mulf %53, %53 : vector<128x17xf32>
    %cst_21 = arith.constant -4.49999952 : f32
    %55 = vector.broadcast %cst_21 : f32 to vector<128x17xf32>
    %56 = arith.mulf %55, %54 : vector<128x17xf32>
    %57 = math.exp %56 : vector<128x17xf32>
    %c16_i32 = arith.constant 16 : i32
    %58 = vector.broadcast %c16_i32 : i32 to vector<1x17xi32>
    %59 = arith.cmpi slt, %49, %58 : vector<1x17xi32>
    %60 = vector.shape_cast %59 : vector<1x17xi1> to vector<1x17xi1>
    %61 = vector.broadcast %60 : vector<1x17xi1> to vector<128x17xi1>
    %62 = vector.shape_cast %48 : vector<128x1xf32> to vector<128x1xf32>
    %63 = vector.broadcast %62 : vector<128x1xf32> to vector<128x17xf32>
    %64 = arith.select %61, %57, %63 : vector<128x17xi1>, vector<128x17xf32>
    %65 = arith.truncf %64 : vector<128x17xf32> to vector<128x17xbf16>
    %c0_22 = arith.constant 0 : index
    %c0_23 = arith.constant 0 : index
    %66 = vector.load %arg10[%c0_22, %c0_23] : memref<17x256xbf16, #tpu.memory_space<vmem>>, vector<17x256xbf16>
    %cst_24 = arith.constant dense<0.000000e+00> : vector<128x256xf32>
    %67 = tpu.matmul %65, %66, %cst_24 {dimension_numbers = #tpu.dot_dimension_numbers<[1], [0], [0], [1], [0, 0, 1, 1], [], []>} : vector<128x17xbf16>, vector<17x256xbf16>, vector<128x256xf32> -> vector<128x256xf32>
    %68 = arith.truncf %1 : vector<16x128xf32> to vector<16x128xbf16>
    %c0_25 = arith.constant 0 : index
    %c0_26 = arith.constant 0 : index
    %c0_27 = arith.constant 0 : index
    %69 = vector.load %arg9[%c0_25, %c0_26, %c0_27] : memref<2x128x384xbf16, #tpu.memory_space<vmem>>, vector<1x128x384xbf16>
    %70 = vector.shape_cast %69 : vector<1x128x384xbf16> to vector<128x384xbf16>
    %cst_28 = arith.constant dense<0.000000e+00> : vector<16x384xf32>
    %71 = tpu.matmul %68, %70, %cst_28 {dimension_numbers = #tpu.dot_dimension_numbers<[1], [0], [0], [1], [0, 0, 1, 1], [], []>} : vector<16x128xbf16>, vector<128x384xbf16>, vector<16x384xf32> -> vector<16x384xf32>
    %72 = vector.extract_strided_slice %71 {offsets = [0, 0], sizes = [16, 128], strides = [1, 1]} : vector<16x384xf32> to vector<16x128xf32>
    %73 = vector.shape_cast %72 : vector<16x128xf32> to vector<2x8x128xf32>
    %74 = vector.extract_strided_slice %71 {offsets = [0, 128], sizes = [16, 128], strides = [1, 1]} : vector<16x384xf32> to vector<16x128xf32>
    %75 = vector.shape_cast %74 : vector<16x128xf32> to vector<2x8x128xf32>
    %76 = vector.extract_strided_slice %71 {offsets = [0, 256], sizes = [16, 128], strides = [1, 1]} : vector<16x384xf32> to vector<16x128xf32>
    %77 = vector.extract_strided_slice %67 {offsets = [0, 0], sizes = [128, 128], strides = [1, 1]} : vector<128x256xf32> to vector<128x128xf32>
    %78 = vector.shape_cast %77 : vector<128x128xf32> to vector<2x8x8x128xf32>
    %c0_29 = arith.constant 0 : index
    %c0_30 = arith.constant 0 : index
    %c0_31 = arith.constant 0 : index
    %79 = vector.load %arg11[%c0_29, %c0_30, %c0_31] : memref<2x1x128xf32, #tpu.memory_space<vmem>>, vector<1x1x128xf32>
    %80 = vector.shape_cast %79 : vector<1x1x128xf32> to vector<1x128xf32>
    %81 = vector.shape_cast %80 : vector<1x128xf32> to vector<1x1x1x128xf32>
    %82 = vector.broadcast %81 : vector<1x1x1x128xf32> to vector<2x8x8x128xf32>
    %83 = arith.addf %78, %82 : vector<2x8x8x128xf32>
    %84 = vector.shape_cast %73 : vector<2x8x128xf32> to vector<2x8x1x128xf32>
    %85 = vector.broadcast %84 : vector<2x8x1x128xf32> to vector<2x8x8x128xf32>
    %86 = arith.addf %83, %85 : vector<2x8x8x128xf32>
    %87 = vector.shape_cast %75 : vector<2x8x128xf32> to vector<2x1x8x128xf32>
    %88 = vector.broadcast %87 : vector<2x1x8x128xf32> to vector<2x8x8x128xf32>
    %89 = arith.addf %86, %88 : vector<2x8x8x128xf32>
    %cst_32 = arith.constant 0.000000e+00 : f32
    %90 = vector.broadcast %cst_32 : f32 to vector<2x8x8x128xf32>
    %91 = arith.maximumf %89, %90 : vector<2x8x8x128xf32>
    %92 = vector.shape_cast %91 : vector<2x8x8x128xf32> to vector<128x128xf32>
    %93 = arith.truncf %92 : vector<128x128xf32> to vector<128x128xbf16>
    %c0_33 = arith.constant 0 : index
    %c0_34 = arith.constant 0 : index
    %c0_35 = arith.constant 0 : index
    %94 = vector.load %arg12[%c0_33, %c0_34, %c0_35] : memref<2x128x128xbf16, #tpu.memory_space<vmem>>, vector<1x128x128xbf16>
    %95 = vector.shape_cast %94 : vector<1x128x128xbf16> to vector<128x128xbf16>
    %cst_36 = arith.constant dense<0.000000e+00> : vector<128x128xf32>
    %96 = tpu.matmul %93, %95, %cst_36 {dimension_numbers = #tpu.dot_dimension_numbers<[1], [0], [0], [1], [0, 0, 1, 1], [], []>} : vector<128x128xbf16>, vector<128x128xbf16>, vector<128x128xf32> -> vector<128x128xf32>
    %c0_37 = arith.constant 0 : index
    %c0_38 = arith.constant 0 : index
    %c0_39 = arith.constant 0 : index
    %97 = vector.load %arg13[%c0_37, %c0_38, %c0_39] : memref<2x1x128xf32, #tpu.memory_space<vmem>>, vector<1x1x128xf32>
    %98 = vector.shape_cast %97 : vector<1x1x128xf32> to vector<1x128xf32>
    %99 = vector.broadcast %98 : vector<1x128xf32> to vector<128x128xf32>
    %100 = arith.addf %96, %99 : vector<128x128xf32>
    %cst_40 = arith.constant 0.000000e+00 : f32
    %101 = vector.broadcast %cst_40 : f32 to vector<128x128xf32>
    %102 = arith.maximumf %100, %101 : vector<128x128xf32>
    %103 = vector.shape_cast %102 : vector<128x128xf32> to vector<2x8x8x128xf32>
    %cst_41 = arith.constant 0.000000e+00 : f32
    %104 = vector.shape_cast %43 : vector<2x8x8x1xi1> to vector<2x8x8x1xi1>
    %105 = vector.broadcast %104 : vector<2x8x8x1xi1> to vector<2x8x8x128xi1>
    %106 = vector.broadcast %cst_41 : f32 to vector<2x8x8x128xf32>
    %107 = arith.select %105, %103, %106 : vector<2x8x8x128xi1>, vector<2x8x8x128xf32>
    %cst_42 = arith.constant dense<0.000000e+00> : vector<2x8x128xf32>
    %108 = vector.multi_reduction <add>, %107, %cst_42 [2] : vector<2x8x8x128xf32> to vector<2x8x128xf32>
    %109 = vector.shape_cast %108 : vector<2x8x128xf32> to vector<16x128xf32>
    %110 = arith.truncf %109 : vector<16x128xf32> to vector<16x128xbf16>
    %c0_43 = arith.constant 0 : index
    %c0_44 = arith.constant 0 : index
    %c0_45 = arith.constant 0 : index
    %111 = vector.load %arg14[%c0_43, %c0_44, %c0_45] : memref<2x128x128xbf16, #tpu.memory_space<vmem>>, vector<1x128x128xbf16>
    %112 = vector.shape_cast %111 : vector<1x128x128xbf16> to vector<128x128xbf16>
    %cst_46 = arith.constant dense<0.000000e+00> : vector<16x128xf32>
    %113 = tpu.matmul %110, %112, %cst_46 {dimension_numbers = #tpu.dot_dimension_numbers<[1], [0], [0], [1], [0, 0, 1, 1], [], []>} : vector<16x128xbf16>, vector<128x128xbf16>, vector<16x128xf32> -> vector<16x128xf32>
    %114 = arith.addf %76, %113 : vector<16x128xf32>
    %c0_47 = arith.constant 0 : index
    %c0_48 = arith.constant 0 : index
    %c0_49 = arith.constant 0 : index
    %115 = vector.load %arg15[%c0_47, %c0_48, %c0_49] : memref<2x1x128xf32, #tpu.memory_space<vmem>>, vector<1x1x128xf32>
    %116 = vector.shape_cast %115 : vector<1x1x128xf32> to vector<1x128xf32>
    %117 = vector.broadcast %116 : vector<1x128xf32> to vector<16x128xf32>
    %118 = arith.addf %114, %117 : vector<16x128xf32>
    %cst_50 = arith.constant 0.000000e+00 : f32
    %119 = vector.broadcast %cst_50 : f32 to vector<16x128xf32>
    %120 = arith.maximumf %118, %119 : vector<16x128xf32>
    %121 = arith.truncf %120 : vector<16x128xf32> to vector<16x128xbf16>
    %c0_51 = arith.constant 0 : index
    %c0_52 = arith.constant 0 : index
    %c0_53 = arith.constant 0 : index
    %122 = vector.load %arg16[%c0_51, %c0_52, %c0_53] : memref<2x128x128xbf16, #tpu.memory_space<vmem>>, vector<1x128x128xbf16>
    %123 = vector.shape_cast %122 : vector<1x128x128xbf16> to vector<128x128xbf16>
    %cst_54 = arith.constant dense<0.000000e+00> : vector<16x128xf32>
    %124 = tpu.matmul %121, %123, %cst_54 {dimension_numbers = #tpu.dot_dimension_numbers<[1], [0], [0], [1], [0, 0, 1, 1], [], []>} : vector<16x128xbf16>, vector<128x128xbf16>, vector<16x128xf32> -> vector<16x128xf32>
    %c0_55 = arith.constant 0 : index
    %c0_56 = arith.constant 0 : index
    %c0_57 = arith.constant 0 : index
    %125 = vector.load %arg17[%c0_55, %c0_56, %c0_57] : memref<2x1x128xf32, #tpu.memory_space<vmem>>, vector<1x1x128xf32>
    %126 = vector.shape_cast %125 : vector<1x1x128xf32> to vector<1x128xf32>
    %127 = vector.broadcast %126 : vector<1x128xf32> to vector<16x128xf32>
    %128 = arith.addf %124, %127 : vector<16x128xf32>
    %129 = arith.addf %1, %128 : vector<16x128xf32>
    %130 = arith.addf %1, %129 : vector<16x128xf32>
    %131 = arith.truncf %130 : vector<16x128xf32> to vector<16x128xbf16>
    %c1 = arith.constant 1 : index
    %c0_58 = arith.constant 0 : index
    %c0_59 = arith.constant 0 : index
    %132 = vector.load %arg9[%c1, %c0_58, %c0_59] : memref<2x128x384xbf16, #tpu.memory_space<vmem>>, vector<1x128x384xbf16>
    %133 = vector.shape_cast %132 : vector<1x128x384xbf16> to vector<128x384xbf16>
    %cst_60 = arith.constant dense<0.000000e+00> : vector<16x384xf32>
    %134 = tpu.matmul %131, %133, %cst_60 {dimension_numbers = #tpu.dot_dimension_numbers<[1], [0], [0], [1], [0, 0, 1, 1], [], []>} : vector<16x128xbf16>, vector<128x384xbf16>, vector<16x384xf32> -> vector<16x384xf32>
    %135 = vector.extract_strided_slice %134 {offsets = [0, 0], sizes = [16, 128], strides = [1, 1]} : vector<16x384xf32> to vector<16x128xf32>
    %136 = vector.shape_cast %135 : vector<16x128xf32> to vector<2x8x128xf32>
    %137 = vector.extract_strided_slice %134 {offsets = [0, 128], sizes = [16, 128], strides = [1, 1]} : vector<16x384xf32> to vector<16x128xf32>
    %138 = vector.shape_cast %137 : vector<16x128xf32> to vector<2x8x128xf32>
    %139 = vector.extract_strided_slice %134 {offsets = [0, 256], sizes = [16, 128], strides = [1, 1]} : vector<16x384xf32> to vector<16x128xf32>
    %140 = vector.extract_strided_slice %67 {offsets = [0, 128], sizes = [128, 128], strides = [1, 1]} : vector<128x256xf32> to vector<128x128xf32>
    %141 = vector.shape_cast %140 : vector<128x128xf32> to vector<2x8x8x128xf32>
    %c1_61 = arith.constant 1 : index
    %c0_62 = arith.constant 0 : index
    %c0_63 = arith.constant 0 : index
    %142 = vector.load %arg11[%c1_61, %c0_62, %c0_63] : memref<2x1x128xf32, #tpu.memory_space<vmem>>, vector<1x1x128xf32>
    %143 = vector.shape_cast %142 : vector<1x1x128xf32> to vector<1x128xf32>
    %144 = vector.shape_cast %143 : vector<1x128xf32> to vector<1x1x1x128xf32>
    %145 = vector.broadcast %144 : vector<1x1x1x128xf32> to vector<2x8x8x128xf32>
    %146 = arith.addf %141, %145 : vector<2x8x8x128xf32>
    %147 = vector.shape_cast %136 : vector<2x8x128xf32> to vector<2x8x1x128xf32>
    %148 = vector.broadcast %147 : vector<2x8x1x128xf32> to vector<2x8x8x128xf32>
    %149 = arith.addf %146, %148 : vector<2x8x8x128xf32>
    %150 = vector.shape_cast %138 : vector<2x8x128xf32> to vector<2x1x8x128xf32>
    %151 = vector.broadcast %150 : vector<2x1x8x128xf32> to vector<2x8x8x128xf32>
    %152 = arith.addf %149, %151 : vector<2x8x8x128xf32>
    %cst_64 = arith.constant 0.000000e+00 : f32
    %153 = vector.broadcast %cst_64 : f32 to vector<2x8x8x128xf32>
    %154 = arith.maximumf %152, %153 : vector<2x8x8x128xf32>
    %155 = vector.shape_cast %154 : vector<2x8x8x128xf32> to vector<128x128xf32>
    %156 = arith.truncf %155 : vector<128x128xf32> to vector<128x128xbf16>
    %c1_65 = arith.constant 1 : index
    %c0_66 = arith.constant 0 : index
    %c0_67 = arith.constant 0 : index
    %157 = vector.load %arg12[%c1_65, %c0_66, %c0_67] : memref<2x128x128xbf16, #tpu.memory_space<vmem>>, vector<1x128x128xbf16>
    %158 = vector.shape_cast %157 : vector<1x128x128xbf16> to vector<128x128xbf16>
    %cst_68 = arith.constant dense<0.000000e+00> : vector<128x128xf32>
    %159 = tpu.matmul %156, %158, %cst_68 {dimension_numbers = #tpu.dot_dimension_numbers<[1], [0], [0], [1], [0, 0, 1, 1], [], []>} : vector<128x128xbf16>, vector<128x128xbf16>, vector<128x128xf32> -> vector<128x128xf32>
    %c1_69 = arith.constant 1 : index
    %c0_70 = arith.constant 0 : index
    %c0_71 = arith.constant 0 : index
    %160 = vector.load %arg13[%c1_69, %c0_70, %c0_71] : memref<2x1x128xf32, #tpu.memory_space<vmem>>, vector<1x1x128xf32>
    %161 = vector.shape_cast %160 : vector<1x1x128xf32> to vector<1x128xf32>
    %162 = vector.broadcast %161 : vector<1x128xf32> to vector<128x128xf32>
    %163 = arith.addf %159, %162 : vector<128x128xf32>
    %cst_72 = arith.constant 0.000000e+00 : f32
    %164 = vector.broadcast %cst_72 : f32 to vector<128x128xf32>
    %165 = arith.maximumf %163, %164 : vector<128x128xf32>
    %166 = vector.shape_cast %165 : vector<128x128xf32> to vector<2x8x8x128xf32>
    %cst_73 = arith.constant 0.000000e+00 : f32
    %167 = vector.shape_cast %43 : vector<2x8x8x1xi1> to vector<2x8x8x1xi1>
    %168 = vector.broadcast %167 : vector<2x8x8x1xi1> to vector<2x8x8x128xi1>
    %169 = vector.broadcast %cst_73 : f32 to vector<2x8x8x128xf32>
    %170 = arith.select %168, %166, %169 : vector<2x8x8x128xi1>, vector<2x8x8x128xf32>
    %cst_74 = arith.constant dense<0.000000e+00> : vector<2x8x128xf32>
    %171 = vector.multi_reduction <add>, %170, %cst_74 [2] : vector<2x8x8x128xf32> to vector<2x8x128xf32>
    %172 = vector.shape_cast %171 : vector<2x8x128xf32> to vector<16x128xf32>
    %173 = arith.truncf %172 : vector<16x128xf32> to vector<16x128xbf16>
    %c1_75 = arith.constant 1 : index
    %c0_76 = arith.constant 0 : index
    %c0_77 = arith.constant 0 : index
    %174 = vector.load %arg14[%c1_75, %c0_76, %c0_77] : memref<2x128x128xbf16, #tpu.memory_space<vmem>>, vector<1x128x128xbf16>
    %175 = vector.shape_cast %174 : vector<1x128x128xbf16> to vector<128x128xbf16>
    %cst_78 = arith.constant dense<0.000000e+00> : vector<16x128xf32>
    %176 = tpu.matmul %173, %175, %cst_78 {dimension_numbers = #tpu.dot_dimension_numbers<[1], [0], [0], [1], [0, 0, 1, 1], [], []>} : vector<16x128xbf16>, vector<128x128xbf16>, vector<16x128xf32> -> vector<16x128xf32>
    %177 = arith.addf %139, %176 : vector<16x128xf32>
    %c1_79 = arith.constant 1 : index
    %c0_80 = arith.constant 0 : index
    %c0_81 = arith.constant 0 : index
    %178 = vector.load %arg15[%c1_79, %c0_80, %c0_81] : memref<2x1x128xf32, #tpu.memory_space<vmem>>, vector<1x1x128xf32>
    %179 = vector.shape_cast %178 : vector<1x1x128xf32> to vector<1x128xf32>
    %180 = vector.broadcast %179 : vector<1x128xf32> to vector<16x128xf32>
    %181 = arith.addf %177, %180 : vector<16x128xf32>
    %cst_82 = arith.constant 0.000000e+00 : f32
    %182 = vector.broadcast %cst_82 : f32 to vector<16x128xf32>
    %183 = arith.maximumf %181, %182 : vector<16x128xf32>
    %184 = arith.truncf %183 : vector<16x128xf32> to vector<16x128xbf16>
    %c1_83 = arith.constant 1 : index
    %c0_84 = arith.constant 0 : index
    %c0_85 = arith.constant 0 : index
    %185 = vector.load %arg16[%c1_83, %c0_84, %c0_85] : memref<2x128x128xbf16, #tpu.memory_space<vmem>>, vector<1x128x128xbf16>
    %186 = vector.shape_cast %185 : vector<1x128x128xbf16> to vector<128x128xbf16>
    %cst_86 = arith.constant dense<0.000000e+00> : vector<16x128xf32>
    %187 = tpu.matmul %184, %186, %cst_86 {dimension_numbers = #tpu.dot_dimension_numbers<[1], [0], [0], [1], [0, 0, 1, 1], [], []>} : vector<16x128xbf16>, vector<128x128xbf16>, vector<16x128xf32> -> vector<16x128xf32>
    %c1_87 = arith.constant 1 : index
    %c0_88 = arith.constant 0 : index
    %c0_89 = arith.constant 0 : index
    %188 = vector.load %arg17[%c1_87, %c0_88, %c0_89] : memref<2x1x128xf32, #tpu.memory_space<vmem>>, vector<1x1x128xf32>
    %189 = vector.shape_cast %188 : vector<1x1x128xf32> to vector<1x128xf32>
    %190 = vector.broadcast %189 : vector<1x128xf32> to vector<16x128xf32>
    %191 = arith.addf %187, %190 : vector<16x128xf32>
    %192 = arith.addf %130, %191 : vector<16x128xf32>
    %193 = arith.addf %130, %192 : vector<16x128xf32>
    %c0_90 = arith.constant 0 : index
    %c0_91 = arith.constant 0 : index
    %194 = vector.load %arg8[%c0_90, %c0_91] : memref<4x16xf32, #tpu.memory_space<vmem>>, vector<4x16xf32>
    %cst_92 = arith.constant dense<0.000000e+00> : vector<4x128xf32>
    %195 = tpu.matmul %194, %193, %cst_92 {dimension_numbers = #tpu.dot_dimension_numbers<[1], [0], [0], [1], [0, 0, 1, 1], [], []>} : vector<4x16xf32>, vector<16x128xf32>, vector<4x128xf32> -> vector<4x128xf32>
    %196 = vector.shape_cast %195 : vector<4x128xf32> to vector<2x2x128xf32>
    %c0_93 = arith.constant 0 : index
    %c0_94 = arith.constant 0 : index
    %c0_95 = arith.constant 0 : index
    %197 = vector.load %arg18[%c0_93, %c0_94, %c0_95] : memref<2x2x128xf32, #tpu.memory_space<vmem>>, vector<2x2x128xf32>
    tpu.vector_store %arg18[%c0_93, %c0_94, %c0_95], %196 {strides = array<i32>} : memref<2x2x128xf32, #tpu.memory_space<vmem>>, vector<2x2x128xf32>,
    return
  }
  func.func @transform_0(%arg0: i32) -> (i32, i32, i32) {
    %c0_i32 = arith.constant 0 : i32
    %c0_i32_0 = arith.constant 0 : i32
    %c0_i32_1 = arith.constant 0 : i32
    return %arg0, %c0_i32, %c0_i32_0 : i32, i32, i32
  }
  func.func @transform_1(%arg0: i32) -> (i32, i32, i32) {
    %c0_i32 = arith.constant 0 : i32
    %c0_i32_0 = arith.constant 0 : i32
    %c0_i32_1 = arith.constant 0 : i32
    return %arg0, %c0_i32, %c0_i32_0 : i32, i32, i32
  }
  func.func @transform_2(%arg0: i32) -> (i32, i32, i32) {
    %c0_i32 = arith.constant 0 : i32
    %c0_i32_0 = arith.constant 0 : i32
    %c0_i32_1 = arith.constant 0 : i32
    %c0_i32_2 = arith.constant 0 : i32
    return %c0_i32, %c0_i32_0, %c0_i32_1 : i32, i32, i32
  }
  func.func @transform_3(%arg0: i32) -> (i32, i32, i32) {
    %c0_i32 = arith.constant 0 : i32
    %c0_i32_0 = arith.constant 0 : i32
    %c0_i32_1 = arith.constant 0 : i32
    %c0_i32_2 = arith.constant 0 : i32
    return %c0_i32, %c0_i32_0, %c0_i32_1 : i32, i32, i32
  }
  func.func @transform_4(%arg0: i32) -> (i32, i32, i32) {
    %c0_i32 = arith.constant 0 : i32
    %c0_i32_0 = arith.constant 0 : i32
    %c0_i32_1 = arith.constant 0 : i32
    %c0_i32_2 = arith.constant 0 : i32
    return %c0_i32, %c0_i32_0, %c0_i32_1 : i32, i32, i32
  }
  func.func @transform_5(%arg0: i32) -> (i32, i32, i32) {
    %c0_i32 = arith.constant 0 : i32
    %c0_i32_0 = arith.constant 0 : i32
    %c0_i32_1 = arith.constant 0 : i32
    %c0_i32_2 = arith.constant 0 : i32
    return %c0_i32, %c0_i32_0, %c0_i32_1 : i32, i32, i32
  }
  func.func @transform_6(%arg0: i32) -> (i32, i32) {
    %c0_i32 = arith.constant 0 : i32
    %c0_i32_0 = arith.constant 0 : i32
    %c0_i32_1 = arith.constant 0 : i32
    return %c0_i32, %c0_i32_0 : i32, i32
  }
  func.func @transform_7(%arg0: i32) -> (i32, i32) {
    %c0_i32 = arith.constant 0 : i32
    %c0_i32_0 = arith.constant 0 : i32
    %c0_i32_1 = arith.constant 0 : i32
    return %c0_i32, %c0_i32_0 : i32, i32
  }
  func.func @transform_8(%arg0: i32) -> (i32, i32, i32) {
    %c0_i32 = arith.constant 0 : i32
    %c0_i32_0 = arith.constant 0 : i32
    %c0_i32_1 = arith.constant 0 : i32
    %c0_i32_2 = arith.constant 0 : i32
    return %c0_i32, %c0_i32_0, %c0_i32_1 : i32, i32, i32
  }
  func.func @transform_9(%arg0: i32) -> (i32, i32) {
    %c0_i32 = arith.constant 0 : i32
    %c0_i32_0 = arith.constant 0 : i32
    %c0_i32_1 = arith.constant 0 : i32
    return %c0_i32, %c0_i32_0 : i32, i32
  }
  func.func @transform_10(%arg0: i32) -> (i32, i32, i32) {
    %c0_i32 = arith.constant 0 : i32
    %c0_i32_0 = arith.constant 0 : i32
    %c0_i32_1 = arith.constant 0 : i32
    %c0_i32_2 = arith.constant 0 : i32
    return %c0_i32, %c0_i32_0, %c0_i32_1 : i32, i32, i32
  }
  func.func @transform_11(%arg0: i32) -> (i32, i32, i32) {
    %c0_i32 = arith.constant 0 : i32
    %c0_i32_0 = arith.constant 0 : i32
    %c0_i32_1 = arith.constant 0 : i32
    %c0_i32_2 = arith.constant 0 : i32
    return %c0_i32, %c0_i32_0, %c0_i32_1 : i32, i32, i32
  }
  func.func @transform_12(%arg0: i32) -> (i32, i32, i32) {
    %c0_i32 = arith.constant 0 : i32
    %c0_i32_0 = arith.constant 0 : i32
    %c0_i32_1 = arith.constant 0 : i32
    %c0_i32_2 = arith.constant 0 : i32
    return %c0_i32, %c0_i32_0, %c0_i32_1 : i32, i32, i32
  }
  func.func @transform_13(%arg0: i32) -> (i32, i32, i32) {
    %c0_i32 = arith.constant 0 : i32
    %c0_i32_0 = arith.constant 0 : i32
    %c0_i32_1 = arith.constant 0 : i32
    %c0_i32_2 = arith.constant 0 : i32
    return %c0_i32, %c0_i32_0, %c0_i32_1 : i32, i32, i32
  }
  func.func @transform_14(%arg0: i32) -> (i32, i32, i32) {
    %c0_i32 = arith.constant 0 : i32
    %c0_i32_0 = arith.constant 0 : i32
    %c0_i32_1 = arith.constant 0 : i32
    %c0_i32_2 = arith.constant 0 : i32
    return %c0_i32, %c0_i32_0, %c0_i32_1 : i32, i32, i32
  }
  func.func @transform_15(%arg0: i32) -> (i32, i32, i32) {
    %c0_i32 = arith.constant 0 : i32
    %c0_i32_0 = arith.constant 0 : i32
    %c0_i32_1 = arith.constant 0 : i32
    %c0_i32_2 = arith.constant 0 : i32
    return %c0_i32, %c0_i32_0, %c0_i32_1 : i32, i32, i32
  }
  func.func @transform_16(%arg0: i32) -> (i32, i32, i32) {
    %c0_i32 = arith.constant 0 : i32
    %c0_i32_0 = arith.constant 0 : i32
    %c0_i32_1 = arith.constant 0 : i32
    %c0_i32_2 = arith.constant 0 : i32
    return %c0_i32, %c0_i32_0, %c0_i32_1 : i32, i32, i32
  }
  func.func @transform_17(%arg0: i32) -> (i32, i32, i32) {
    %c0_i32 = arith.constant 0 : i32
    %c0_i32_0 = arith.constant 0 : i32
    %c0_i32_1 = arith.constant 0 : i32
    return %arg0, %c0_i32, %c0_i32_0 : i32, i32, i32
  }
}

</mosaic_0001>

<bundles_post_ra>
// kernel: tpu_custom_call.1
= control target key start
LH: loop header
LB: loop body
LE: loop exit
PB: predicated region body
PF: predicated region fallthrough
CT: control target
= control target key end

     0   :  { %s6528_s0 = inlined_call_operand.vmem [shape: f32[4,8,128], index: 0, kind: input, shape index: {}]   ;;  %s6529_s1 = inlined_call_operand.vmem [shape: f32[4,8,3], index: 1, kind: input, shape index: {}]   ;;  %s6530_s2 = inlined_call_operand.vmem [shape: s32[8,1,1], index: 2, kind: input, shape index: {}]   ;;  %s6531_s3 = inlined_call_operand.vmem [shape: s32[1,8,1], index: 3, kind: input, shape index: {}]   ;;  %s6532_s4 = inlined_call_operand.vmem [shape: s32[8,1,1], index: 4, kind: input, shape index: {}]   ;;  %s6533_s5 = inlined_call_operand.vmem [shape: s32[1,8,1], index: 5, kind: input, shape index: {}]   ;;  %s6534_s6 = inlined_call_operand.vmem [shape: f32[1,17], index: 6, kind: input, shape index: {}]   ;;  %s6535_s7 = inlined_call_operand.vmem [shape: f32[4,16], index: 7, kind: input, shape index: {}]   ;;  %s6536_s8 = inlined_call_operand.hbm [shape: bf16[2,128,384], index: 8, kind: input, shape index: {}]   ;;  %s6537_s9 = inlined_call_operand.vmem [shape: bf16[17,256], index: 9, kind: input, shape index: {}]   ;;  %s6538_s10 = inlined_call_operand.vmem [shape: f32[2,1,128], index: 10, kind: input, shape index: {}]   ;;  %s6539_s11 = inlined_call_operand.hbm [shape: bf16[2,128,128], index: 11, kind: input, shape index: {}]   ;;  %s6540_s12 = inlined_call_operand.vmem [shape: f32[2,1,128], index: 12, kind: input, shape index: {}]   ;;  %s6541_s13 = inlined_call_operand.hbm [shape: bf16[2,128,128], index: 13, kind: input, shape index: {}]   ;;  %s6542_s14 = inlined_call_operand.vmem [shape: f32[2,1,128], index: 14, kind: input, shape index: {}]   ;;  %s6543_s15 = inlined_call_operand.hbm [shape: bf16[2,128,128], index: 15, kind: input, shape index: {}]   ;;  %s6544_s16 = inlined_call_operand.vmem [shape: f32[2,1,128], index: 16, kind: input, shape index: {}]   ;;  %s6545_s17 = inlined_call_operand.hbm [shape: f32[4,2,128], index: 17, kind: output, shape index: {}]  }
   0x1   :  { %6580 = sst [smem:[#allocation32_spill]] %s6528_s0 }
   0x2   :  { %6581 = sst [smem:[#allocation33_spill]] %s6529_s1 }
   0x3   :  { %6582 = sst [smem:[#allocation34_spill]] %s6545_s17 }
   0x4   :  { %22 = vsyncpa [#allocation3], 0 }
   0x5   :  { %23 = vsyncpa [#allocation6], 0 }
   0x6   :  { %24 = vsyncpa [#allocation9], 0 }
   0x7   :  { %25 = vsyncpa [#allocation4], 0 }
   0x8   :  { %27 = vsyncpa [#allocation4 + $0x1], 0  ;;  %s5289_s24 = smov 0   ;;  %s5291_s25 = smov 0  }
   0x9   :  { %s5293_s26 = smov 0   ;;  %s5295_s27 = smov 0  }
   0xa LB: > { %6583 = sst [smem:[#allocation15_spill]] %s5167_s24  ;;  %s5310_s28 = sadd.s32 4294967295, %s5179_s27   ;;  %s5179_s27 = sphi %s5295_s27, %s6654_s27   ;;  %s5175_s26 = sphi %s5293_s26, %s6656_s26   ;;  %s5171_s25 = sphi %s5291_s25, %s6658_s25   ;;  %s5167_s24 = sphi %s5289_s24, %s6657_s24  }
   0xb   : > { %6584 = sst [smem:[#allocation16_spill]] %s5175_s26  ;;  %s4241_s29 = sadd.s32 4294967294, %s5179_s27  }
   0xc   : > { %6585 = sst [smem:[#allocation17_spill]] %s5179_s27  ;;  %s5314_s0 = sadd.s32 1, %s5179_s27  }
   0xd   : > { %6586 = sst [smem:[#allocation18_spill]] %s5314_s0  ;;  %s407_s30 = sadd.s32 1, %s5175_s26 }
   0xe   : > { %s404_s18 = ssub.s32 %s5179_s27, %s5314_s0  ;;  %p417_p0 = scmp.ne.s32.totalorder %s5175_s26, %s5171_s25 }
   0xf   : > { %p405_p1 = scmp.eq.s32.totalorder %s404_s18, 0  ;;  %p418_p2 = scmp.eq.s32.totalorder %s5310_s28, 1 }
  0x10   : > { %p423_p3 = scmp.ne.s32.totalorder %s5171_s25, %s5167_s24  ;;  %p424_p4 = scmp.eq.s32.totalorder %s4241_s29, 1 }
  0x11   : > { %s5325_s19 = scalar_select %p405_p1, %s5175_s26, %s407_s30  }
  0x12   : > { %p5327_p5 = por %p418_p2, %p417_p0  ;;  %p5331_p6 = por %p424_p4, %p423_p3 }
  0x13   : > { %6587 = sst [smem:[#allocation19_spill]] %s5325_s19  ;;  %p4242_p7 = scmp.ge.s32.totalorder %s5179_s27, 1 }
  0x14   : > { %s6589_s20 = scalar_select %p5331_p6, 1, 0 }
  0x15   : > { %p431_p8 = scmp.lt.s32.totalorder %s5179_s27, 3  ;;  %p6557_p9 = scmp.eq.s32.totalorder %s5310_s28, 0 }
  0x16   : > { %6590 = sst [smem:[#allocation20_spill]] %s6589_s20  ;;  %s5181_s22 = smov [#allocation5]  }
  0x17   : > { %p5338_p10 = pnand %p4242_p7, %p431_p8  ;;  %s480_s23 = sshll.u32 %s5181_s22, 4  ;;  %s481_s23 = int_to_ptr.vmem [resolvable:$true] %s480_s23 }
  0x18   : > { %s5182_s30 = smov [#allocation2]   ;;  %s5014_s19 = scalar_lea.vmem %s481_s23, 2048 }
  0x19   : > { %p4701_p11 = pneg %p5338_p10  ;;  %s461_s18 = sshll.u32 %s5182_s30, 4  ;;  %s462_s18 = int_to_ptr.vmem [resolvable:$true] %s461_s18 }
  0x1a   : > { %p5015_p0 = scmp.ne.s32.totalorder %s481_s23, %s5014_s19  ;;  %p5022_p3 = scmp.lt.s32.totalorder %s481_s23, %s481_s23 }
  0x1b   : > { %p5346_p12 = pnand %p6557_p9, %p4701_p11  ;;  %p5023_p4 = scmp.lt.s32.totalorder %s5014_s19, %s5014_s19 }
  0x1d   : > { %p5005_p13 = pneg %p5346_p12  ;;  %p5024_p7 = por %p5023_p4, %p5022_p3 }
  0x1f   : > { %p5017_p1 = pnand %p5015_p0, %p5005_p13 }
  0x21   : > { %p5018_p2 = pneg %p5017_p1 }
  0x23   : > { %p5025_p8 = pnand %p5024_p7, %p5018_p2 }
  0x25   : > { %5028 = shalt.err (!%p5025_p8)
}
  0x26   : > { %s6553_s22 = smov 64   ;;  %s6555_s26 = smov 4  }
  0x27   : > { %4707 = dma.hbm_to_vmem [thread:$0]  (!%p5346_p12), %s6539_s11, 2048, %s481_s23, [#allocation6], %s6553_s22, %s6553_s22, %s6555_s26  }
  0x28   : > { %s5040_s20 = scalar_lea.vmem %s462_s18, 6144  ;;  %p5048_p2 = scmp.lt.s32.totalorder %s462_s18, %s462_s18 }
  0x29   : > { %p5041_p11 = scmp.ne.s32.totalorder %s462_s18, %s5040_s20  ;;  %p5049_p3 = scmp.lt.s32.totalorder %s5040_s20, %s5040_s20 }
  0x2b   : > { %p5043_p0 = pnand %p5041_p11, %p5005_p13  ;;  %p5050_p4 = por %p5049_p3, %p5048_p2 }
  0x2d   : > { %p5044_p1 = pneg %p5043_p0 }
  0x2f   : > { %p5051_p7 = pnand %p5050_p4, %p5044_p1 }
  0x31   : > { %5054 = shalt.err (!%p5051_p7)
}
  0x32   : > { %s5185_s19 = smov 192   ;;  %s5186_s24 = smov 12  }
  0x33   : > { %4704 = dma.hbm_to_vmem [thread:$0]  (!%p5346_p12), %s6536_s8, 6144, %s462_s18, [#allocation3], %s5185_s19, %s5185_s19, %s5186_s24  }
  0x34   : > { %s5187_s0 = smov [#allocation7]   ;;  %s5188_s30 = smov [#allocation8]  }
  0x35   : > { %s496_s23 = sshll.u32 %s5187_s0, 4  ;;  %s512_s22 = sshll.u32 %s5188_s30, 4  ;;  %s497_s23 = int_to_ptr.vmem [resolvable:$true] %s496_s23  ;;  %s513_s22 = int_to_ptr.vmem [resolvable:$true] %s512_s22 }
  0x36   : > { %s5066_s26 = scalar_lea.vmem %s497_s23, 2048  ;;  %p5074_p1 = scmp.lt.s32.totalorder %s497_s23, %s497_s23 }
  0x37   : > { %p5067_p8 = scmp.ne.s32.totalorder %s497_s23, %s5066_s26  ;;  %p5075_p2 = scmp.lt.s32.totalorder %s5066_s26, %s5066_s26 }
  0x39   : > { %p5069_p11 = pnand %p5067_p8, %p5005_p13  ;;  %p5076_p3 = por %p5075_p2, %p5074_p1 }
  0x3b   : > { %p5070_p0 = pneg %p5069_p11 }
  0x3d   : > { %p5077_p4 = pnand %p5076_p3, %p5070_p0 }
  0x3f   : > { %5080 = shalt.err (!%p5077_p4)
}
  0x40   : > { %s6593_s17 = smov 4   ;;  %s6594_s24 = smov 64  }
  0x41   : > { %4710 = dma.hbm_to_vmem [thread:$0]  (!%p5346_p12), %s6541_s13, 2048, %s497_s23, [#allocation6], %s6594_s24, %s6594_s24, %s6593_s17  }
  0x42   : > { %s5092_s18 = scalar_lea.vmem %s513_s22, 2048  ;;  %p5100_p9 = scmp.lt.s32.totalorder %s513_s22, %s513_s22 }
  0x43   : > { %p5093_p7 = scmp.ne.s32.totalorder %s513_s22, %s5092_s18  ;;  %p5101_p1 = scmp.lt.s32.totalorder %s5092_s18, %s5092_s18 }
  0x45   : > { %p5095_p8 = pnand %p5093_p7, %p5005_p13  ;;  %p5102_p0 = por %p5101_p1, %p5100_p9 }
  0x47   : > { %p5096_p11 = pneg %p5095_p8 }
  0x49   : > { %p5103_p2 = pnand %p5102_p0, %p5096_p11 }
  0x4b   : > { %5106 = shalt.err (!%p5103_p2)
}
  0x4c   : > { %4713 = dma.hbm_to_vmem [thread:$0]  (!%p5346_p12), %s6543_s15, 2048, %s513_s22, [#allocation9], %s6594_s24, %s6594_s24, %s6593_s17  }
  0x4d   : > { %549 = sbr.rel (%p5338_p10) target bundleno = 2387 (0x953), region = 88 }
  0x52   : > { %p6595_p13 = scmp.eq.s32.totalorder %s5310_s28, 0 }
  0x54   : > { %5150 = dma.done.wait (%p6595_p13), [#allocation3], 6144   ;;  %p6596_p3 = pmov %p6595_p13 }
  0x56   : > { %5152 = vsyncadd (%p6596_p3), [#allocation3], 4294961152  ;;  %p6597_p9 = pmov %p6596_p3 }
  0x57   : > { %p6598_p4 = pmov %p6596_p3 }
  0x58   : > { %5154 = dma.done.wait (%p6597_p9), [#allocation6], 4096  }
  0x59   : > { %5156 = vsyncadd (%p6598_p4), [#allocation6], 4294963200  ;;  %p6599_p7 = pmov %p6596_p3 }
  0x5a   : > { %p6600_p12 = pmov %p6596_p3 }
  0x5b   : > { %5158 = dma.done.wait (%p6599_p7), [#allocation9], 2048  }
  0x5c   : > { %5160 = vsyncadd (%p6600_p12), [#allocation9], 4294965248  ;;  %s4254_s21 = sshll.u32 %s5310_s28, 1  ;;  %v642_v0 = vlaneseq  ;;  %v5189_v1 = vmov 1966171168   ;;  %s6602_s23 = sld [smem:[#allocation33_spill]] }
  0x5d   : > { %p619_p10 = scmp.lt.s32.totalorder %s4254_s21, 3  ;;  %v640_v2 = vunpack.c.l.s4 %v5189_v1  ;;  %v6560_v16 = vmov 0   ;;  %s5191_s17 = smov 126   ;;  %vm1609_vm12 = vcmask 1040384  }
  0x5e   : > { %v5409_v3 = vshrl.u32 %v642_v0, 7  ;;  %4776 = vset.pattern.permute.xlu0 %v6560_v16  ;;  %4777 = vset.pattern.permute.xlu1 %v6560_v16  ;;  %s5192_s24 = smov 127   ;;  %s6603_s19 = sld [smem:[#allocation32_spill]] }
  0x5f   : > { %s6660_s21 = smov (!%p619_p10, %s4254_s21), 3  ;;  %v641_v4 = vunpack.c.0.s8 %v640_v2  ;;  %1924 = vmatprep.mubr.bf16.mxu1 %v6560_v16  ;;  %1650 = vmatprep.mubr.bf16.mxu0 %v6560_v16  ;;  %s4402_s0 = sshll.u32 %s5310_s28, 6 }
  0x60   : > { %6601 = vst [vmem:[#allocation21_spill] sm:$0xff] %v5409_v3  ;;  %s4255_s29 = sshll.u32 %s6660_s21, 3  ;;  %v5427_v8 = vsub.s32 0, %v5409_v3  ;;  %s5196_s28 = smov [#allocation10]  }
  0x61   : > { %v5415_v5 = vsub.s32 %v641_v4, %v5409_v3  ;;  %s5111_s18 = sshll.u32 %s5196_s28, 4  ;;  %s5112_s18 = int_to_ptr.vmem [resolvable:$false] %s5111_s18 }
  0x62   : > { %s5422_s30 = scalar_lea.vmem %s6602_s23, %s4255_s29  ;;  %s5113_s26 = scalar_lea.vmem %s5112_s18, 128 }
  0x63   : > { %v634_v6 = vld [vmem:[%s5422_s30] sm:$0xff]  ;;  %v5461_v34 = vld [vmem:[%s5422_s30 + $0x8] sm:$0xff] }
  0x64   : > { %v645_v7 = vrot.slane %v634_v6, %v5415_v5  ;;  %v638_v9 = vcombine.high %v634_v6, %v634_v6  ;;  %v694_v36 = vrot.slane %v5461_v34, %v5415_v5  ;;  %v687_v50 = vcombine.high %v5461_v34, %v5461_v34  ;;  %s5665_s22 = scalar_lea.vmem %s6603_s19, %s4255_s29  ;;  %s615_s19 = sand.u32 1, %s5171_s25  }
  0x65   : > { %s4253_s21 = sshll.u32 %s615_s19, 2  ;;  %s6488_s27 = scalar_lea.sflag [#allocation4], %s615_s19 }
  0x66   : > { %v661_v10 = vrot.slane %v645_v7, %v5415_v5  ;;  %v653_v11 = vcombine.high %v645_v7, %v645_v7  ;;  %v652_v12 = vrot.slane %v638_v9, %v5415_v5  ;;  %v702_v41 = vcombine.high %v694_v36, %v694_v36  ;;  %s617_s29 = scalar_lea.vmem [#allocation10], %s4253_s21 }
  0x67   : > { %v710_v45 = vrot.slane %v694_v36, %v5415_v5  ;;  %v701_v58 = vrot.slane %v687_v50, %v5415_v5 }
  0x68   : > { %v739_v13 = vrot.slane %v661_v10, %v5427_v8  ;;  %v675_v14 = vrot.slane %v653_v11, %v5415_v5  ;;  %v683_v15 = vcombine.high %v661_v10, %v661_v10  ;;  %v654_v17 = vcombine.high %v652_v12, %v652_v12 }
  0x69   : > { %v668_v25 = vrot.slane %v652_v12, %v5415_v5  ;;  %v724_v48 = vrot.slane %v702_v41, %v5415_v5  ;;  %v771_v49 = vrot.slane %v710_v45, %v5427_v8  ;;  %v732_v55 = vcombine.high %v710_v45, %v710_v45 }
  0x6a   : > { %v816_v18 = vsub.f32 %v739_v13, %v634_v6  ;;  %v743_v19 = vrot.slane %v675_v14, %v5427_v8  ;;  %v747_v20 = vrot.slane %v683_v15, %v5427_v8  ;;  %v685_v21 = vcombine.high %v675_v14, %v675_v14 }
  0x6b   : > { %v682_v26 = vrot.slane %v654_v17, %v5415_v5  ;;  %v755_v30 = vrot.slane %v668_v25, %v5427_v8  ;;  %v684_v35 = vcombine.high %v668_v25, %v668_v25  ;;  %v775_v53 = vrot.slane %v724_v48, %v5427_v8 }
  0x6c   : > { %v5439_v22 = vmul.f32 %v816_v18, %v816_v18  ;;  %v817_v23 = vsub.f32 %v743_v19, %v634_v6  ;;  %v751_v24 = vrot.slane %v685_v21, %v5427_v8  ;;  %v818_v28 = vsub.f32 %v747_v20, %v634_v6 }
  0x6d   : > { %v759_v33 = vrot.slane %v682_v26, %v5427_v8  ;;  %v820_v37 = vsub.f32 %v755_v30, %v634_v6  ;;  %v686_v39 = vcombine.high %v682_v26, %v682_v26  ;;  %v763_v40 = vrot.slane %v684_v35, %v5427_v8  ;;  %v4820_v26 = vld [vmem:[#allocation2 + $0xac] ss:$12 sps:$4 sm:$0xff]   ;;  %v4825_v30 = vld [vmem:[#allocation2 + $0x90] ss:$12 sps:$4 sm:$0xff]  }
  0x6e   : > { %944 = vrot.lane.b32.xlu1 %v5439_v22, %s5191_s17  ;;  %880 = vrot.lane.b32.xlu0 %v5439_v22, %s5192_s24  ;;  %v5448_v27 = vmul.f32 %v817_v23, %v817_v23  ;;  %v819_v29 = vsub.f32 %v751_v24, %v634_v6  ;;  %v5455_v31 = vmul.f32 %v818_v28, %v818_v28  ;;  %v4822_v28 = vld [vmem:[#allocation2 + $0xa8] ss:$12 sps:$4 sm:$0xff]  }
  0x6f   : > { %v821_v38 = vsub.f32 %v759_v33, %v634_v6  ;;  %v5474_v42 = vmul.f32 %v820_v37, %v820_v37  ;;  %v767_v44 = vrot.slane %v686_v39, %v5427_v8  ;;  %v822_v46 = vsub.f32 %v763_v40, %v634_v6  ;;  %1892 = vmatprep.subr.bf16.mxu1 %v4820_v26 }
  0x70   : > { %v5457_v32 = vmul.f32 %v819_v29, %v819_v29  ;;  %v824_v54 = vsub.f32 %v771_v49, %v5461_v34  ;;  %v825_v56 = vsub.f32 %v775_v53, %v5461_v34  ;;  %v734_v57 = vcombine.high %v724_v48, %v724_v48  ;;  %v4823_v29 = vld [vmem:[#allocation2 + $0x94] ss:$12 sps:$4 sm:$0xff]   ;;  %1893 = vmatpush1.bf16.msra.mxu1 %v4822_v28 }
  0x71   : > { %v5476_v43 = vmul.f32 %v821_v38, %v821_v38  ;;  %v823_v47 = vsub.f32 %v767_v44, %v634_v6  ;;  %v5492_v51 = vmul.f32 %v822_v46, %v822_v46  ;;  %v779_v60 = vrot.slane %v732_v55, %v5427_v8  ;;  %1894 = vmatprep.subr.bf16.mxu1 %v4823_v29 }
  0x72   : > { %946 = vrot.lane.b32.xlu1 %v5448_v27, %s5191_s17  ;;  %882 = vrot.lane.b32.xlu0 %v5448_v27, %s5192_s24  ;;  %v5504_v59 = vmul.f32 %v824_v54, %v824_v54  ;;  %v5511_v61 = vmul.f32 %v825_v56, %v825_v56  ;;  %v783_v62 = vrot.slane %v734_v57, %v5427_v8 }
  0x73   : > { %v5494_v52 = vmul.f32 %v823_v47, %v823_v47  ;;  %v703_v63 = vcombine.high %v701_v58, %v701_v58  ;;  %v826_v1 = vsub.f32 %v779_v60, %v5461_v34  ;;  %v717_v4 = vrot.slane %v701_v58, %v5415_v5 }
  0x74   : > { %v827_v2 = vsub.f32 %v783_v62, %v5461_v34  ;;  %1895 = vmatpush1.bf16.msra.mxu1 %v4825_v30 }
  0x75   : > { %v731_v6 = vrot.slane %v703_v63, %v5415_v5  ;;  %v5522_v7 = vmul.f32 %v826_v1, %v826_v1  ;;  %v787_v10 = vrot.slane %v717_v4, %v5427_v8  ;;  %v733_v12 = vcombine.high %v717_v4, %v717_v4  ;;  %v4826_v1 = vld [vmem:[#allocation2 + $0x7c] ss:$12 sps:$4 sm:$0xff]  }
  0x76   : > { %884 = vrot.lane.b32.xlu0 %v5455_v31, %s5192_s24  ;;  %886 = vrot.lane.b32.xlu1 %v5457_v32, %s5192_s24  ;;  %v5528_v9 = vmul.f32 %v827_v2, %v827_v2 }
  0x77   : > { %v791_v11 = vrot.slane %v731_v6, %v5427_v8  ;;  %v828_v13 = vsub.f32 %v787_v10, %v5461_v34  ;;  %v735_v15 = vcombine.high %v731_v6, %v731_v6  ;;  %v795_v17 = vrot.slane %v733_v12, %v5427_v8  ;;  %v4828_v10 = vld [vmem:[#allocation2 + $0x78] ss:$12 sps:$4 sm:$0xff]   ;;  %1896 = vmatprep.subr.bf16.mxu1 %v4826_v1 }
  0x78   : > { %1897 = vmatpush1.bf16.msra.mxu1 %v4828_v10  ;;  %v1568_v10 = vld [vmem:[%s6537_s9 + $0x10] sm:$0x11] }
  0x79   : > { %v829_v14 = vsub.f32 %v791_v11, %v5461_v34  ;;  %v5543_v18 = vmul.f32 %v828_v13, %v828_v13  ;;  %v799_v20 = vrot.slane %v735_v15, %v5427_v8  ;;  %v830_v21 = vsub.f32 %v795_v17, %v5461_v34  ;;  %v4829_v15 = vld [vmem:[#allocation2 + $0x64] ss:$12 sps:$4 sm:$0xff]  }
  0x7a   : > { %948 = vrot.lane.b32.xlu0 %v5455_v31, %s5191_s17  ;;  %950 = vrot.lane.b32.xlu1 %v5457_v32, %s5191_s17 }
  0x7b   : > { %v5545_v19 = vmul.f32 %v829_v14, %v829_v14  ;;  %v831_v23 = vsub.f32 %v799_v20, %v5461_v34  ;;  %v5558_v24 = vmul.f32 %v830_v21, %v830_v21  ;;  %1898 = vmatprep.subr.bf16.mxu1 %v4829_v15 }
  0x7d   : > { %v5560_v25 = vmul.f32 %v831_v23, %v831_v23  ;;  %v4831_v23 = vld [vmem:[#allocation2 + $0x60] ss:$12 sps:$4 sm:$0xff]  }
  0x7e   : > { %888 = vrot.lane.b32.xlu0 %v5474_v42, %s5192_s24  ;;  %890 = vrot.lane.b32.xlu1 %v5476_v43, %s5192_s24 }
  0x7f   : > { %1899 = vmatpush1.bf16.msra.mxu1 %v4831_v23 }
  0x82   : > { %952 = vrot.lane.b32.xlu0 %v5474_v42, %s5191_s17  ;;  %954 = vrot.lane.b32.xlu1 %v5476_v43, %s5191_s17 }
  0x86   : > { %892 = vrot.lane.b32.xlu0 %v5492_v51, %s5192_s24  ;;  %894 = vrot.lane.b32.xlu1 %v5494_v52, %s5192_s24 }
  0x8a   : > { %956 = vrot.lane.b32.xlu0 %v5492_v51, %s5191_s17  ;;  %958 = vrot.lane.b32.xlu1 %v5494_v52, %s5191_s17 }
  0x8e   : > { %896 = vrot.lane.b32.xlu0 %v5504_v59, %s5192_s24  ;;  %898 = vrot.lane.b32.xlu1 %v5511_v61, %s5192_s24 }
  0x92   : > { %960 = vrot.lane.b32.xlu0 %v5504_v59, %s5191_s17  ;;  %962 = vrot.lane.b32.xlu1 %v5511_v61, %s5191_s17 }
  0x96   : > { %900 = vrot.lane.b32.xlu0 %v5522_v7, %s5192_s24  ;;  %902 = vrot.lane.b32.xlu1 %v5528_v9, %s5192_s24 }
  0x9a   : > { %964 = vrot.lane.b32.xlu0 %v5522_v7, %s5191_s17  ;;  %966 = vrot.lane.b32.xlu1 %v5528_v9, %s5191_s17 }
  0x9e   : > { %904 = vrot.lane.b32.xlu0 %v5543_v18, %s5192_s24  ;;  %906 = vrot.lane.b32.xlu1 %v5545_v19, %s5192_s24 }
  0xa2   : > { %968 = vrot.lane.b32.xlu0 %v5543_v18, %s5191_s17  ;;  %970 = vrot.lane.b32.xlu1 %v5545_v19, %s5191_s17 }
  0xa6   : > { %908 = vrot.lane.b32.xlu0 %v5558_v24, %s5192_s24  ;;  %910 = vrot.lane.b32.xlu1 %v5560_v25, %s5192_s24 }
  0xaa   : > { %972 = vrot.lane.b32.xlu0 %v5558_v24, %s5191_s17  ;;  %974 = vrot.lane.b32.xlu1 %v5560_v25, %s5191_s17  ;;  %s6650_s17 = sld [smem:[#allocation34_spill]] }
  0xb0   : > { %s6486_s24 = scalar_lea.hbm %s6650_s17, %s4402_s0 }
  0xe0   : > { %v945_v33 = vpop.permute.xlu1 %944  ;;  %v881_v34 = vpop.permute.xlu0 %880 }
  0xe1   : > { %v928_v35 = vadd.f32 %v881_v34, %v5439_v22 }
  0xe3   : > { %v5571_v36 = vadd.f32 %v945_v33, %v928_v35  ;;  %v4832_v35 = vld [vmem:[#allocation2 + $0x4c] ss:$12 sps:$4 sm:$0xff]  }
  0xe4   : > { %v947_v37 = vpop.permute.xlu1 %946  ;;  %v883_v38 = vpop.permute.xlu0 %882  ;;  %1900 = vmatprep.subr.bf16.mxu1 %v4832_v35 }
  0xe5   : > { %v929_v39 = vadd.f32 %v883_v38, %v5448_v27  ;;  %4937 = vrsqrt.f32 %v5571_v36  ;;  %vm1164_vm0 = vcmp.eq.f32.partialorder %v5571_v36, inf  ;;  %v1167_v57 = vand.u32 2147483648, %v5571_v36 }
  0xe6   : > { %vm1166_vm1 = vcmp.eq.f32.partialorder %v5571_v36, 0.0 }
  0xe7   : > { %v5575_v40 = vadd.f32 %v947_v37, %v929_v39 }
  0xe8   : > { %v885_v41 = vpop.permute.xlu0 %884  ;;  %v887_v44 = vpop.permute.xlu1 %886 }
  0xe9   : > { %v930_v45 = vadd.f32 %v885_v41, %v5455_v31  ;;  %v931_v46 = vadd.f32 %v887_v44, %v5457_v32  ;;  %4939 = vrsqrt.f32 %v5575_v40  ;;  %vm1171_vm2 = vcmp.eq.f32.partialorder %v5575_v40, inf  ;;  %v4834_v44 = vld [vmem:[#allocation2 + $0x48] ss:$12 sps:$4 sm:$0xff]  }
  0xea   : > { %v1174_v6 = vand.u32 2147483648, %v5575_v40  ;;  %vm1173_vm3 = vcmp.eq.f32.partialorder %v5575_v40, 0.0  ;;  %1901 = vmatpush1.bf16.msra.mxu1 %v4834_v44 }
  0xec   : > { %v949_v47 = vpop.permute.xlu0 %948  ;;  %v951_v22 = vpop.permute.xlu1 %950 }
  0xed   : > { %v5580_v48 = vadd.f32 %v949_v47, %v930_v45  ;;  %v5582_v49 = vadd.f32 %v951_v22, %v931_v46  ;;  %v4835_v22 = vld [vmem:[#allocation2 + $0x34] ss:$12 sps:$4 sm:$0xff]  }
  0xee   : > { %1902 = vmatprep.subr.bf16.mxu1 %v4835_v22 }
  0xef   : > { %4941 = vrsqrt.f32 %v5582_v49  ;;  %vm1185_vm4 = vcmp.eq.f32.partialorder %v5582_v49, inf  ;;  %vm1187_vm5 = vcmp.eq.f32.partialorder %v5582_v49, 0.0  ;;  %vm1178_vm6 = vcmp.eq.f32.partialorder %v5580_v48, inf }
  0xf0   : > { %v889_v27 = vpop.permute.xlu0 %888  ;;  %v891_v50 = vpop.permute.xlu1 %890  ;;  %4943 = vrsqrt.f32 %v5580_v48  ;;  %v1181_v34 = vand.u32 2147483648, %v5580_v48  ;;  %vm1180_vm7 = vcmp.eq.f32.partialorder %v5580_v48, 0.0  ;;  %v1276_v15 = vmul.f32 0.01, %v5580_v48 }
  0xf1   : > { %v932_v53 = vadd.f32 %v889_v27, %v5474_v42  ;;  %v933_v31 = vadd.f32 %v891_v50, %v5476_v43 }
  0xf2   : > { %v4938_v54 = vpop.eup %4937 }
  0xf3   : > { %v1163_v32 = vmul.f32 %v4938_v54, %v5571_v36 }
  0xf4   : > { %v953_v55 = vpop.permute.xlu0 %952  ;;  %v955_v56 = vpop.permute.xlu1 %954 }
  0xf5   : > { %v5591_v58 = vadd.f32 %v953_v55, %v932_v53  ;;  %v5593_v60 = vadd.f32 %v955_v56, %v933_v31  ;;  %v1165_v62 = vsel %vm1164_vm0, %v5571_v36, %v1163_v32  ;;  %v4837_v31 = vld [vmem:[#allocation2 + $0x30] ss:$12 sps:$4 sm:$0xff]  }
  0xf6   : > { %v4940_v42 = vpop.eup %4939  ;;  %v1168_v63 = vsel %vm1166_vm1, %v1167_v57, %v1165_v62  ;;  %1903 = vmatpush1.bf16.msra.mxu1 %v4837_v31  ;;  %v4838_v62 = vld [vmem:[#allocation2 + $0x1c] ss:$12 sps:$4 sm:$0xff]  }
  0xf7   : > { %1295 = vperm.xlu0 %4776, %v1168_v63   ;;  %v1170_v43 = vmul.f32 %v4940_v42, %v5575_v40  ;;  %4945 = vrsqrt.f32 %v5593_v60  ;;  %vm1199_vm8 = vcmp.eq.f32.partialorder %v5593_v60, inf  ;;  %vm1201_vm9 = vcmp.eq.f32.partialorder %v5593_v60, 0.0  ;;  %1904 = vmatprep.subr.bf16.mxu1 %v4838_v62 }
  0xf8   : > { %v893_v2 = vpop.permute.xlu0 %892  ;;  %v895_v4 = vpop.permute.xlu1 %894  ;;  %4947 = vrsqrt.f32 %v5591_v58  ;;  %vm1192_vm10 = vcmp.eq.f32.partialorder %v5591_v58, inf  ;;  %v1195_v63 = vand.u32 2147483648, %v5591_v58  ;;  %vm1194_vm11 = vcmp.eq.f32.partialorder %v5591_v58, 0.0 }
  0xf9   : > { %v934_v11 = vadd.f32 %v893_v2, %v5492_v51  ;;  %v935_v12 = vadd.f32 %v895_v4, %v5494_v52  ;;  %v1172_v13 = vsel %vm1171_vm2, %v5575_v40, %v1170_v43  ;;  %v1188_v52 = vand.u32 2147483648, %v5582_v49 }
  0xfa   : > { %v1175_v14 = vsel %vm1173_vm3, %v1174_v6, %v1172_v13  ;;  %v4840_v6 = vld [vmem:[#allocation2 + $0x18] ss:$12 sps:$4 sm:$0xff]  }
  0xfb   : > { %1300 = vperm.xlu1 %4777, %v1175_v14   ;;  %v1274_v14 = vmul.f32 0.01, %v5571_v36  ;;  %1905 = vmatpush1.bf16.msra.mxu1 %v4840_v6  ;;  %v1279_v6 = vmul.f32 0.01, %v5593_v60 }
  0xfc   : > { %v4942_v17 = vpop.eup %4941  ;;  %v957_v20 = vpop.permute.xlu0 %956 }
  0xfd   : > { %v959_v21 = vpop.permute.xlu1 %958  ;;  %v4944_v26 = vpop.eup %4943  ;;  %v5606_v28 = vadd.f32 %v957_v20, %v934_v11  ;;  %v1184_v51 = vmul.f32 %v4942_v17, %v5582_v49  ;;  %v4278_v17 = vcombine.high %v1568_v10, %v1568_v10  ;;  %v4842_v20 = vld [vmem:[#allocation2 + $0x4] ss:$12 sps:$4 sm:$0xff]  }
  0xfe   : > { %v5608_v29 = vadd.f32 %v959_v21, %v935_v12  ;;  %v1177_v30 = vmul.f32 %v4944_v26, %v5580_v48  ;;  %1906 = vmatprep.subr.bf16.mxu1 %v4842_v20 }
  0xff   : > { %v1186_v33 = vsel %vm1185_vm4, %v5582_v49, %v1184_v51  ;;  %4949 = vrsqrt.f32 %v5606_v28  ;;  %vm1206_vm13 = vcmp.eq.f32.partialorder %v5606_v28, inf  ;;  %vm1208_vm14 = vcmp.eq.f32.partialorder %v5606_v28, 0.0 }
 0x100   : > { %v897_v37 = vpop.permute.xlu0 %896  ;;  %v1189_v39 = vsel %vm1187_vm5, %v1188_v52, %v1186_v33  ;;  %v1179_v41 = vsel %vm1178_vm6, %v5580_v48, %v1177_v30  ;;  %4951 = vrsqrt.f32 %v5608_v29  ;;  %v4845_v52 = vld [vmem:[#allocation2] ss:$12 sps:$4 sm:$0xff]   ;;  %vm1213_vm15 = vcmp.eq.f32.partialorder %v5608_v29, inf }
 0x101   : > { %v899_v38 = vpop.permute.xlu1 %898  ;;  %v936_v45 = vadd.f32 %v897_v37, %v5504_v59  ;;  %1310 = vperm.xlu0 %4776, %v1189_v39   ;;  %v1182_v47 = vsel %vm1180_vm7, %v1181_v34, %v1179_v41  ;;  %v1275_v59 = vmul.f32 0.01, %v5575_v40  ;;  %v1209_v37 = vand.u32 2147483648, %v5606_v28  ;;  %1907 = vmatpush1.bf16.msra.mxu1 %v4845_v52 }
 0x102   : > { %v937_v46 = vadd.f32 %v899_v38, %v5511_v61  ;;  %1305 = vperm.xlu1 %4777, %v1182_v47   ;;  %v1202_v61 = vand.u32 2147483648, %v5593_v60  ;;  %v1216_v44 = vand.u32 2147483648, %v5608_v29  ;;  %vm1215_vm0 = vcmp.eq.f32.partialorder %v5608_v29, 0.0 }
 0x103   : > { %v4778_v51 = vpack.i.bf16 %v1275_v59, %v1274_v14  ;;  %v4846_v59 = vld [vmem:[%s6537_s9 + $0x4] ss:$8 sps:$4 sm:$0xff]  }
 0x104   : > { %v4946_v27 = vpop.eup %4945  ;;  %v961_v50 = vpop.permute.xlu0 %960 }
 0x105   : > { %v963_v53 = vpop.permute.xlu1 %962  ;;  %v4948_v54 = vpop.eup %4947  ;;  %v5624_v32 = vadd.f32 %v961_v50, %v936_v45  ;;  %v1198_v56 = vmul.f32 %v4946_v27, %v5593_v60  ;;  %v4277_v45 = vcombine.low %v1568_v10, %v1568_v10  ;;  %v4848_v10 = vld [vmem:[%s6537_s9] ss:$8 sps:$4 sm:$0xff]  }
 0x106   : > { %v5626_v55 = vadd.f32 %v963_v53, %v937_v46  ;;  %v1191_v57 = vmul.f32 %v4948_v54, %v5591_v58  ;;  %v632_v54 = vld [vmem:[%s5665_s22] sm:$0xff] }
 0x107   : > { %v1200_v42 = vsel %vm1199_vm8, %v5593_v60, %v1198_v56  ;;  %4953 = vrsqrt.f32 %v5624_v32  ;;  %v633_v56 = vld [vmem:[%s5665_s22 + $0x8] sm:$0xff]  ;;  %vm1220_vm1 = vcmp.eq.f32.partialorder %v5624_v32, inf  ;;  %vm1222_vm2 = vcmp.eq.f32.partialorder %v5624_v32, 0.0 }
 0x108   : > { %v901_v43 = vpop.permute.xlu0 %900  ;;  %v1203_v2 = vsel %vm1201_vm9, %v1202_v61, %v1200_v42  ;;  %v1193_v4 = vsel %vm1192_vm10, %v5591_v58, %v1191_v57  ;;  %4955 = vrsqrt.f32 %v5626_v55  ;;  %vm1227_vm3 = vcmp.eq.f32.partialorder %v5626_v55, inf }
 0x109   : > { %v903_v1 = vpop.permute.xlu1 %902  ;;  %v938_v11 = vadd.f32 %v901_v43, %v5522_v7  ;;  %1320 = vperm.xlu0 %4776, %v1203_v2   ;;  %v1196_v13 = vsel %vm1194_vm11, %v1195_v63, %v1193_v4  ;;  %v1277_v7 = vmul.f32 0.01, %v5582_v49  ;;  %v1278_v43 = vmul.f32 0.01, %v5591_v58 }
 0x10a   : > { %v939_v12 = vadd.f32 %v903_v1, %v5528_v9  ;;  %1315 = vperm.xlu1 %4777, %v1196_v13   ;;  %v1611_v9 = vsel %vm1609_vm12, 65535, %v6560_v16  ;;  %v5683_v1 = vpack.c.bf16 %v633_v56, %v632_v54  ;;  %v1230_v14 = vand.u32 2147483648, %v5626_v55 }
 0x10b   : > { %v1616_v39 = vand.u32 %v4278_v17, %v1611_v9  ;;  %v4783_v61 = vpack.i.bf16 %v1277_v7, %v1276_v15  ;;  %v1613_v57 = vand.u32 %v4277_v45, %v1611_v9  ;;  %vm1229_vm4 = vcmp.eq.f32.partialorder %v5626_v55, 0.0 }
 0x10c   : > { %v4950_v21 = vpop.eup %4949  ;;  %v965_v23 = vpop.permute.xlu0 %964  ;;  %1925 = vmatmul.mubr.bf16.vlgmr.msra.gmra.mxu1 %v5683_v1  ;;  %v4788_v7 = vpack.i.bf16 %v1279_v6, %v1278_v43  ;;  %v1282_v56 = vmul.f32 0.01, %v5624_v32  ;;  %v5744_v6 = vld [vmem:[%s6531_s3] sm:$0xff] }
 0x10d   : > { %v967_v26 = vpop.permute.xlu1 %966  ;;  %v4952_v30 = vpop.eup %4951  ;;  %v5651_v33 = vadd.f32 %v965_v23, %v938_v11  ;;  %v1205_v35 = vmul.f32 %v4950_v21, %v5606_v28  ;;  %1630 = vmatprep.subr.bf16.mxu0 %v1616_v39  ;;  %v1223_v11 = vand.u32 2147483648, %v5624_v32 }
 0x10e   : > { %v5653_v34 = vadd.f32 %v967_v26, %v939_v12  ;;  %4779 = vperm.xlu1 %4777, %v4778_v51   ;;  %v1212_v38 = vmul.f32 %v4952_v30, %v5608_v29  ;;  %1631 = vmatpush1.bf16.msra.mxu0 %v1613_v57  ;;  %v1283_v57 = vmul.f32 0.01, %v5626_v55 }
 0x10f   : > { %v1207_v41 = vsel %vm1206_vm13, %v5606_v28, %v1205_v35  ;;  %4957 = vrsqrt.f32 %v5651_v33  ;;  %1632 = vmatprep.subr.bf16.mxu0 %v4846_v59  ;;  %v1280_v35 = vmul.f32 0.01, %v5606_v28  ;;  %vm1234_vm5 = vcmp.eq.f32.partialorder %v5651_v33, inf }
 0x110   : > { %v905_v46 = vpop.permute.xlu0 %904  ;;  %v1210_v22 = vsel %vm1208_vm14, %v1209_v37, %v1207_v41  ;;  %v1214_v27 = vsel %vm1213_vm15, %v5608_v29, %v1212_v38  ;;  %4959 = vrsqrt.f32 %v5653_v34  ;;  %vm1236_vm6 = vcmp.eq.f32.partialorder %v5651_v33, 0.0 }
 0x111   : > { %v907_v47 = vpop.permute.xlu1 %906  ;;  %v940_v50 = vadd.f32 %v905_v46, %v5543_v18  ;;  %1325 = vperm.xlu0 %4776, %v1210_v22   ;;  %v1217_v31 = vsel %vm1215_vm0, %v1216_v44, %v1214_v27  ;;  %v1237_v41 = vand.u32 2147483648, %v5651_v33  ;;  %vm1241_vm7 = vcmp.eq.f32.partialorder %v5653_v34, inf }
 0x112   : > { %v941_v53 = vadd.f32 %v907_v47, %v5545_v19  ;;  %1330 = vperm.xlu1 %4777, %v1217_v31   ;;  %1633 = vmatpush1.bf16.msra.mxu0 %v4848_v10  ;;  %v1244_v46 = vand.u32 2147483648, %v5653_v34  ;;  %vm1243_vm8 = vcmp.eq.f32.partialorder %v5653_v34, 0.0  ;;  %v4266_v10 = vld [vmem:[%s6532_s4] ss:$0 sm:$0xff] }
 0x114   : > { %v4954_v62 = vpop.eup %4953  ;;  %v969_v42 = vpop.permute.xlu0 %968 }
 0x115   : > { %v971_v63 = vpop.permute.xlu1 %970  ;;  %v4956_v18 = vpop.eup %4955  ;;  %v5685_v19 = vadd.f32 %v969_v42, %v940_v50  ;;  %4784 = vperm.xlu0 %4776, %v4783_v61   ;;  %v1219_v4 = vmul.f32 %v4954_v62, %v5624_v32 }
 0x116   : > { %v5687_v2 = vadd.f32 %v971_v63, %v941_v53  ;;  %v1226_v12 = vmul.f32 %v4956_v18, %v5626_v55 }
 0x117   : > { %v1221_v13 = vsel %vm1220_vm1, %v5624_v32, %v1219_v4  ;;  %4961 = vrsqrt.f32 %v5685_v19  ;;  %vm1248_vm9 = vcmp.eq.f32.partialorder %v5685_v19, inf  ;;  %v1251_v59 = vand.u32 2147483648, %v5685_v19  ;;  %v4258_v4 = vld [vmem:[%s6530_s2] ss:$0 sm:$0xff] }
 0x118   : > { %v909_v15 = vpop.permute.xlu0 %908  ;;  %v1224_v20 = vsel %vm1222_vm2, %v1223_v11, %v1221_v13  ;;  %v1228_v21 = vsel %vm1227_vm3, %v5626_v55, %v1226_v12  ;;  %4963 = vrsqrt.f32 %v5687_v2  ;;  %vm1250_vm10 = vcmp.eq.f32.partialorder %v5685_v19, 0.0  ;;  %v5752_v11 = vld [vmem:[%s6533_s5] sm:$0xff] }
 0x119   : > { %v911_v17 = vpop.permute.xlu1 %910  ;;  %v942_v23 = vadd.f32 %v909_v15, %v5558_v24  ;;  %1335 = vperm.xlu1 %4777, %v1224_v20   ;;  %v1231_v51 = vsel %vm1229_vm4, %v1230_v14, %v1228_v21  ;;  %vm1255_vm11 = vcmp.eq.f32.partialorder %v5687_v2, inf  ;;  %v1258_v42 = vand.u32 2147483648, %v5687_v2 }
 0x11a   : > { %v943_v26 = vadd.f32 %v911_v17, %v5560_v25  ;;  %1340 = vperm.xlu0 %4776, %v1231_v51   ;;  %v1281_v25 = vmul.f32 0.01, %v5608_v29  ;;  %vm1257_vm12 = vcmp.eq.f32.partialorder %v5687_v2, 0.0  ;;  %v4798_v12 = vpack.i.bf16 %v1283_v57, %v1282_v56  ;;  %v4259_v51 = vld [vmem:[%s6530_s2 + $0x1] ss:$0 sm:$0xff] }
 0x11b   : > { %vm1049_vm13 = vcmp.eq.s32.totalorder %v4258_v4, %v5744_v6  ;;  %v1284_v17 = vmul.f32 0.01, %v5651_v33  ;;  %v1285_v20 = vmul.f32 0.01, %v5653_v34  ;;  %vm1098_vm14 = vcmp.ne.s32.totalorder %v4266_v10, %v5752_v11 }
 0x11c   : > { %v4958_v9 = vpop.eup %4957  ;;  %v973_v52 = vpop.permute.xlu0 %972  ;;  %v4793_v50 = vpack.i.bf16 %v1281_v25, %v1280_v35  ;;  %vm1050_vm3 = vcmp.eq.s32.totalorder %v4259_v51, %v5744_v6 }
 0x11d   : > { %v975_v30 = vpop.permute.xlu1 %974  ;;  %v4960_v37 = vpop.eup %4959  ;;  %v5709_v38 = vadd.f32 %v973_v52, %v942_v23  ;;  %4789 = vperm.xlu1 %4777, %v4788_v7   ;;  %v1233_v24 = vmul.f32 %v4958_v9, %v5651_v33  ;;  %v4267_v52 = vld [vmem:[%s6532_s4 + $0x1] ss:$0 sm:$0xff]  ;;  %v4803_v25 = vpack.i.bf16 %v1285_v20, %v1284_v17 }
 0x11e   : > { %v5711_v39 = vadd.f32 %v975_v30, %v943_v26  ;;  %v1240_v44 = vmul.f32 %v4960_v37, %v5653_v34  ;;  %v1286_v26 = vmul.f32 0.01, %v5685_v19  ;;  %v1287_v37 = vmul.f32 0.01, %v5687_v2 }
 0x11f   : > { %v1235_v45 = vsel %vm1234_vm5, %v5651_v33, %v1233_v24  ;;  %4965 = vrsqrt.f32 %v5709_v38  ;;  %vm1262_vm15 = vcmp.eq.f32.partialorder %v5709_v38, inf  ;;  %v1265_v21 = vand.u32 2147483648, %v5709_v38  ;;  %vm5784_vm5 = vmand %vm1049_vm13, %vm1098_vm14 }
 0x120   : > { %v1238_v47 = vsel %vm1236_vm6, %v1237_v41, %v1235_v45  ;;  %v1242_v22 = vsel %vm1241_vm7, %v5653_v34, %v1240_v44  ;;  %4967 = vrsqrt.f32 %v5711_v39  ;;  %vm1264_vm0 = vcmp.eq.f32.partialorder %v5709_v38, 0.0 }
 0x121   : > { %1345 = vperm.xlu0 %4776, %v1238_v47   ;;  %v1245_v27 = vsel %vm1243_vm8, %v1244_v46, %v1242_v22  ;;  %vm1269_vm1 = vcmp.eq.f32.partialorder %v5711_v39, inf  ;;  %v1272_v9 = vand.u32 2147483648, %v5711_v39  ;;  %vm1271_vm2 = vcmp.eq.f32.partialorder %v5711_v39, 0.0  ;;  %v4260_v22 = vld [vmem:[%s6530_s2 + $0x2] ss:$0 sm:$0xff] }
 0x122   : > { %1350 = vperm.xlu1 %4777, %v1245_v27   ;;  %vm1099_vm4 = vcmp.ne.s32.totalorder %v4267_v52, %v5752_v11  ;;  %v1288_v41 = vmul.f32 0.01, %v5709_v38  ;;  %v1289_v44 = vmul.f32 0.01, %v5711_v39  ;;  %vm1114_vm6 = vcmp.le.f32.partialorder %v5571_v36, 25.0 }
 0x123   : > { %v4808_v46 = vpack.i.bf16 %v1287_v37, %v1286_v26  ;;  %vm5789_vm7 = vmand %vm1050_vm3, %vm1099_vm4  ;;  %v4268_v27 = vld [vmem:[%s6532_s4 + $0x2] ss:$0 sm:$0xff] }
 0x124   : > { %v4962_v53 = vpop.eup %4961  ;;  %vm1146_vm8 = vmand %vm1114_vm6, %vm5784_vm5  ;;  %v4813_v36 = vpack.i.bf16 %v1289_v44, %v1288_v41  ;;  %vm1124_vm6 = vcmp.le.f32.partialorder %v5651_v33, 25.0  ;;  %v4263_v33 = vld [vmem:[%s6530_s2 + $0x5] ss:$0 sm:$0xff] }
 0x125   : > { %v4964_v31 = vpop.eup %4963  ;;  %4794 = vperm.xlu0 %4776, %v4793_v50   ;;  %v1247_v54 = vmul.f32 %v4962_v53, %v5685_v19  ;;  %v2419_v50 = vsel %vm1146_vm8, 1, %v6560_v16  ;;  %v4261_v53 = vld [vmem:[%s6530_s2 + $0x3] ss:$0 sm:$0xff] }
 0x126   : > { %v1254_v61 = vmul.f32 %v4964_v31, %v5687_v2 }
 0x127   : > { %v1249_v62 = vsel %vm1248_vm9, %v5685_v19, %v1247_v54  ;;  %vm1115_vm9 = vcmp.le.f32.partialorder %v5575_v40, 25.0  ;;  %v4269_v40 = vld [vmem:[%s6532_s4 + $0x3] ss:$0 sm:$0xff] }
 0x128   : > { %v1252_v63 = vsel %vm1250_vm10, %v1251_v59, %v1249_v62  ;;  %v1256_v43 = vsel %vm1255_vm11, %v5687_v2, %v1254_v61  ;;  %vm1122_vm10 = vcmp.le.f32.partialorder %v5624_v32, 25.0  ;;  %vm1051_vm11 = vcmp.eq.s32.totalorder %v4260_v22, %v5744_v6  ;;  %vm1147_vm13 = vmand %vm1115_vm9, %vm5789_vm7 }
 0x129   : > { %1355 = vperm.xlu1 %4777, %v1252_v63   ;;  %v1259_v18 = vsel %vm1257_vm12, %v1258_v42, %v1256_v43  ;;  %vm1100_vm12 = vcmp.ne.s32.totalorder %v4268_v27, %v5752_v11  ;;  %vm1154_vm14 = vmand %vm1122_vm10, %vm5784_vm5  ;;  %v2420_v31 = vsel %vm1147_vm13, 1, %v6560_v16  ;;  %vm1101_vm3 = vcmp.ne.s32.totalorder %v4269_v40, %v5752_v11 }
 0x12a   : > { %1360 = vperm.xlu0 %4776, %v1259_v18   ;;  %v2427_v54 = vsel %vm1154_vm14, 1, %v6560_v16  ;;  %vm1125_vm13 = vcmp.le.f32.partialorder %v5653_v34, 25.0  ;;  %v4264_v34 = vld [vmem:[%s6530_s2 + $0x6] ss:$0 sm:$0xff] }
 0x12c   : > { %v4966_v13 = vpop.eup %4965 }
 0x12d   : > { %v4968_v14 = vpop.eup %4967  ;;  %4799 = vperm.xlu1 %4777, %v4798_v12   ;;  %v1261_v15 = vmul.f32 %v4966_v13, %v5709_v38  ;;  %v5926_v13 = vld [vmem:[%s6534_s6] ss:$0 sm:$0xff] }
 0x12e   : > { %v1268_v23 = vmul.f32 %v4968_v14, %v5711_v39 }
 0x12f   : > { %v1263_v7 = vsel %vm1262_vm15, %v5709_v38, %v1261_v15  ;;  %vm1123_vm15 = vcmp.le.f32.partialorder %v5626_v55, 25.0  ;;  %v4262_v55 = vld [vmem:[%s6530_s2 + $0x4] ss:$0 sm:$0xff] }
 0x130   : > { %v1266_v30 = vsel %vm1264_vm0, %v1265_v21, %v1263_v7  ;;  %v1270_v35 = vsel %vm1269_vm1, %v5711_v39, %v1268_v23  ;;  %vm5817_vm0 = vmand %vm1051_vm11, %vm1100_vm12  ;;  %vm1116_vm1 = vcmp.le.f32.partialorder %v5580_v48, 25.0  ;;  %v4270_v48 = vld [vmem:[%s6532_s4 + $0x4] ss:$0 sm:$0xff]  ;;  %vm1053_vm9 = vcmp.eq.s32.totalorder %v4262_v55, %v5744_v6 }
 0x131   : > { %1365 = vperm.xlu0 %4776, %v1266_v30   ;;  %v1273_v24 = vsel %vm1271_vm2, %v1272_v9, %v1270_v35  ;;  %vm1052_vm2 = vcmp.eq.s32.totalorder %v4261_v53, %v5744_v6  ;;  %vm1155_vm4 = vmand %vm1123_vm15, %vm5789_vm7  ;;  %vm1117_vm7 = vcmp.le.f32.partialorder %v5582_v49, 25.0  ;;  %vm1102_vm10 = vcmp.ne.s32.totalorder %v4270_v48, %v5752_v11  ;;  %v4271_v49 = vld [vmem:[%s6532_s4 + $0x5] ss:$0 sm:$0xff] }
 0x132   : > { %1370 = vperm.xlu1 %4777, %v1273_v24   ;;  %vm1148_vm5 = vmand %vm1116_vm1, %vm5817_vm0  ;;  %v2428_v59 = vsel %vm1155_vm4, 1, %v6560_v16  ;;  %vm1118_vm15 = vcmp.le.f32.partialorder %v5591_v58, 25.0  ;;  %vm1103_vm1 = vcmp.ne.s32.totalorder %v4271_v49, %v5752_v11  ;;  %v4272_v58 = vld [vmem:[%s6532_s4 + $0x6] ss:$0 sm:$0xff]  ;;  %vm1126_vm4 = vcmp.le.f32.partialorder %v5685_v19, 25.0 }
 0x133   : > { %vm5837_vm8 = vmand %vm1052_vm2, %vm1101_vm3  ;;  %v2421_v61 = vsel %vm1148_vm5, 1, %v6560_v16  ;;  %v4265_v19 = vld [vmem:[%s6530_s2 + $0x7] ss:$0 sm:$0xff] }
 0x134   : > { %vm1156_vm11 = vmand %vm1124_vm6, %vm5817_vm0  ;;  %vm1054_vm0 = vcmp.eq.s32.totalorder %v4263_v33, %v5744_v6  ;;  %vm1119_vm6 = vcmp.le.f32.partialorder %v5593_v60, 25.0  ;;  %v4273_v60 = vld [vmem:[%s6532_s4 + $0x7] ss:$0 sm:$0xff] }
 0x135   : > { %4804 = vperm.xlu0 %4776, %v4803_v25   ;;  %vm1149_vm12 = vmand %vm1117_vm7, %vm5837_vm8  ;;  %v2429_v62 = vsel %vm1156_vm11, 1, %v6560_v16  ;;  %vm1104_vm7 = vcmp.ne.s32.totalorder %v4272_v58, %v5752_v11  ;;  %vm1127_vm11 = vcmp.le.f32.partialorder %v5687_v2, 25.0  ;;  %v4850_v58 = vld [vmem:[#allocation5 + $0x30] sm:$0xff]  }
 0x136   : > { %4809 = vperm.xlu1 %4777, %v4808_v46   ;;  %vm5857_vm14 = vmand %vm1053_vm9, %vm1102_vm10  ;;  %v2422_v42 = vsel %vm1149_vm12, 1, %v6560_v16 }
 0x137   : > { %vm1157_vm2 = vmand %vm1125_vm13, %vm5837_vm8  ;;  %vm1055_vm8 = vcmp.eq.s32.totalorder %v4264_v34, %v5744_v6  ;;  %vm1120_vm13 = vcmp.le.f32.partialorder %v5606_v28, 25.0 }
 0x138   : > { %vm1150_vm3 = vmand %vm1118_vm15, %vm5857_vm14  ;;  %v2430_v43 = vsel %vm1157_vm2, 1, %v6560_v16  ;;  %vm1105_vm15 = vcmp.ne.s32.totalorder %v4273_v60, %v5752_v11  ;;  %vm1128_vm2 = vcmp.le.f32.partialorder %v5709_v38, 25.0  ;;  %v5919_v11 = vld [vmem:[#allocation5 + $0x38] sm:$0xff]  }
 0x139   : > { %4814 = vperm.xlu0 %4776, %v4813_v36   ;;  %vm5877_vm5 = vmand %vm1054_vm0, %vm1103_vm1  ;;  %v2423_v18 = vsel %vm1150_vm3, 1, %v6560_v16  ;;  %4512 = vmatprep.subr.bf16.mxu0 %v5919_v11  ;;  %v5935_v36 = vand.u32 127, %v642_v0 }
 0x13a   : > { %2436 = vperm.xlu1 %4777, %v2419_v50   ;;  %vm1158_vm9 = vmand %vm1126_vm4, %vm5857_vm14  ;;  %vm1056_vm14 = vcmp.eq.s32.totalorder %v4265_v19, %v5744_v6  ;;  %vm1121_vm4 = vcmp.le.f32.partialorder %v5608_v29, 25.0 }
 0x13b   : > { %vm1151_vm10 = vmand %vm1119_vm6, %vm5877_vm5  ;;  %v2431_v10 = vsel %vm1158_vm9, 1, %v6560_v16  ;;  %vm1459_vm9 = vcmp.lt.s32.totalorder %v5935_v36, 16 }
 0x13c   : > { %vm5897_vm12 = vmand %vm1055_vm8, %vm1104_vm7  ;;  %v2424_v12 = vsel %vm1151_vm10, 1, %v6560_v16  ;;  %vm1584_vm10 = vcmask 138240  }
 0x13d   : > { %2439 = vperm.xlu0 %4776, %v2420_v31   ;;  %vm1159_vm0 = vmand %vm1127_vm11, %vm5877_vm5  ;;  %vm1129_vm5 = vcmp.le.f32.partialorder %v5711_v39, 25.0  ;;  %vm5194_vm11 = vmmov 0  }
 0x13e   : > { %2460 = vperm.xlu1 %4777, %v2427_v54   ;;  %vm1152_vm1 = vmand %vm1120_vm13, %vm5897_vm12  ;;  %v2432_v28 = vsel %vm1159_vm0, 1, %v6560_v16 }
 0x13f   : > { %vm1113_vm3 = vmand %vm1056_vm14, %vm1105_vm15  ;;  %v2425_v2 = vsel %vm1152_vm1, 1, %v6560_v16 }
 0x140   : > { %vm1160_vm6 = vmand %vm1128_vm2, %vm5897_vm12 }
 0x141   : > { %2463 = vperm.xlu0 %4776, %v2428_v59   ;;  %vm1153_vm8 = vmand %vm1121_vm4, %vm1113_vm3  ;;  %v2433_v6 = vsel %vm1160_vm6, 1, %v6560_v16 }
 0x142   : > { %2442 = vperm.xlu1 %4777, %v2421_v61   ;;  %v2426_v38 = vsel %vm1153_vm8, 1, %v6560_v16  ;;  %vm1161_vm7 = vmand %vm1129_vm5, %vm1113_vm3 }
 0x143   : > { %v2434_v29 = vsel %vm1161_vm7, 1, %v6560_v16 }
 0x145   : > { %2466 = vperm.xlu0 %4776, %v2429_v62  }
 0x146   : > { %2445 = vperm.xlu1 %4777, %v2422_v42  }
 0x149   : > { %2469 = vperm.xlu0 %4776, %v2430_v43  }
 0x14a   : > { %2448 = vperm.xlu1 %4777, %v2423_v18  }
 0x14d   : > { %2472 = vperm.xlu0 %4776, %v2431_v10  }
 0x14e   : > { %2451 = vperm.xlu1 %4777, %v2424_v12  }
 0x151   : > { %2475 = vperm.xlu0 %4776, %v2432_v28   ;;  %v4851_v28 = vld [vmem:[#allocation5 + $0x28] sm:$0xff]  }
 0x152   : > { %2454 = vperm.xlu1 %4777, %v2425_v2  }
 0x155   : > { %2478 = vperm.xlu0 %4776, %v2433_v6  }
 0x156   : > { %2457 = vperm.xlu1 %4777, %v2426_v38  }
 0x159   : > { %2481 = vperm.xlu0 %4776, %v2434_v29  }
 0x172   : > { %v1296_v39 = vpop.permute.xlu0 %1295 }
 0x173   : > { %v1379_v14 = vsub.f32 %v1296_v39, %v5926_v13 }
 0x175   : > { %v1395_v15 = vmul.f32 %v1379_v14, %v1379_v14 }
 0x176   : > { %v1301_v17 = vpop.permute.xlu1 %1300 }
 0x177   : > { %v1411_v20 = vmul.f32 -4.4999995, %v1395_v15  ;;  %v1380_v21 = vsub.f32 %v1301_v17, %v5926_v13 }
 0x179   : > { %v1396_v23 = vmul.f32 %v1380_v21, %v1380_v21  ;;  %v1427_v26 = vmul.f32 1.442695, %v1411_v20 }
 0x17b   : > { %v1412_v51 = vmul.f32 -4.4999995, %v1396_v23  ;;  %4969 = vpow2.f32 %v1427_v26 }
 0x17c   : > { %v1311_v7 = vpop.permute.xlu0 %1310 }
 0x17d   : > { %v1429_v9 = vmul.f32 1.442695, %v1412_v51  ;;  %v1382_v52 = vsub.f32 %v1311_v7, %v5926_v13  ;;  %v1306_v30 = vpop.permute.xlu1 %1305 }
 0x17e   : > { %v1381_v35 = vsub.f32 %v1306_v30, %v5926_v13 }
 0x17f   : > { %4971 = vpow2.f32 %v1429_v9  ;;  %v1398_v37 = vmul.f32 %v1382_v52, %v1382_v52 }
 0x180   : > { %v1397_v24 = vmul.f32 %v1381_v35, %v1381_v35 }
 0x181   : > { %v1414_v25 = vmul.f32 -4.4999995, %v1398_v37 }
 0x182   : > { %v1413_v41 = vmul.f32 -4.4999995, %v1397_v24 }
 0x183   : > { %v1433_v44 = vmul.f32 1.442695, %v1414_v25 }
 0x184   : > { %v1431_v45 = vmul.f32 1.442695, %v1413_v41  ;;  %v1321_v46 = vpop.permute.xlu0 %1320 }
 0x185   : > { %4973 = vpow2.f32 %v1433_v44  ;;  %v1384_v47 = vsub.f32 %v1321_v46, %v5926_v13  ;;  %v1316_v22 = vpop.permute.xlu1 %1315 }
 0x186   : > { %4975 = vpow2.f32 %v1431_v45  ;;  %v1383_v27 = vsub.f32 %v1316_v22, %v5926_v13 }
 0x187   : > { %v1400_v50 = vmul.f32 %v1384_v47, %v1384_v47 }
 0x188   : > { %v1399_v53 = vmul.f32 %v1383_v27, %v1383_v27  ;;  %v4970_v55 = vpop.eup %4969 }
 0x189   : > { %v1416_v40 = vmul.f32 -4.4999995, %v1400_v50  ;;  %v4780_v32 = vpop.permute.xlu1 %4779 }
 0x18a   : > { %v1415_v31 = vmul.f32 -4.4999995, %v1399_v53  ;;  %v4781_v54 = vunpack.i.l.bf16 %v4780_v32  ;;  %v4782_v56 = vunpack.i.h.bf16 %v4780_v32 }
 0x18b   : > { %v1437_v48 = vmul.f32 1.442695, %v1416_v40 }
 0x18c   : > { %v4972_v59 = vpop.eup %4971  ;;  %v1435_v61 = vmul.f32 1.442695, %v1415_v31  ;;  %v1326_v33 = vpop.permute.xlu0 %1325  ;;  %v1542_v49 = vsel %vm1459_vm9, %v4970_v55, %v4781_v54 }
 0x18d   : > { %4977 = vpow2.f32 %v1437_v48  ;;  %v1543_v0 = vsel %vm1459_vm9, %v4972_v59, %v4782_v56  ;;  %v1385_v57 = vsub.f32 %v1326_v33, %v5926_v13  ;;  %v1331_v62 = vpop.permute.xlu1 %1330 }
 0x18e   : > { %4979 = vpow2.f32 %v1435_v61  ;;  %v1558_v42 = vpack.c.bf16 %v1543_v0, %v1542_v49  ;;  %v1386_v34 = vsub.f32 %v1331_v62, %v5926_v13 }
 0x18f   : > { %v1401_v63 = vmul.f32 %v1385_v57, %v1385_v57 }
 0x190   : > { %v1402_v43 = vmul.f32 %v1386_v34, %v1386_v34  ;;  %v4785_v18 = vpop.permute.xlu0 %4784  ;;  %4279 = vmatmul.mubr.msk.bf16.vlgmr.msra.gmra.mxu0 %vm1584_vm10, %v1558_v42 }
 0x191   : > { %v1417_v19 = vmul.f32 -4.4999995, %v1401_v63  ;;  %v4787_v60 = vunpack.i.h.bf16 %v4785_v18  ;;  %v4786_v4 = vunpack.i.l.bf16 %v4785_v18  ;;  %1660 = vmatprep.mubr.bf16.mxu0 %v6560_v16  ;;  %4513 = vmatpush3.bf16.msra.mxu0 %v5919_v11 }
 0x192   : > { %v4974_v10 = vpop.eup %4973  ;;  %v1418_v12 = vmul.f32 -4.4999995, %v1402_v43  ;;  %4514 = vmatprep.subr.bf16.mxu0 %v4850_v58 }
 0x193   : > { %v4976_v2 = vpop.eup %4975  ;;  %v1439_v6 = vmul.f32 1.442695, %v1417_v19  ;;  %v1545_v38 = vsel %vm1459_vm9, %v4974_v10, %v4787_v60 }
 0x194   : > { %v1441_v29 = vmul.f32 1.442695, %v1418_v12  ;;  %v1544_v39 = vsel %vm1459_vm9, %v4976_v2, %v4786_v4  ;;  %v1336_v14 = vpop.permute.xlu1 %1335 }
 0x195   : > { %4981 = vpow2.f32 %v1439_v6  ;;  %v1341_v15 = vpop.permute.xlu0 %1340  ;;  %v1387_v17 = vsub.f32 %v1336_v14, %v5926_v13  ;;  %4515 = vmatpush3.bf16.msra.mxu0 %v4850_v58  ;;  %v1559_v11 = vpack.c.bf16 %v1545_v38, %v1544_v39 }
 0x196   : > { %4983 = vpow2.f32 %v1441_v29  ;;  %v1388_v20 = vsub.f32 %v1341_v15, %v5926_v13  ;;  %4516 = vmatprep.subr.bf16.mxu0 %v4851_v28 }
 0x197   : > { %v1403_v21 = vmul.f32 %v1387_v17, %v1387_v17 }
 0x198   : > { %v1404_v23 = vmul.f32 %v1388_v20, %v1388_v20  ;;  %v4790_v26 = vpop.permute.xlu1 %4789  ;;  %4280 = vmatmul.mubr.msk.bf16.gmra.mxu0 %vm1584_vm10, %v1559_v11 }
 0x199   : > { %v1419_v51 = vmul.f32 -4.4999995, %v1403_v21  ;;  %v4792_v7 = vunpack.i.h.bf16 %v4790_v26  ;;  %v4791_v9 = vunpack.i.l.bf16 %v4790_v26  ;;  %1670 = vmatprep.mubr.bf16.mxu0 %v6560_v16  ;;  %4517 = vmatpush3.bf16.msra.mxu0 %v4851_v28 }
 0x19a   : > { %v4978_v52 = vpop.eup %4977  ;;  %v1420_v30 = vmul.f32 -4.4999995, %v1404_v23 }
 0x19b   : > { %v4980_v35 = vpop.eup %4979  ;;  %v1443_v37 = vmul.f32 1.442695, %v1419_v51  ;;  %v1547_v24 = vsel %vm1459_vm9, %v4978_v52, %v4792_v7 }
 0x19c   : > { %v1445_v25 = vmul.f32 1.442695, %v1420_v30  ;;  %v1546_v41 = vsel %vm1459_vm9, %v4980_v35, %v4791_v9  ;;  %v1346_v44 = vpop.permute.xlu0 %1345 }
 0x19d   : > { %4985 = vpow2.f32 %v1443_v37  ;;  %v1389_v45 = vsub.f32 %v1346_v44, %v5926_v13  ;;  %v1351_v46 = vpop.permute.xlu1 %1350  ;;  %v1560_v47 = vpack.c.bf16 %v1547_v24, %v1546_v41 }
 0x19e   : > { %4987 = vpow2.f32 %v1445_v25  ;;  %v1390_v22 = vsub.f32 %v1351_v46, %v5926_v13 }
 0x19f   : > { %v1405_v27 = vmul.f32 %v1389_v45, %v1389_v45 }
 0x1a0   : > { %v1406_v50 = vmul.f32 %v1390_v22, %v1390_v22  ;;  %v4795_v53 = vpop.permute.xlu0 %4794  ;;  %4281 = vmatmul.mubr.msk.bf16.gmra.mxu0 %vm1584_vm10, %v1560_v47 }
 0x1a1   : > { %v1421_v40 = vmul.f32 -4.4999995, %v1405_v27  ;;  %v4797_v32 = vunpack.i.h.bf16 %v4795_v53  ;;  %v4796_v31 = vunpack.i.l.bf16 %v4795_v53  ;;  %1680 = vmatprep.mubr.bf16.mxu0 %v6560_v16 }
 0x1a2   : > { %v4982_v54 = vpop.eup %4981  ;;  %v1422_v55 = vmul.f32 -4.4999995, %v1406_v50 }
 0x1a3   : > { %v4984_v48 = vpop.eup %4983  ;;  %v1447_v56 = vmul.f32 1.442695, %v1421_v40  ;;  %v1548_v59 = vsel %vm1459_vm9, %v4982_v54, %v4796_v31 }
 0x1a4   : > { %v1449_v61 = vmul.f32 1.442695, %v1422_v55  ;;  %v1549_v33 = vsel %vm1459_vm9, %v4984_v48, %v4797_v32  ;;  %v1356_v0 = vpop.permute.xlu1 %1355  ;;  %v4852_v48 = vld [vmem:[#allocation5 + $0x20] sm:$0xff]  }
 0x1a5   : > { %4989 = vpow2.f32 %v1447_v56  ;;  %v1361_v49 = vpop.permute.xlu0 %1360  ;;  %v1391_v57 = vsub.f32 %v1356_v0, %v5926_v13  ;;  %v1561_v62 = vpack.c.bf16 %v1549_v33, %v1548_v59  ;;  %4518 = vmatprep.subr.bf16.mxu0 %v4852_v48  ;;  %v4853_v56 = vld [vmem:[#allocation5 + $0x18] sm:$0xff]   ;;  %v4854_v59 = vld [vmem:[#allocation5 + $0x10] sm:$0xff]   ;;  %v4856_v33 = vld [vmem:[#allocation5] sm:$0xff]  }
 0x1a6   : > { %4991 = vpow2.f32 %v1449_v61  ;;  %v1392_v42 = vsub.f32 %v1361_v49, %v5926_v13  ;;  %4519 = vmatpush3.bf16.msra.mxu0 %v4852_v48  ;;  %v4855_v61 = vld [vmem:[#allocation5 + $0x8] sm:$0xff]  }
 0x1a7   : > { %v1407_v34 = vmul.f32 %v1391_v57, %v1391_v57  ;;  %4520 = vmatprep.subr.bf16.mxu0 %v4853_v56 }
 0x1a8   : > { %v1408_v58 = vmul.f32 %v1392_v42, %v1392_v42  ;;  %v4800_v63 = vpop.permute.xlu1 %4799  ;;  %4282 = vmatmul.mubr.msk.bf16.gmra.mxu0 %vm1584_vm10, %v1561_v62  ;;  %v6001_v62 = vld [vmem:[%s6538_s10] ss:$0 sm:$0xff] }
 0x1a9   : > { %v1423_v43 = vmul.f32 -4.4999995, %v1407_v34  ;;  %v4802_v18 = vunpack.i.h.bf16 %v4800_v63  ;;  %v4801_v19 = vunpack.i.l.bf16 %v4800_v63  ;;  %1690 = vmatprep.mubr.bf16.mxu0 %v6560_v16 }
 0x1aa   : > { %v4986_v60 = vpop.eup %4985  ;;  %v1424_v4 = vmul.f32 -4.4999995, %v1408_v58  ;;  %4521 = vmatpush3.bf16.msra.mxu0 %v4853_v56 }
 0x1ab   : > { %v4988_v10 = vpop.eup %4987  ;;  %v1451_v12 = vmul.f32 1.442695, %v1423_v43  ;;  %v1550_v28 = vsel %vm1459_vm9, %v4986_v60, %v4801_v19  ;;  %4522 = vmatprep.subr.bf16.mxu0 %v4854_v59 }
 0x1ac   : > { %v1453_v2 = vmul.f32 1.442695, %v1424_v4  ;;  %v1551_v6 = vsel %vm1459_vm9, %v4988_v10, %v4802_v18  ;;  %v1366_v38 = vpop.permute.xlu0 %1365 }
 0x1ad   : > { %4993 = vpow2.f32 %v1451_v12  ;;  %v1393_v29 = vsub.f32 %v1366_v38, %v5926_v13  ;;  %v1371_v39 = vpop.permute.xlu1 %1370  ;;  %v1562_v14 = vpack.c.bf16 %v1551_v6, %v1550_v28 }
 0x1ae   : > { %4995 = vpow2.f32 %v1453_v2  ;;  %v1394_v15 = vsub.f32 %v1371_v39, %v5926_v13  ;;  %4523 = vmatpush3.bf16.msra.mxu0 %v4854_v59 }
 0x1af   : > { %v1409_v17 = vmul.f32 %v1393_v29, %v1393_v29  ;;  %4524 = vmatprep.subr.bf16.mxu0 %v4855_v61 }
 0x1b0   : > { %v1410_v11 = vmul.f32 %v1394_v15, %v1394_v15  ;;  %v4805_v20 = vpop.permute.xlu0 %4804  ;;  %4283 = vmatmul.mubr.msk.bf16.gmra.mxu0 %vm1584_vm10, %v1562_v14 }
 0x1b1   : > { %v1425_v21 = vmul.f32 -4.4999995, %v1409_v17  ;;  %v4807_v23 = vunpack.i.h.bf16 %v4805_v20  ;;  %v4806_v26 = vunpack.i.l.bf16 %v4805_v20  ;;  %1700 = vmatprep.mubr.bf16.mxu0 %v6560_v16  ;;  %v4810_v24 = vpop.permute.xlu1 %4809 }
 0x1b2   : > { %v4990_v51 = vpop.eup %4989  ;;  %v1426_v7 = vmul.f32 -4.4999995, %v1410_v11  ;;  %v4811_v25 = vunpack.i.l.bf16 %v4810_v24  ;;  %v4812_v44 = vunpack.i.h.bf16 %v4810_v24  ;;  %4525 = vmatpush3.bf16.msra.mxu0 %v4855_v61 }
 0x1b3   : > { %v4992_v9 = vpop.eup %4991  ;;  %v1455_v52 = vmul.f32 1.442695, %v1425_v21  ;;  %v1552_v30 = vsel %vm1459_vm9, %v4990_v51, %v4806_v26  ;;  %4526 = vmatprep.subr.bf16.mxu0 %v4856_v33 }
 0x1b4   : > { %v1457_v35 = vmul.f32 1.442695, %v1426_v7  ;;  %v1553_v13 = vsel %vm1459_vm9, %v4992_v9, %v4807_v23  ;;  %v4815_v27 = vpop.permute.xlu0 %4814 }
 0x1b5   : > { %4997 = vpow2.f32 %v1455_v52  ;;  %v1563_v37 = vpack.c.bf16 %v1553_v13, %v1552_v30  ;;  %v4816_v50 = vunpack.i.l.bf16 %v4815_v27  ;;  %v4817_v40 = vunpack.i.h.bf16 %v4815_v27 }
 0x1b6   : > { %4999 = vpow2.f32 %v1457_v35  ;;  %4527 = vmatpush3.bf16.msra.mxu0 %v4856_v33 }
 0x1b8   : > { %4284 = vmatmul.mubr.msk.bf16.gmra.mxu0 %vm1584_vm10, %v1563_v37 }
 0x1b9   : > { %1710 = vmatprep.mubr.bf16.mxu0 %v6560_v16 }
 0x1ba   : > { %v4994_v41 = vpop.eup %4993 }
 0x1bb   : > { %v4996_v45 = vpop.eup %4995  ;;  %v1554_v46 = vsel %vm1459_vm9, %v4994_v41, %v4811_v25 }
 0x1bc   : > { %v1555_v47 = vsel %vm1459_vm9, %v4996_v45, %v4812_v44 }
 0x1bd   : > { %v1564_v22 = vpack.c.bf16 %v1555_v47, %v1554_v46 }
 0x1c0   : > { %4285 = vmatmul.mubr.msk.bf16.gmra.mxu0 %vm1584_vm10, %v1564_v22 }
 0x1c1   : > { %1720 = vmatprep.mubr.bf16.mxu0 %v6560_v16 }
 0x1c2   : > { %v4998_v53 = vpop.eup %4997 }
 0x1c3   : > { %v5000_v32 = vpop.eup %4999  ;;  %v1556_v31 = vsel %vm1459_vm9, %v4998_v53, %v4816_v50 }
 0x1c4   : > { %v1557_v54 = vsel %vm1459_vm9, %v5000_v32, %v4817_v40 }
 0x1c5   : > { %v1565_v55 = vpack.c.bf16 %v1557_v54, %v1556_v31 }
 0x1c8   : > { %4286 = vmatmul.mubr.msk.bf16.gmra.mxu0 %vm1584_vm10, %v1565_v55 }
 0x1cc   : > { %v1926_v36 = vpop.f32.mrf.mxu1 }
 0x1cd   : > { %v2008_v0 = vrot.slane %v1926_v36, %v5415_v5  ;;  %v2001_v43 = vcombine.high %v1926_v36, %v1926_v36 }
 0x1ce   : > { %v6009_v12 = vpop.f32.mrf.mxu1 }
 0x1cf   : > { %v2016_v49 = vcombine.high %v2008_v0, %v2008_v0  ;;  %v2024_v57 = vrot.slane %v2008_v0, %v5415_v5  ;;  %v2015_v2 = vrot.slane %v2001_v43, %v5415_v5 }
 0x1d0   : > { %v1930_v48 = vpop.f32.mrf.mxu1 }
 0x1d1   : > { %v2038_v42 = vrot.slane %v2016_v49, %v5415_v5  ;;  %v2102_v34 = vrot.slane %v2024_v57, %v5427_v8  ;;  %v2046_v19 = vcombine.high %v2024_v57, %v2024_v57  ;;  %v2017_v20 = vcombine.high %v2015_v2, %v2015_v2 }
 0x1d2   : > { %v2031_v21 = vrot.slane %v2015_v2, %v5415_v5  ;;  %v2057_v36 = vrot.slane %v1930_v48, %v5415_v5 }
 0x1d3   : > { %v2106_v4 = vrot.slane %v2038_v42, %v5427_v8  ;;  %v2110_v29 = vrot.slane %v2046_v19, %v5427_v8  ;;  %v2048_v39 = vcombine.high %v2038_v42, %v2038_v42  ;;  %v2045_v37 = vrot.slane %v2017_v20, %v5415_v5 }
 0x1d4   : > { %v2118_v41 = vrot.slane %v2031_v21, %v5427_v8  ;;  %v2047_v40 = vcombine.high %v2031_v21, %v2031_v21  ;;  %v2073_v19 = vrot.slane %v2057_v36, %v5415_v5 }
 0x1d5   : > { %v2114_v51 = vrot.slane %v2048_v39, %v5427_v8  ;;  %v2122_v22 = vrot.slane %v2045_v37, %v5427_v8  ;;  %v2049_v56 = vcombine.high %v2045_v37, %v2045_v37 }
 0x1d6   : > { %v2126_v33 = vrot.slane %v2047_v40, %v5427_v8  ;;  %v2134_v39 = vrot.slane %v2073_v19, %v5427_v8 }
 0x250   : > { %v1652_v58 = vpop.f32.mrf.mxu0 }
 0x251   : > { %v1983_v63 = vadd.f32 %v6001_v62, %v1652_v58 }
 0x252   : > { %v6006_v18 = vpop.f32.mrf.mxu0 }
 0x253   : > { %v2179_v60 = vadd.f32 %v2102_v34, %v1983_v63  ;;  %v2130_v34 = vrot.slane %v2049_v56, %v5427_v8 }
 0x254   : > { %v1656_v10 = vpop.f32.mrf.mxu0 }
 0x255   : > { %v1984_v28 = vadd.f32 %v6001_v62, %v1656_v10  ;;  %v2195_v14 = vadd.f32 %v2179_v60, %v6009_v12 }
 0x256   : > { %v6013_v6 = vpop.f32.mrf.mxu0 }
 0x257   : > { %v2180_v38 = vadd.f32 %v2106_v4, %v1984_v28  ;;  %v2211_v7 = vmax.f32 %v2195_v14, 0.0  ;;  %v2065_v4 = vcombine.high %v2057_v36, %v2057_v36 }
 0x258   : > { %v1662_v15 = vpop.f32.mrf.mxu0 }
 0x259   : > { %v1985_v17 = vadd.f32 %v6001_v62, %v1662_v15  ;;  %v2196_v11 = vadd.f32 %v2180_v38, %v6009_v12  ;;  %v2087_v15 = vrot.slane %v2065_v4, %v5415_v5 }
 0x25a   : > { %v6020_v23 = vpop.f32.mrf.mxu0 }
 0x25b   : > { %v2181_v26 = vadd.f32 %v2110_v29, %v1985_v17  ;;  %v2212_v9 = vmax.f32 %v2196_v11, 0.0 }
 0x25c   : > { %v1666_v52 = vpop.f32.mrf.mxu0 }
 0x25d   : > { %v1986_v30 = vadd.f32 %v6001_v62, %v1666_v52  ;;  %v2227_v35 = vpack.c.bf16 %v2212_v9, %v2211_v7  ;;  %v2197_v24 = vadd.f32 %v2181_v26, %v6009_v12  ;;  %v2050_v7 = vcombine.high %v1930_v48, %v1930_v48 }
 0x25e   : > { %v6024_v13 = vpop.f32.mrf.mxu0  ;;  %v2095_v52 = vcombine.high %v2073_v19, %v2073_v19 }
 0x25f   : > { %v2182_v25 = vadd.f32 %v2114_v51, %v1986_v30  ;;  %4528 = vmatprep.mubr.bf16.mxu0 %v2227_v35  ;;  %v2213_v27 = vmax.f32 %v2197_v24, 0.0  ;;  %v2138_v35 = vrot.slane %v2087_v15, %v5427_v8  ;;  %v1932_v24 = vpop.f32.mrf.mxu1 }
 0x260   : > { %v1672_v44 = vpop.f32.mrf.mxu0 }
 0x261   : > { %v2198_v45 = vadd.f32 %v2182_v25, %v6009_v12  ;;  %v1987_v46 = vadd.f32 %v6001_v62, %v1672_v44  ;;  %v2064_v44 = vrot.slane %v2050_v7, %v5415_v5 }
 0x262   : > { %v6031_v47 = vpop.f32.mrf.mxu0 }
 0x263   : > { %v2214_v50 = vmax.f32 %v2198_v45, 0.0  ;;  %v2183_v53 = vadd.f32 %v2118_v41, %v1987_v46  ;;  %v2080_v56 = vrot.slane %v2064_v44, %v5415_v5 }
 0x264   : > { %v1676_v32 = vpop.f32.mrf.mxu0 }
 0x265   : > { %v2228_v31 = vpack.c.bf16 %v2214_v50, %v2213_v27  ;;  %v1988_v54 = vadd.f32 %v6001_v62, %v1676_v32  ;;  %v2199_v59 = vadd.f32 %v2183_v53, %v6009_v12  ;;  %v2142_v27 = vrot.slane %v2095_v52, %v5427_v8 }
 0x266   : > { %v6035_v55 = vpop.f32.mrf.mxu0  ;;  %v2097_v50 = vcombine.high %v2087_v15, %v2087_v15 }
 0x267   : > { %v2184_v61 = vadd.f32 %v2122_v22, %v1988_v54  ;;  %4529 = vmatmul.mubr.bf16.vlgmr.msra.gmra.mxu0 %v2228_v31  ;;  %v2215_v58 = vmax.f32 %v2199_v59, 0.0  ;;  %v2066_v54 = vcombine.high %v2064_v44, %v2064_v44 }
 0x268   : > { %v1682_v0 = vpop.f32.mrf.mxu0 }
 0x269   : > { %v2200_v49 = vadd.f32 %v2184_v61, %v6009_v12  ;;  %v1989_v57 = vadd.f32 %v6001_v62, %v1682_v0  ;;  %v2146_v61 = vrot.slane %v2097_v50, %v5427_v8 }
 0x26a   : > { %v6042_v42 = vpop.f32.mrf.mxu0 }
 0x26b   : > { %v2216_v63 = vmax.f32 %v2200_v49, 0.0  ;;  %v2185_v43 = vadd.f32 %v2126_v33, %v1989_v57 }
 0x26c   : > { %v1686_v60 = vpop.f32.mrf.mxu0 }
 0x26d   : > { %v1990_v10 = vadd.f32 %v6001_v62, %v1686_v60  ;;  %v2229_v28 = vpack.c.bf16 %v2216_v63, %v2215_v58  ;;  %v2201_v38 = vadd.f32 %v2185_v43, %v6009_v12  ;;  %v2150_v63 = vrot.slane %v2080_v56, %v5427_v8 }
 0x26e   : > { %v6047_v2 = vpop.f32.mrf.mxu0  ;;  %v2094_v43 = vrot.slane %v2066_v54, %v5415_v5  ;;  %v6558_v54 = vmov 0.0  }
 0x26f   : > { %v2186_v29 = vadd.f32 %v2130_v34, %v1990_v10  ;;  %4532 = vmatprep.mubr.bf16.mxu0 %v2229_v28  ;;  %v2217_v21 = vmax.f32 %v2201_v38, 0.0  ;;  %4492 = vmatprep.subr.bf16.mxu1 %v6558_v54 }
 0x270   : > { %v1692_v14 = vpop.f32.mrf.mxu0  ;;  %4564 = vmatprep.subr.bf16.mxu0 %v6558_v54  ;;  %4508 = vmatprep.mubr.msk.bf16.mxu1 %vm5194_vm11, %v6558_v54 }
 0x271   : > { %v2202_v17 = vadd.f32 %v2186_v29, %v6009_v12  ;;  %v1991_v11 = vadd.f32 %v6001_v62, %v1692_v14  ;;  %v2154_v29 = vrot.slane %v2094_v43, %v5427_v8  ;;  %v2096_v14 = vcombine.high %v2080_v56, %v2080_v56  ;;  %v4861_v56 = vld [vmem:[#allocation2 + $0x50] ss:$12 sps:$4 sm:$0xff]  }
 0x272   : > { %v6054_v20 = vpop.f32.mrf.mxu0 }
 0x273   : > { %v2218_v26 = vmax.f32 %v2202_v17, 0.0  ;;  %v2187_v51 = vadd.f32 %v2134_v39, %v1991_v11  ;;  %v2158_v7 = vrot.slane %v2096_v14, %v5427_v8 }
 0x274   : > { %v1696_v9 = vpop.f32.mrf.mxu0 }
 0x275   : > { %v1992_v30 = vadd.f32 %v6001_v62, %v1696_v9  ;;  %v2230_v37 = vpack.c.bf16 %v2218_v26, %v2217_v21  ;;  %v2203_v41 = vadd.f32 %v2187_v51, %v1932_v24  ;;  %v2098_v9 = vcombine.high %v2094_v43, %v2094_v43  ;;  %v4872_v43 = vld [vmem:[#allocation7] sm:$0xff]  }
 0x276   : > { %v6058_v25 = vpop.f32.mrf.mxu0 }
 0x277   : > { %v2188_v12 = vadd.f32 %v2138_v35, %v1992_v30  ;;  %4533 = vmatmul.mubr.bf16.gmra.mxu0 %v2230_v37  ;;  %v2219_v40 = vmax.f32 %v2203_v41, 0.0  ;;  %v2162_v44 = vrot.slane %v2098_v9, %v5427_v8 }
 0x278   : > { %v1702_v45 = vpop.f32.mrf.mxu0 }
 0x279   : > { %v2204_v46 = vadd.f32 %v2188_v12, %v1932_v24  ;;  %v1993_v22 = vadd.f32 %v6001_v62, %v1702_v45 }
 0x27a   : > { %v6063_v53 = vpop.f32.mrf.mxu0 }
 0x27b   : > { %v2220_v32 = vmax.f32 %v2204_v46, 0.0  ;;  %v2189_v31 = vadd.f32 %v2142_v27, %v1993_v22 }
 0x27c   : > { %v1706_v48 = vpop.f32.mrf.mxu0 }
 0x27d   : > { %v1994_v59 = vadd.f32 %v6001_v62, %v1706_v48  ;;  %v2231_v33 = vpack.c.bf16 %v2220_v32, %v2219_v40  ;;  %v2205_v0 = vadd.f32 %v2189_v31, %v1932_v24  ;;  %v4857_v31 = vld [vmem:[#allocation2 + $0xb0] ss:$12 sps:$4 sm:$0xff]   ;;  %v4859_v48 = vld [vmem:[#allocation2 + $0x80] ss:$12 sps:$4 sm:$0xff]  }
 0x27e   : > { %v6068_v36 = vpop.f32.mrf.mxu0  ;;  %4493 = vmatpush3.bf16.msra.mxu1 %v4857_v31 }
 0x27f   : > { %v2190_v49 = vadd.f32 %v2146_v61, %v1994_v59  ;;  %4536 = vmatprep.mubr.bf16.mxu0 %v2231_v33  ;;  %v2221_v60 = vmax.f32 %v2205_v0, 0.0  ;;  %4494 = vmatprep.subr.bf16.mxu1 %v6558_v54  ;;  %v4862_v59 = vld [vmem:[#allocation2 + $0x38] ss:$12 sps:$4 sm:$0xff]   ;;  %v4863_v61 = vld [vmem:[#allocation2 + $0x20] ss:$12 sps:$4 sm:$0xff]  }
 0x280   : > { %v1712_v57 = vpop.f32.mrf.mxu0  ;;  %v4864_v33 = vld [vmem:[#allocation2 + $0x8] ss:$12 sps:$4 sm:$0xff]   ;;  %v4865_v0 = vld [vmem:[#allocation7 + $0x38] sm:$0xff]  }
 0x281   : > { %v2206_v34 = vadd.f32 %v2190_v49, %v1932_v24  ;;  %v1995_v58 = vadd.f32 %v6001_v62, %v1712_v57  ;;  %v4866_v49 = vld [vmem:[#allocation7 + $0x30] sm:$0xff]   ;;  %v4867_v57 = vld [vmem:[#allocation7 + $0x28] sm:$0xff]  }
 0x282   : > { %v6073_v19 = vpop.f32.mrf.mxu0 }
 0x283   : > { %v2222_v4 = vmax.f32 %v2206_v34, 0.0  ;;  %v2191_v10 = vadd.f32 %v2150_v63, %v1995_v58  ;;  %v4868_v34 = vld [vmem:[#allocation7 + $0x20] sm:$0xff]   ;;  %v4870_v58 = vld [vmem:[#allocation7 + $0x10] sm:$0xff]   ;;  %v4871_v63 = vld [vmem:[#allocation7 + $0x8] sm:$0xff]  }
 0x284   : > { %v1716_v28 = vpop.f32.mrf.mxu0 }
 0x285   : > { %v1996_v38 = vadd.f32 %v6001_v62, %v1716_v28  ;;  %v2232_v39 = vpack.c.bf16 %v2222_v4, %v2221_v60  ;;  %v2207_v17 = vadd.f32 %v2191_v10, %v1932_v24  ;;  %v4873_v60 = vld [vmem:[#allocation8 + $0x38] sm:$0xff]   ;;  %v4874_v4 = vld [vmem:[#allocation8 + $0x30] sm:$0xff]   ;;  %v6110_v10 = vpop.permute.xlu1 %2436  ;;  %v4875_v28 = vld [vmem:[#allocation8 + $0x28] sm:$0xff]  }
 0x286   : > { %v6077_v15 = vpop.f32.mrf.mxu0  ;;  %4565 = vmatpush3.bf16.msra.mxu0 %v4873_v60  ;;  %vm2483_vm12 = vcmp.eq.s32.totalorder %v6110_v10, 1 }
 0x287   : > { %v2192_v11 = vadd.f32 %v2154_v29, %v1996_v38  ;;  %4537 = vmatmul.mubr.bf16.gmra.mxu0 %v2232_v39  ;;  %v2223_v30 = vmax.f32 %v2207_v17, 0.0  ;;  %4566 = vmatprep.subr.bf16.mxu0 %v6558_v54  ;;  %v4876_v39 = vld [vmem:[#allocation8 + $0x20] sm:$0xff]  }
 0x288   : > { %v1722_v21 = vpop.f32.mrf.mxu0 }
 0x289   : > { %v2208_v26 = vadd.f32 %v2192_v11, %v1932_v24  ;;  %v1997_v51 = vadd.f32 %v6001_v62, %v1722_v21  ;;  %v6116_v17 = vpop.permute.xlu1 %2460  ;;  %v6118_v11 = vpop.permute.xlu0 %2439 }
 0x28a   : > { %v6081_v52 = vpop.f32.mrf.mxu0  ;;  %4567 = vmatpush3.bf16.msra.mxu0 %v4874_v4  ;;  %6618 = vst [vmem:[#allocation22_spill] sm:$0xff] %v6116_v17  ;;  %vm2484_vm14 = vcmp.eq.s32.totalorder %v6118_v11, 1  ;;  %vm6568_vm0 = vcmp.eq.s32.totalorder %v6116_v17, 1 }
 0x28b   : > { %v2224_v35 = vmax.f32 %v2208_v26, 0.0  ;;  %v2193_v37 = vadd.f32 %v2158_v7, %v1997_v51  ;;  %4568 = vmatprep.subr.bf16.mxu0 %v6558_v54  ;;  %v4877_v26 = vld [vmem:[#allocation8 + $0x18] sm:$0xff]   ;;  %v6123_v51 = vld [vmem:[%s6540_s12] ss:$0 sm:$0xff] }
 0x28c   : > { %v1726_v41 = vpop.f32.mrf.mxu0 }
 0x28d   : > { %v1998_v12 = vadd.f32 %v6001_v62, %v1726_v41  ;;  %v2233_v45 = vpack.c.bf16 %v2224_v35, %v2223_v30  ;;  %v2209_v46 = vadd.f32 %v2193_v37, %v1932_v24  ;;  %v4858_v62 = vld [vmem:[#allocation2 + $0x98] ss:$12 sps:$4 sm:$0xff]   ;;  %v6126_v9 = vpop.permute.xlu1 %2442  ;;  %v6130_v37 = vpop.permute.xlu0 %2463 }
 0x28e   : > { %4495 = vmatpush3.bf16.msra.mxu1 %v4858_v62  ;;  %v6112_v38 = vpop.f32.mrf.mxu0  ;;  %4569 = vmatpush3.bf16.msra.mxu0 %v4875_v28  ;;  %6619 = vst [vmem:[#allocation23_spill] sm:$0xff] %v6130_v37  ;;  %vm2485_vm13 = vcmp.eq.s32.totalorder %v6126_v9, 1  ;;  %vm6565_vm1 = vcmp.eq.s32.totalorder %v6130_v37, 1 }
 0x28f   : > { %v2194_v22 = vadd.f32 %v2162_v44, %v1998_v12  ;;  %4540 = vmatprep.mubr.bf16.mxu0 %v2233_v45  ;;  %v2225_v50 = vmax.f32 %v2209_v46, 0.0  ;;  %4496 = vmatprep.subr.bf16.mxu1 %v6558_v54 }
 0x290   : > { %4570 = vmatprep.subr.bf16.mxu0 %v6558_v54 }
 0x291   : > { %v2210_v27 = vadd.f32 %v2194_v22, %v1932_v24  ;;  %v4860_v24 = vld [vmem:[#allocation2 + $0x68] ss:$12 sps:$4 sm:$0xff]   ;;  %v6134_v45 = vpop.permute.xlu1 %2445 }
 0x292   : > { %4497 = vmatpush3.bf16.msra.mxu1 %v4859_v48  ;;  %4571 = vmatpush3.bf16.msra.mxu0 %v4876_v39  ;;  %vm2486_vm15 = vcmp.eq.s32.totalorder %v6134_v45, 1 }
 0x293   : > { %v2226_v40 = vmax.f32 %v2210_v27, 0.0  ;;  %4498 = vmatprep.subr.bf16.mxu1 %v6558_v54  ;;  %4572 = vmatprep.subr.bf16.mxu0 %v6558_v54  ;;  %v6139_v27 = vpop.permute.xlu0 %2466 }
 0x294   : > { %6620 = vst [vmem:[#allocation24_spill] sm:$0xff] %v6139_v27  ;;  %vm2493_vm3 = vcmp.eq.s32.totalorder %v6139_v27, 1 }
 0x295   : > { %v2234_v32 = vpack.c.bf16 %v2226_v40, %v2225_v50 }
 0x296   : > { %4499 = vmatpush3.bf16.msra.mxu1 %v4860_v24  ;;  %4573 = vmatpush3.bf16.msra.mxu0 %v4877_v26 }
 0x297   : > { %4541 = vmatmul.mubr.bf16.gmra.mxu0 %v2234_v32  ;;  %4500 = vmatprep.subr.bf16.mxu1 %v6558_v54 }
 0x298   : > { %4580 = vmatprep.mubr.msk.bf16.mxu0 %vm5194_vm11, %v6558_v54  ;;  %4574 = vmatprep.subr.bf16.mxu0 %v6558_v54 }
 0x29a   : > { %4501 = vmatpush3.bf16.msra.mxu1 %v4861_v56 }
 0x29b   : > { %4502 = vmatprep.subr.bf16.mxu1 %v6558_v54 }
 0x29e   : > { %4503 = vmatpush3.bf16.msra.mxu1 %v4862_v59  ;;  %v6148_v59 = vpop.permute.xlu1 %2448 }
 0x29f   : > { %4504 = vmatprep.subr.bf16.mxu1 %v6558_v54  ;;  %6621 = vst [vmem:[#allocation25_spill] sm:$0xff] %v6148_v59  ;;  %vm2487_vm2 = vcmp.eq.s32.totalorder %v6148_v59, 1 }
 0x2a2   : > { %4505 = vmatpush3.bf16.msra.mxu1 %v4863_v61  ;;  %v6151_v61 = vpop.permute.xlu0 %2469 }
 0x2a3   : > { %4506 = vmatprep.subr.bf16.mxu1 %v6558_v54  ;;  %6622 = vst [vmem:[#allocation26_spill] sm:$0xff] %v6151_v61  ;;  %vm6566_vm4 = vcmp.eq.s32.totalorder %v6151_v61, 1 }
 0x2a6   : > { %4507 = vmatpush3.bf16.msra.mxu1 %v4864_v33  ;;  %v6158_v4 = vpop.permute.xlu0 %2472 }
 0x2a7   : > { %4544 = vmatprep.subr.bf16.mxu1 %v6558_v54  ;;  %6624 = vst [vmem:[#allocation28_spill] sm:$0xff] %v6158_v4  ;;  %vm6575_vm7 = vcmp.eq.s32.totalorder %v6158_v4, 1 }
 0x2a9   : > { %4509 = vmatmul.mubr.bf16.vlgmr.msra.gmra.mxu1 %v5683_v1  ;;  %v4869_v1 = vld [vmem:[#allocation7 + $0x18] sm:$0xff]  }
 0x2aa   : > { %4560 = vmatprep.mubr.msk.bf16.mxu1 %vm5194_vm11, %v6558_v54  ;;  %4545 = vmatpush3.bf16.msra.mxu1 %v4865_v0 }
 0x2ab   : > { %4546 = vmatprep.subr.bf16.mxu1 %v6558_v54 }
 0x2ae   : > { %4547 = vmatpush3.bf16.msra.mxu1 %v4866_v49 }
 0x2af   : > { %4548 = vmatprep.subr.bf16.mxu1 %v6558_v54 }
 0x2b2   : > { %4549 = vmatpush3.bf16.msra.mxu1 %v4867_v57 }
 0x2b3   : > { %4550 = vmatprep.subr.bf16.mxu1 %v6558_v54 }
 0x2b6   : > { %4551 = vmatpush3.bf16.msra.mxu1 %v4868_v34 }
 0x2b7   : > { %4552 = vmatprep.subr.bf16.mxu1 %v6558_v54 }
 0x2ba   : > { %4553 = vmatpush3.bf16.msra.mxu1 %v4869_v1 }
 0x2bb   : > { %4554 = vmatprep.subr.bf16.mxu1 %v6558_v54 }
 0x2be   : > { %4555 = vmatpush3.bf16.msra.mxu1 %v4870_v58 }
 0x2bf   : > { %4556 = vmatprep.subr.bf16.mxu1 %v6558_v54 }
 0x2c2   : > { %4557 = vmatpush3.bf16.msra.mxu1 %v4871_v63 }
 0x2c3   : > { %4558 = vmatprep.subr.bf16.mxu1 %v6558_v54 }
 0x2c6   : > { %4559 = vmatpush3.bf16.msra.mxu1 %v4872_v43  ;;  %v6155_v43 = vpop.permute.xlu1 %2451 }
 0x2c7   : > { %6623 = vst [vmem:[#allocation27_spill] sm:$0xff] %v6155_v43  ;;  %vm2488_vm6 = vcmp.eq.s32.totalorder %v6155_v43, 1 }
 0x327   : > { %v4530_v29 = vpop.f32.mrf.mxu0 }
 0x328   : > { %v2349_v30 = vadd.f32 %v4530_v29, %v6123_v51 }
 0x329   : > { %v2340_v14 = vpop.f32.mrf.mxu0 }
 0x32a   : > { %v2341_v35 = vadd.f32 %v6123_v51, %v2340_v14  ;;  %v2405_v12 = vmax.f32 %v2349_v30, 0.0 }
 0x32b   : > { %v4531_v21 = vpop.f32.mrf.mxu0 }
 0x32c   : > { %v2403_v44 = vmax.f32 %v2341_v35, 0.0  ;;  %v2352_v46 = vadd.f32 %v4531_v21, %v6123_v51  ;;  %v2501_v40 = vsel %vm2485_vm13, %v2405_v12, 0.0 }
 0x32d   : > { %v2343_v7 = vpop.f32.mrf.mxu0  ;;  %v2527_v24 = vrot.slane %v2501_v40, 4 }
 0x32e   : > { %v2344_v41 = vadd.f32 %v6123_v51, %v2343_v7  ;;  %v2499_v32 = vsel %vm2483_vm12, %v2403_v44, 0.0  ;;  %v2406_v62 = vmax.f32 %v2352_v46, 0.0 }
 0x32f   : > { %v2515_v56 = vrot.slane %v2499_v32, 4  ;;  %v2528_v57 = vadd.f32 %v2527_v24, %v2501_v40 }
 0x330   : > { %v2404_v22 = vmax.f32 %v2344_v41, 0.0  ;;  %v2502_v49 = vsel %vm2486_vm15, %v2406_v62, 0.0  ;;  %v6162_v41 = vpop.permute.xlu1 %2454 }
 0x331   : > { %v2516_v34 = vadd.f32 %v2515_v56, %v2499_v32  ;;  %v2533_v1 = vrot.slane %v2502_v49, 4  ;;  %v2529_v28 = vrot.slane %v2528_v57, 2  ;;  %6625 = vst [vmem:[#allocation29_spill] sm:$0xff] %v6162_v41  ;;  %vm2489_vm8 = vcmp.eq.s32.totalorder %v6162_v41, 1 }
 0x332   : > { %v2500_v48 = vsel %vm2484_vm14, %v2404_v22, 0.0  ;;  %v6168_v22 = vpop.permute.xlu0 %2475 }
 0x333   : > { %v2521_v33 = vrot.slane %v2500_v48, 4  ;;  %v2517_v29 = vrot.slane %v2516_v34, 2  ;;  %v2534_v14 = vadd.f32 %v2533_v1, %v2502_v49  ;;  %v2530_v7 = vadd.f32 %v2529_v28, %v2528_v57 }
 0x335   : > { %v2522_v58 = vadd.f32 %v2521_v33, %v2500_v48  ;;  %v2518_v30 = vadd.f32 %v2517_v29, %v2516_v34  ;;  %v2535_v40 = vrot.slane %v2534_v14, 2  ;;  %v2531_v56 = vrot.slane %v2530_v7, 1 }
 0x337   : > { %v4534_v50 = vpop.f32.mrf.mxu0  ;;  %v2523_v21 = vrot.slane %v2522_v58, 2  ;;  %v2519_v33 = vrot.slane %v2518_v30, 1 }
 0x338   : > { %v2365_v12 = vadd.f32 %v4534_v50, %v6123_v51 }
 0x339   : > { %v2356_v31 = vpop.f32.mrf.mxu0  ;;  %v2524_v32 = vadd.f32 %v2523_v21, %v2522_v58  ;;  %v2536_v58 = vadd.f32 %v2535_v40, %v2534_v14  ;;  %v2532_v14 = vadd.f32 %v2531_v56, %v2530_v7 }
 0x33a   : > { %v2357_v60 = vadd.f32 %v6123_v51, %v2356_v31  ;;  %v2409_v57 = vmax.f32 %v2365_v12, 0.0 }
 0x33b   : > { %v4535_v0 = vpop.f32.mrf.mxu0  ;;  %v2613_v3 = vpack.c.bf16 %v2532_v14, %v2532_v14 }
 0x33c   : > { %v2407_v26 = vmax.f32 %v2357_v60, 0.0  ;;  %v2368_v31 = vadd.f32 %v4535_v0, %v6123_v51 }
 0x33d   : > { %v2359_v63 = vpop.f32.mrf.mxu0 }
 0x33e   : > { %v2360_v39 = vadd.f32 %v6123_v51, %v2359_v63  ;;  %v2503_v48 = vsel %vm2487_vm2, %v2407_v26, 0.0  ;;  %v2525_v63 = vrot.slane %v2524_v32, 1  ;;  %v2410_v28 = vmax.f32 %v2368_v31, 0.0 }
 0x33f   : > { %v2539_v60 = vrot.slane %v2503_v48, 4  ;;  %v2520_v31 = vadd.f32 %v2519_v33, %v2518_v30 }
 0x340   : > { %v2408_v44 = vmax.f32 %v2360_v39, 0.0  ;;  %v6180_v39 = vpop.permute.xlu1 %2457 }
 0x341   : > { %6626 = vst [vmem:[#allocation30_spill] sm:$0xff] %v6180_v39  ;;  %vm2490_vm5 = vcmp.eq.s32.totalorder %v6180_v39, 1 }
 0x342   : > { %v2504_v0 = vsel %vm2488_vm6, %v2408_v44, 0.0  ;;  %v6188_v44 = vpop.permute.xlu0 %2478  ;;  %v2506_v54 = vsel %vm2490_vm5, %v2410_v28, 0.0 }
 0x343   : > { %6627 = vst [vmem:[#allocation31_spill] sm:$0xff] %v6188_v44  ;;  %vm6576_vm9 = vcmp.eq.s32.totalorder %v6188_v44, 1 }
 0x347   : > { %v4538_v35 = vpop.f32.mrf.mxu0 }
 0x348   : > { %v2381_v46 = vadd.f32 %v4538_v35, %v6123_v51 }
 0x349   : > { %v2372_v62 = vpop.f32.mrf.mxu0 }
 0x34a   : > { %v2413_v50 = vmax.f32 %v2381_v46, 0.0  ;;  %v2373_v24 = vadd.f32 %v6123_v51, %v2372_v62  ;;  %v2545_v46 = vrot.slane %v2504_v0, 4  ;;  %v2505_v62 = vsel %vm2489_vm8, %v2409_v57, 0.0 }
 0x34b   : > { %v4539_v49 = vpop.f32.mrf.mxu0  ;;  %v2551_v56 = vrot.slane %v2505_v62, 4 }
 0x34c   : > { %v2411_v34 = vmax.f32 %v2373_v24, 0.0  ;;  %v2384_v1 = vadd.f32 %v4539_v49, %v6123_v51  ;;  %v2509_v21 = vsel %vm2493_vm3, %v2413_v50, 0.0  ;;  %v2537_v49 = vrot.slane %v2536_v58, 1 }
 0x34d   : > { %v2375_v29 = vpop.f32.mrf.mxu0  ;;  %v2546_v33 = vadd.f32 %v2545_v46, %v2504_v0 }
 0x34e   : > { %v2507_v26 = vsel %vm6568_vm0, %v2411_v34, 0.0  ;;  %v2414_v35 = vmax.f32 %v2384_v1, 0.0  ;;  %v2376_v12 = vadd.f32 %v6123_v51, %v2375_v29  ;;  %v2540_v34 = vadd.f32 %v2539_v60, %v2503_v48 }
 0x34f   : > { %v2563_v40 = vrot.slane %v2507_v26, 4  ;;  %v2575_v1 = vrot.slane %v2509_v21, 4  ;;  %v2526_v29 = vadd.f32 %v2525_v63, %v2524_v32  ;;  %v2557_v60 = vrot.slane %v2506_v54, 4 }
 0x350   : > { %v2510_v50 = vsel %vm6566_vm4, %v2414_v35, 0.0  ;;  %v2412_v24 = vmax.f32 %v2376_v12, 0.0  ;;  %v2611_v35 = vpack.c.bf16 %v2520_v31, %v2520_v31  ;;  %v6200_v12 = vpop.permute.xlu0 %2481  ;;  %v2541_v48 = vrot.slane %v2540_v34, 2 }
 0x351   : > { %v2564_v7 = vadd.f32 %v2563_v40, %v2507_v26  ;;  %v2581_v57 = vrot.slane %v2510_v50, 4  ;;  %v2576_v32 = vadd.f32 %v2575_v1, %v2509_v21  ;;  %v6203_v28 = vadd.f32 %v2537_v49, %v2536_v58 }
 0x352   : > { %v2508_v30 = vsel %vm6565_vm1, %v2412_v24, 0.0  ;;  %v2612_v26 = vpack.c.bf16 %v2526_v29, %v2526_v29  ;;  %v2552_v24 = vadd.f32 %v2551_v56, %v2505_v62  ;;  %v2547_v0 = vrot.slane %v2546_v33, 2 }
 0x353   : > { %v2569_v16 = vrot.slane %v2508_v30, 4  ;;  %v2565_v40 = vrot.slane %v2564_v7, 2  ;;  %v2582_v46 = vadd.f32 %v2581_v57, %v2510_v50  ;;  %vm6578_vm10 = vcmp.eq.s32.totalorder %v6200_v12, 1 }
 0x354   : > { %v6206_v31 = vunpack.c.l.b16 %v2613_v3  ;;  %v2659_v61 = vunpack.c.l.b16 %v2611_v35  ;;  %vm6577_vm1 = vcmp.eq.s32.totalorder %v6168_v22, 1  ;;  %vm6579_vm4 = vcmask 1041409  }
 0x355   : > { %v2570_v63 = vadd.f32 %v2569_v16, %v2508_v30  ;;  %v2542_v16 = vadd.f32 %v2541_v48, %v2540_v34  ;;  %v2558_v58 = vadd.f32 %v2557_v60, %v2506_v54  ;;  %v2577_v21 = vrot.slane %v2576_v32, 2 }
 0x356   : > { %v2614_v62 = vpack.c.bf16 %v6203_v28, %v6203_v28  ;;  %v2566_v50 = vadd.f32 %v2565_v40, %v2564_v7  ;;  %v2660_v3 = vunpack.c.l.b16 %v2612_v26  ;;  %v2553_v56 = vrot.slane %v2552_v24, 2 }
 0x357   : > { %v2571_v37 = vrot.slane %v2570_v63, 2  ;;  %v4542_v14 = vpop.f32.mrf.mxu0  ;;  %v2548_v57 = vadd.f32 %v2547_v0, %v2546_v33  ;;  %v2583_v35 = vrot.slane %v2582_v46, 2  ;;  %v2543_v48 = vrot.slane %v2542_v16, 1 }
 0x358   : > { %v2397_v17 = vadd.f32 %v4542_v14, %v6123_v51  ;;  %v2559_v60 = vrot.slane %v2558_v58, 2  ;;  %vm2677_vm0 = vcmask 1042434   ;;  %v2554_v0 = vadd.f32 %v2553_v56, %v2552_v24 }
 0x359   : > { %v2572_v49 = vadd.f32 %v2571_v37, %v2570_v63  ;;  %v2388_v1 = vpop.f32.mrf.mxu0  ;;  %v2578_v63 = vadd.f32 %v2577_v21, %v2576_v32  ;;  %v2544_v4 = vadd.f32 %v2543_v48, %v2542_v16 }
 0x35a   : > { %v2417_v29 = vmax.f32 %v2397_v17, 0.0  ;;  %v2389_v30 = vadd.f32 %v6123_v51, %v2388_v1  ;;  %v2567_v17 = vrot.slane %v2566_v50, 1  ;;  %v2549_v1 = vrot.slane %v2548_v57, 1 }
 0x35b   : > { %v4543_v14 = vpop.f32.mrf.mxu0  ;;  %v2573_v27 = vrot.slane %v2572_v49, 1  ;;  %v2579_v21 = vrot.slane %v2578_v63, 1 }
 0x35c   : > { %v2513_v34 = vsel %vm6576_vm9, %v2417_v29, 0.0  ;;  %v2415_v54 = vmax.f32 %v2389_v30, 0.0  ;;  %v2400_v37 = vadd.f32 %v4543_v14, %v6123_v51  ;;  %v2584_v30 = vadd.f32 %v2583_v35, %v2582_v46 }
 0x35d   : > { %v2599_v28 = vrot.slane %v2513_v34, 4  ;;  %v2391_v7 = vpop.f32.mrf.mxu0  ;;  %v2574_v43 = vadd.f32 %v2573_v27, %v2572_v49  ;;  %v2550_v24 = vadd.f32 %v2549_v1, %v2548_v57  ;;  %v2676_v27 = vsel %vm6579_vm4, %v2660_v3, %v2659_v61 }
 0x35e   : > { %v2511_v26 = vsel %vm6575_vm7, %v2415_v54, 0.0  ;;  %v2418_v40 = vmax.f32 %v2400_v37, 0.0  ;;  %v2392_v33 = vadd.f32 %v6123_v51, %v2391_v7  ;;  %v2560_v54 = vadd.f32 %v2559_v60, %v2558_v58 }
 0x35f   : > { %v2600_v44 = vadd.f32 %v2599_v28, %v2513_v34  ;;  %v2587_v29 = vrot.slane %v2511_v26, 4  ;;  %v2568_v37 = vadd.f32 %v2567_v17, %v2566_v50  ;;  %vm2679_vm7 = vcmask 1043459  }
 0x360   : > { %v2514_v14 = vsel %vm6578_vm10, %v2418_v40, 0.0  ;;  %v2416_v32 = vmax.f32 %v2392_v33, 0.0  ;;  %vm2681_vm9 = vcmask 1044484   ;;  %v2585_v49 = vrot.slane %v2584_v30, 1 }
 0x361   : > { %v2601_v39 = vrot.slane %v2600_v44, 2  ;;  %v2588_v59 = vadd.f32 %v2587_v29, %v2511_v26  ;;  %v2605_v41 = vrot.slane %v2514_v14, 4  ;;  %v2620_v35 = vpack.c.bf16 %v2574_v43, %v2574_v43 }
 0x362   : > { %v2512_v51 = vsel %vm6577_vm1, %v2416_v32, 0.0  ;;  %v2555_v7 = vrot.slane %v2554_v0, 1  ;;  %v2580_v26 = vadd.f32 %v2579_v21, %v2578_v63  ;;  %v2615_v58 = vpack.c.bf16 %v2544_v4, %v2544_v4 }
 0x363   : > { %v2602_v56 = vadd.f32 %v2601_v39, %v2600_v44  ;;  %v2589_v34 = vrot.slane %v2588_v59, 2  ;;  %v2606_v46 = vadd.f32 %v2605_v41, %v2514_v14  ;;  %v2593_v28 = vrot.slane %v2512_v51, 4 }
 0x364   : > { %v2561_v50 = vrot.slane %v2560_v54, 1  ;;  %v2619_v48 = vpack.c.bf16 %v2568_v37, %v2568_v37  ;;  %v2616_v17 = vpack.c.bf16 %v2550_v24, %v2550_v24  ;;  %v2662_v44 = vunpack.c.l.b16 %v2614_v62 }
 0x365   : > { %v2590_v40 = vadd.f32 %v2589_v34, %v2588_v59  ;;  %v2607_v16 = vrot.slane %v2606_v46, 2  ;;  %v2594_v60 = vadd.f32 %v2593_v28, %v2512_v51  ;;  %v2603_v33 = vrot.slane %v2602_v56, 1 }
 0x366   : > { %v2586_v41 = vadd.f32 %v2585_v49, %v2584_v30  ;;  %v2668_v1 = vunpack.c.l.b16 %v2620_v35  ;;  %v2556_v3 = vadd.f32 %v2555_v7, %v2554_v0  ;;  %v2621_v29 = vpack.c.bf16 %v2580_v26, %v2580_v26 }
 0x367   : > { %v2591_v57 = vrot.slane %v2590_v40, 1  ;;  %v2608_v39 = vadd.f32 %v2607_v16, %v2606_v46  ;;  %v2595_v61 = vrot.slane %v2594_v60, 2  ;;  %v2678_v59 = vsel %vm2677_vm0, %v6206_v31, %v2676_v27 }
 0x368   : > { %v2562_v63 = vadd.f32 %v2561_v50, %v2560_v54  ;;  %v2667_v4 = vunpack.c.l.b16 %v2619_v48  ;;  %v2663_v21 = vunpack.c.l.b16 %v2615_v58  ;;  %v2664_v37 = vunpack.c.l.b16 %v2616_v17 }
 0x369   : > { %v2592_v43 = vadd.f32 %v2591_v57, %v2590_v40  ;;  %v2609_v14 = vrot.slane %v2608_v39, 1  ;;  %v2596_v32 = vadd.f32 %v2595_v61, %v2594_v60  ;;  %v2604_v51 = vadd.f32 %v2603_v33, %v2602_v56 }
 0x36a   : > { %v2622_v34 = vpack.c.bf16 %v2586_v41, %v2586_v41  ;;  %v2689_v62 = vsel %vm6579_vm4, %v2668_v1, %v2667_v4  ;;  %v2617_v49 = vpack.c.bf16 %v2556_v3, %v2556_v3  ;;  %v2669_v0 = vunpack.c.l.b16 %v2621_v29 }
 0x36b   : > { %v2623_v24 = vpack.c.bf16 %v2592_v43, %v2592_v43  ;;  %v2610_v30 = vadd.f32 %v2609_v14, %v2608_v39  ;;  %v2597_v46 = vrot.slane %v2596_v32, 1  ;;  %vm2683_vm1 = vcmask 1045509   ;;  %v1969_v14 = vpop.f32.mrf.mxu1 }
 0x36c   : > { %v2680_v35 = vsel %vm2679_vm7, %v2662_v44, %v2678_v59  ;;  %v2618_v28 = vpack.c.bf16 %v2562_v63, %v2562_v63  ;;  %vm2685_vm10 = vcmask 1046534   ;;  %v2690_v54 = vsel %vm2677_vm0, %v2669_v0, %v2689_v62  ;;  %v4887_v62 = vld [vmem:[#allocation2 + $0x154] ss:$12 sps:$4 sm:$0xff]   ;;  %v4895_v0 = vld [vmem:[#allocation2 + $0x124] ss:$12 sps:$4 sm:$0xff]  }
 0x36d   : > { %v2598_v7 = vadd.f32 %v2597_v46, %v2596_v32  ;;  %v2682_v31 = vsel %vm2681_vm9, %v2663_v21, %v2680_v35  ;;  %v2625_v27 = vpack.c.bf16 %v2604_v51, %v2604_v51  ;;  %v2671_v56 = vunpack.c.l.b16 %v2623_v24  ;;  %v4510_v59 = vpop.f32.mrf.mxu1  ;;  %v4878_v32 = vld [vmem:[#allocation8 + $0x10] sm:$0xff]   ;;  %v4880_v51 = vld [vmem:[#allocation8] sm:$0xff]   ;;  %v4891_v46 = vld [vmem:[#allocation2 + $0x13c] ss:$12 sps:$4 sm:$0xff]  }
 0x36e   : > { %v2670_v26 = vunpack.c.l.b16 %v2622_v34  ;;  %v2626_v40 = vpack.c.bf16 %v2610_v30, %v2610_v30  ;;  %v2684_v58 = vsel %vm2683_vm1, %v2664_v37, %v2682_v31  ;;  %v2665_v50 = vunpack.c.l.b16 %v2617_v49  ;;  %4575 = vmatpush3.bf16.msra.mxu0 %v4878_v32  ;;  %v4879_v37 = vld [vmem:[#allocation8 + $0x8] sm:$0xff]   ;;  %v4885_v30 = vld [vmem:[#allocation2 + $0x150] ss:$12 sps:$4 sm:$0xff]   ;;  %v4889_v49 = vld [vmem:[#allocation2 + $0x138] ss:$12 sps:$4 sm:$0xff]  }
 0x36f   : > { %v2624_v16 = vpack.c.bf16 %v2598_v7, %v2598_v7  ;;  %v2673_v17 = vunpack.c.l.b16 %v2625_v27  ;;  %vm2687_vm4 = vcmask 1047559   ;;  %v2666_v39 = vunpack.c.l.b16 %v2618_v28  ;;  %v1972_v63 = vpop.f32.mrf.mxu1  ;;  %v4881_v24 = vld [vmem:[#allocation2 + $0x168] ss:$12 sps:$4 sm:$0xff]   ;;  %v4883_v34 = vld [vmem:[#allocation2 + $0x16c] ss:$12 sps:$4 sm:$0xff]  }
 0x370   : > { %v2691_v48 = vsel %vm2679_vm7, %v2670_v26, %v2690_v54  ;;  %v2686_v57 = vsel %vm2685_vm10, %v2665_v50, %v2684_v58  ;;  %v2674_v44 = vunpack.c.l.b16 %v2626_v40  ;;  %v6628_v43 = vmov 0   ;;  %3079 = vmatprep.subr.bf16.mxu1 %v4883_v34  ;;  %v4893_v35 = vld [vmem:[#allocation2 + $0x120] ss:$12 sps:$4 sm:$0xff]   ;;  %v4897_v7 = vld [vmem:[#allocation2 + $0x108] ss:$12 sps:$4 sm:$0xff]   ;;  %v4913_v32 = vld [vmem:[#allocation5 + $0x78] sm:$0xff]  }
 0x371   : > { %v2672_v60 = vunpack.c.l.b16 %v2624_v16  ;;  %v2692_v33 = vsel %vm2681_vm9, %v2671_v56, %v2691_v48  ;;  %v2688_v61 = vsel %vm2687_vm4, %v2666_v39, %v2686_v57  ;;  %v4511_v4 = vpop.f32.mrf.mxu1  ;;  %v6629_v21 = vmov 0.0   ;;  %v4899_v28 = vld [vmem:[#allocation2 + $0x10c] ss:$12 sps:$4 sm:$0xff]   ;;  %v4329_v27 = vld [vmem:[%s6542_s14] ss:$0 sm:$0xff] }
 0x372   : > { %4576 = vmatprep.subr.bf16.mxu0 %v6629_v21  ;;  %v4888_v57 = vld [vmem:[#allocation2 + $0x158] ss:$12 sps:$4 sm:$0xff]   ;;  %v4892_v39 = vld [vmem:[#allocation2 + $0x140] ss:$12 sps:$4 sm:$0xff]   ;;  %v4912_v4 = vld [vmem:[#allocation2 + $0xc8] ss:$12 sps:$4 sm:$0xff]  }
 0x373   : > { %v2693_v41 = vsel %vm2683_vm1, %v2672_v60, %v2692_v33  ;;  %4577 = vmatpush3.bf16.msra.mxu0 %v4879_v37  ;;  %v4911_v59 = vld [vmem:[#allocation2 + $0xc4] ss:$12 sps:$4 sm:$0xff]   ;;  %v4330_v37 = vld [vmem:[%s6544_s16] ss:$0 sm:$0xff] }
 0x374   : > { %v2694_v1 = vsel %vm2685_vm10, %v2673_v17, %v2693_v41  ;;  %4578 = vmatprep.subr.bf16.mxu0 %v6629_v21  ;;  %v4884_v17 = vld [vmem:[#allocation2 + $0x170] ss:$12 sps:$4 sm:$0xff]  }
 0x375   : > { %v2695_v3 = vsel %vm2687_vm4, %v2674_v44, %v2694_v1  ;;  %v4896_v44 = vld [vmem:[#allocation2 + $0x128] ss:$12 sps:$4 sm:$0xff]   ;;  %v4900_v41 = vld [vmem:[#allocation2 + $0x110] ss:$12 sps:$4 sm:$0xff]  }
 0x376   : > { %v2696_v29 = vpack.c.b16 %v2695_v3, %v2688_v61  ;;  %v4903_v1 = vld [vmem:[#allocation2 + $0xf4] ss:$12 sps:$4 sm:$0xff]   ;;  %v4901_v61 = vld [vmem:[#allocation2 + $0xf0] ss:$12 sps:$4 sm:$0xff]   ;;  %v4904_v3 = vld [vmem:[#allocation2 + $0xf8] ss:$12 sps:$4 sm:$0xff]  }
 0x377   : > { %4579 = vmatpush3.bf16.msra.mxu0 %v4880_v51 }
 0x378   : > { %4561 = vmatmul.mubr.bf16.vlgmr.msra.gmra.mxu1 %v2696_v29  ;;  %4584 = vmatprep.subr.bf16.mxu0 %v6629_v21  ;;  %v4907_v29 = vld [vmem:[#allocation2 + $0xdc] ss:$12 sps:$4 sm:$0xff]  }
 0x379   : > { %3111 = vmatprep.mubr.bf16.mxu1 %v6628_v43  ;;  %3080 = vmatpush1.bf16.msra.mxu1 %v4881_v24  ;;  %v4905_v43 = vld [vmem:[#allocation2 + $0xd8] ss:$12 sps:$4 sm:$0xff]  }
 0x37a   : > { %3081 = vmatprep.subr.bf16.mxu1 %v4887_v62 }
 0x37d   : > { %3082 = vmatpush1.bf16.msra.mxu1 %v4885_v30  ;;  %v5001_v30 = vld [vmem:[%s5665_s22] sm:$0xff] }
 0x37e   : > { %3083 = vmatprep.subr.bf16.mxu1 %v4891_v46 }
 0x381   : > { %3084 = vmatpush1.bf16.msra.mxu1 %v4889_v49 }
 0x382   : > { %3085 = vmatprep.subr.bf16.mxu1 %v4895_v0 }
 0x385   : > { %3086 = vmatpush1.bf16.msra.mxu1 %v4893_v35  ;;  %v5002_v35 = vld [vmem:[%s5665_s22 + $0x8] sm:$0xff]  ;;  %s4126_s22 = sshll.u32 %s617_s29, 4  ;;  %s6481_s22 = int_to_ptr.vmem [resolvable:$true] %s4126_s22 }
 0x386   : > { %3087 = vmatprep.subr.bf16.mxu1 %v4899_v28  ;;  %s5107_s20 = scalar_lea.vmem %s6481_s22, 64  ;;  %p5114_p0 = scmp.lt.s32.totalorder %s6481_s22, %s5112_s18 }
 0x387   : > { %p5108_p8 = scmp.ne.s32.totalorder %s6481_s22, %s5107_s20  ;;  %p5115_p2 = scmp.lt.s32.totalorder %s5113_s26, %s5107_s20 }
 0x389   : > { %3088 = vmatpush1.bf16.msra.mxu1 %v4897_v7  ;;  %p5109_p11 = pnand %p5108_p8, %p5327_p5  ;;  %p5116_p13 = por %p5115_p2, %p5114_p0 }
 0x38a   : > { %3089 = vmatprep.subr.bf16.mxu1 %v4903_v1 }
 0x38b   : > { %p5110_p1 = pneg %p5109_p11 }
 0x38d   : > { %3090 = vmatpush1.bf16.msra.mxu1 %v4901_v61  ;;  %p5117_p3 = pnand %p5116_p13, %p5110_p1 }
 0x38e   : > { %3091 = vmatprep.subr.bf16.mxu1 %v4907_v29 }
 0x391   : > { %3092 = vmatpush1.bf16.msra.mxu1 %v4905_v43 }
 0x392   : > { %3093 = vmatprep.subr.bf16.mxu1 %v4911_v59 }
 0x438   : > { %v2780_v31 = vpop.f32.mrf.mxu1 }
 0x439   : > { %v2787_v54 = vadd.f32 %v2780_v31, %v1969_v14  ;;  %v4908_v14 = vld [vmem:[#allocation2 + $0xe0] ss:$12 sps:$4 sm:$0xff]  }
 0x43a   : > { %v4562_v56 = vpop.f32.mrf.mxu1 }
 0x43b   : > { %v2796_v40 = vadd.f32 %v4329_v27, %v2787_v54  ;;  %v4915_v56 = vld [vmem:[#allocation5 + $0x68] sm:$0xff]  }
 0x43c   : > { %v2783_v26 = vpop.f32.mrf.mxu1 }
 0x43d   : > { %v2788_v16 = vadd.f32 %v2783_v26, %v1972_v63  ;;  %v2798_v48 = vmax.f32 %v2796_v40, 0.0  ;;  %v4909_v63 = vld [vmem:[#allocation2 + $0xc0] ss:$12 sps:$4 sm:$0xff]   ;;  %v4917_v40 = vld [vmem:[#allocation5 + $0x58] sm:$0xff]  }
 0x43e   : > { %v4563_v58 = vpop.f32.mrf.mxu1  ;;  %3094 = vmatpush1.bf16.msra.mxu1 %v4909_v63  ;;  %v4916_v26 = vld [vmem:[#allocation5 + $0x60] sm:$0xff]  }
 0x43f   : > { %v2797_v50 = vadd.f32 %v4329_v27, %v2788_v16  ;;  %4604 = vmatprep.subr.bf16.mxu1 %v4913_v32  ;;  %v4914_v27 = vld [vmem:[#allocation5 + $0x70] sm:$0xff]   ;;  %v4919_v58 = vld [vmem:[#allocation5 + $0x48] sm:$0xff]  }
 0x440   : > { %v4918_v16 = vld [vmem:[#allocation5 + $0x50] sm:$0xff]  }
 0x441   : > { %v2799_v60 = vmax.f32 %v2797_v50, 0.0  ;;  %v4920_v50 = vld [vmem:[#allocation5 + $0x40] sm:$0xff]  }
 0x443   : > { %v2800_v33 = vpack.c.bf16 %v2799_v60, %v2798_v48  ;;  %v6272_v48 = vld [vmem:[%s6538_s10 + $0x1] ss:$0 sm:$0xff] }
 0x444   : > { %v3174_v1 = vadd.f32 %v6272_v48, %v6024_v13  ;;  %v3175_v29 = vadd.f32 %v6272_v48, %v6031_v47  ;;  %v6297_v13 = vadd.f32 %v6272_v48, %v6047_v2  ;;  %v3179_v59 = vadd.f32 %v6272_v48, %v6054_v20 }
 0x445   : > { %4581 = vmatmul.mubr.bf16.vlgmr.msra.gmra.mxu0 %v2800_v33  ;;  %v3181_v20 = vadd.f32 %v6272_v48, %v6063_v53 }
 0x446   : > { %4585 = vmatpush3.bf16.msra.mxu0 %v4884_v17  ;;  %4600 = vmatprep.mubr.msk.bf16.mxu0 %vm5194_vm11, %v6629_v21 }
 0x447   : > { %4586 = vmatprep.subr.bf16.mxu0 %v6629_v21 }
 0x44a   : > { %4587 = vmatpush3.bf16.msra.mxu0 %v4888_v57 }
 0x44b   : > { %4588 = vmatprep.subr.bf16.mxu0 %v6629_v21 }
 0x44e   : > { %4589 = vmatpush3.bf16.msra.mxu0 %v4892_v39  ;;  %v3171_v39 = vadd.f32 %v6272_v48, %v6006_v18 }
 0x44f   : > { %4590 = vmatprep.subr.bf16.mxu0 %v6629_v21 }
 0x452   : > { %4591 = vmatpush3.bf16.msra.mxu0 %v4896_v44  ;;  %v3172_v44 = vadd.f32 %v6272_v48, %v6013_v6  ;;  %v3176_v6 = vadd.f32 %v6272_v48, %v6035_v55  ;;  %v3180_v55 = vadd.f32 %v6272_v48, %v6058_v25 }
 0x453   : > { %4592 = vmatprep.subr.bf16.mxu0 %v6629_v21 }
 0x456   : > { %4593 = vmatpush3.bf16.msra.mxu0 %v4900_v41  ;;  %v3173_v41 = vadd.f32 %v6272_v48, %v6020_v23  ;;  %v3177_v23 = vadd.f32 %v6272_v48, %v6042_v42 }
 0x457   : > { %4594 = vmatprep.subr.bf16.mxu0 %v6629_v21 }
 0x45a   : > { %4595 = vmatpush3.bf16.msra.mxu0 %v4904_v3 }
 0x45b   : > { %4596 = vmatprep.subr.bf16.mxu0 %v6629_v21 }
 0x45e   : > { %4597 = vmatpush3.bf16.msra.mxu0 %v4908_v14 }
 0x45f   : > { %4598 = vmatprep.subr.bf16.mxu0 %v6629_v21 }
 0x462   : > { %4599 = vmatpush3.bf16.msra.mxu0 %v4912_v4 }
 0x463   : > { %4636 = vmatprep.subr.bf16.mxu0 %v6629_v21 }
 0x505   : > { %v2906_v51 = vpop.f32.mrf.mxu0 }
 0x506   : > { %v2907_v24 = vadd.f32 %v4330_v37, %v2906_v51 }
 0x507   : > { %v4582_v34 = vpop.f32.mrf.mxu0 }
 0x508   : > { %v2913_v46 = vadd.f32 %v5001_v30, %v2907_v24 }
 0x509   : > { %v2909_v62 = vpop.f32.mrf.mxu0 }
 0x50a   : > { %v2910_v49 = vadd.f32 %v4330_v37, %v2909_v62  ;;  %v6260_v7 = vadd.f32 %v5001_v30, %v2913_v46  ;;  %v6313_v62 = vadd.f32 %v6272_v48, %v6068_v36 }
 0x50b   : > { %v4583_v0 = vpop.f32.mrf.mxu0 }
 0x50c   : > { %v2914_v28 = vadd.f32 %v5002_v35, %v2910_v49  ;;  %v3183_v49 = vadd.f32 %v6272_v48, %v6073_v19 }
 0x50e   : > { %v6262_v31 = vadd.f32 %v5002_v35, %v2914_v28 }
 0x510   : > { %v2917_v54 = vpack.c.bf16 %v6262_v31, %v6260_v7 }
 0x512   : > { %3112 = vmatmul.mubr.bf16.vlgmr.msra.gmra.mxu1 %v2917_v54  ;;  %4601 = vmatmul.mubr.bf16.vlgmr.msra.gmra.mxu0 %v2917_v54 }
 0x513   : > { %4605 = vmatpush3.bf16.msra.mxu1 %v4913_v32  ;;  %4652 = vmatprep.mubr.msk.bf16.mxu0 %vm5194_vm11, %v6629_v21 }
 0x514   : > { %4606 = vmatprep.subr.bf16.mxu1 %v4914_v27 }
 0x517   : > { %4607 = vmatpush3.bf16.msra.mxu1 %v4914_v27 }
 0x518   : > { %4608 = vmatprep.subr.bf16.mxu1 %v4915_v56 }
 0x51b   : > { %4609 = vmatpush3.bf16.msra.mxu1 %v4915_v56 }
 0x51c   : > { %4610 = vmatprep.subr.bf16.mxu1 %v4916_v26 }
 0x51f   : > { %4611 = vmatpush3.bf16.msra.mxu1 %v4916_v26 }
 0x520   : > { %4612 = vmatprep.subr.bf16.mxu1 %v4917_v40 }
 0x523   : > { %4613 = vmatpush3.bf16.msra.mxu1 %v4917_v40 }
 0x524   : > { %4614 = vmatprep.subr.bf16.mxu1 %v4918_v16 }
 0x527   : > { %4615 = vmatpush3.bf16.msra.mxu1 %v4918_v16 }
 0x528   : > { %4616 = vmatprep.subr.bf16.mxu1 %v4919_v58 }
 0x52b   : > { %4617 = vmatpush3.bf16.msra.mxu1 %v4919_v58 }
 0x52c   : > { %4618 = vmatprep.subr.bf16.mxu1 %v4920_v50 }
 0x52f   : > { %4619 = vmatpush3.bf16.msra.mxu1 %v4920_v50 }
 0x530   : > { %4656 = vmatprep.subr.bf16.mxu1 %v6629_v21 }
 0x5d2   : > { %v3113_v60 = vpop.f32.mrf.mxu1  ;;  %v6274_v17 = vpop.f32.mrf.mxu0 }
 0x5d3   : > { %v3189_v33 = vcombine.high %v3113_v60, %v3113_v60  ;;  %v3196_v57 = vrot.slane %v3113_v60, %v5415_v5 }
 0x5d4   : > { %v6285_v61 = vpop.f32.mrf.mxu1  ;;  %v4602_v3 = vpop.f32.mrf.mxu0 }
 0x5d5   : > { %v3203_v43 = vrot.slane %v3189_v33, %v5415_v5  ;;  %v3204_v14 = vcombine.high %v3196_v57, %v3196_v57  ;;  %v3212_v18 = vrot.slane %v3196_v57, %v5415_v5 }
 0x5d6   : > { %v3117_v63 = vpop.f32.mrf.mxu1  ;;  %v6301_v47 = vpop.f32.mrf.mxu0 }
 0x5d7   : > { %v3205_v4 = vcombine.high %v3203_v43, %v3203_v43  ;;  %v3219_v32 = vrot.slane %v3203_v43, %v5415_v5  ;;  %v3226_v37 = vrot.slane %v3204_v14, %v5415_v5  ;;  %v3234_v51 = vcombine.high %v3212_v18, %v3212_v18 }
 0x5d8   : > { %v3290_v42 = vrot.slane %v3212_v18, %v5427_v8  ;;  %v3238_v24 = vcombine.high %v3117_v63, %v3117_v63  ;;  %v3245_v2 = vrot.slane %v3117_v63, %v5415_v5  ;;  %v4603_v34 = vpop.f32.mrf.mxu0 }
 0x5d9   : > { %v3236_v30 = vcombine.high %v3226_v37, %v3226_v37  ;;  %v3294_v46 = vrot.slane %v3226_v37, %v5427_v8  ;;  %v3298_v25 = vrot.slane %v3234_v51, %v5427_v8  ;;  %v3233_v28 = vrot.slane %v3205_v4, %v5415_v5 }
 0x5da   : > { %v3367_v0 = vadd.f32 %v3290_v42, %v3171_v39  ;;  %v3252_v35 = vrot.slane %v3238_v24, %v5415_v5  ;;  %v3235_v54 = vcombine.high %v3219_v32, %v3219_v32  ;;  %v3306_v27 = vrot.slane %v3219_v32, %v5427_v8 }
 0x5db   : > { %v3302_v53 = vrot.slane %v3236_v30, %v5427_v8  ;;  %v3369_v36 = vadd.f32 %v3298_v25, %v3173_v41  ;;  %v3253_v56 = vcombine.high %v3245_v2, %v3245_v2  ;;  %v3261_v40 = vrot.slane %v3245_v2, %v5415_v5 }
 0x5dc   : > { %v3254_v26 = vcombine.high %v3252_v35, %v3252_v35  ;;  %v6325_v19 = vrot.slane %v3252_v35, %v5415_v5  ;;  %v3368_v58 = vadd.f32 %v3294_v46, %v3172_v44  ;;  %v3383_v50 = vadd.f32 %v3367_v0, %v6285_v61  ;;  %v3119_v0 = vpop.f32.mrf.mxu1 }
 0x5dd   : > { %v3370_v16 = vadd.f32 %v3302_v53, %v3174_v1  ;;  %v3275_v60 = vrot.slane %v3253_v56, %v5415_v5  ;;  %v3283_v57 = vcombine.high %v3261_v40, %v3261_v40  ;;  %v3322_v39 = vrot.slane %v3261_v40, %v5427_v8 }
 0x5de   : > { %v6330_v33 = vrot.slane %v3254_v26, %v5415_v5  ;;  %v3237_v41 = vcombine.high %v3233_v28, %v3233_v28  ;;  %v3310_v3 = vrot.slane %v3233_v28, %v5427_v8  ;;  %v3314_v43 = vrot.slane %v3235_v54, %v5427_v8 }
 0x5df   : > { %v3384_v1 = vadd.f32 %v3368_v58, %v6285_v61  ;;  %v3285_v14 = vcombine.high %v3275_v60, %v3275_v60  ;;  %v3326_v44 = vrot.slane %v3275_v60, %v5427_v8  ;;  %v3338_v18 = vrot.slane %v6325_v19, %v5427_v8 }
 0x5e0   : > { %v3399_v63 = vmax.f32 %v3383_v50, 0.0  ;;  %v3330_v5 = vrot.slane %v3283_v57, %v5427_v8  ;;  %v3342_v4 = vrot.slane %v6330_v33, %v5427_v8  ;;  %v3375_v32 = vadd.f32 %v3322_v39, %v3179_v59 }
 0x5e1   : > { %v3400_v37 = vmax.f32 %v3384_v1, 0.0  ;;  %v3334_v51 = vrot.slane %v3285_v14, %v5427_v8  ;;  %v3385_v42 = vadd.f32 %v3369_v36, %v6285_v61  ;;  %v3386_v24 = vadd.f32 %v3370_v16, %v6285_v61 }
 0x5e2   : > { %v3371_v2 = vadd.f32 %v3306_v27, %v3175_v29  ;;  %v3372_v30 = vadd.f32 %v3310_v3, %v3176_v6  ;;  %v3318_v46 = vrot.slane %v3237_v41, %v5427_v8  ;;  %v3373_v25 = vadd.f32 %v3314_v43, %v3177_v23 }
 0x5e3   : > { %v3415_v34 = vpack.c.bf16 %v3400_v37, %v3399_v63  ;;  %v3401_v35 = vmax.f32 %v3385_v42, 0.0  ;;  %v3402_v28 = vmax.f32 %v3386_v24, 0.0  ;;  %v3376_v53 = vadd.f32 %v3326_v44, %v3180_v55 }
 0x5e4   : > { %v3387_v54 = vadd.f32 %v3371_v2, %v6285_v61  ;;  %v3388_v59 = vadd.f32 %v3372_v30, %v6285_v61  ;;  %v3374_v56 = vadd.f32 %v3318_v46, %v6297_v13  ;;  %v3389_v36 = vadd.f32 %v3373_v25, %v6285_v61 }
 0x5e5   : > { %4620 = vmatprep.mubr.bf16.mxu1 %v3415_v34  ;;  %v3391_v26 = vadd.f32 %v3375_v32, %v3119_v0  ;;  %v3184_v29 = vadd.f32 %v6272_v48, %v6077_v15  ;;  %v3416_v6 = vpack.c.bf16 %v3402_v28, %v3401_v35  ;;  %v3392_v27 = vadd.f32 %v3376_v53, %v3119_v0  ;;  %v4926_v35 = vld [vmem:[#allocation7 + $0x50] sm:$0xff]   ;;  %v4927_v28 = vld [vmem:[#allocation7 + $0x48] sm:$0xff]   ;;  %v4929_v53 = vld [vmem:[#allocation8 + $0x78] sm:$0xff]  }
 0x5e6   : > { %v3377_v23 = vadd.f32 %v3330_v5, %v3181_v20  ;;  %v3403_v40 = vmax.f32 %v3387_v54, 0.0  ;;  %v3404_v16 = vmax.f32 %v3388_v59, 0.0  ;;  %v3390_v58 = vadd.f32 %v3374_v56, %v6285_v61  ;;  %v4928_v54 = vld [vmem:[#allocation7 + $0x40] sm:$0xff]   ;;  %v4930_v59 = vld [vmem:[#allocation8 + $0x70] sm:$0xff]   ;;  %v4931_v56 = vld [vmem:[#allocation8 + $0x68] sm:$0xff]  }
 0x5e7   : > { %v3407_v50 = vmax.f32 %v3391_v26, 0.0  ;;  %4621 = vmatmul.mubr.bf16.vlgmr.msra.gmra.mxu1 %v3416_v6  ;;  %v3408_v55 = vmax.f32 %v3392_v27, 0.0  ;;  %v3378_v60 = vadd.f32 %v3334_v51, %v6313_v62  ;;  %v3379_v13 = vadd.f32 %v3338_v18, %v3183_v49  ;;  %v4933_v26 = vld [vmem:[#allocation8 + $0x58] sm:$0xff]  }
 0x5e8   : > { %v3393_v57 = vadd.f32 %v3377_v23, %v3119_v0  ;;  %v3417_v39 = vpack.c.bf16 %v3404_v16, %v3403_v40  ;;  %v3405_v41 = vmax.f32 %v3389_v36, 0.0  ;;  %v3406_v3 = vmax.f32 %v3390_v58, 0.0  ;;  %4657 = vmatpush3.bf16.msra.mxu1 %v4929_v53  ;;  %v4932_v36 = vld [vmem:[#allocation8 + $0x60] sm:$0xff]  }
 0x5e9   : > { %v3380_v43 = vadd.f32 %v3342_v4, %v3184_v29  ;;  %v3286_v15 = vcombine.high %v6330_v33, %v6330_v33  ;;  %v3419_v1 = vpack.c.bf16 %v3408_v55, %v3407_v50  ;;  %v3394_v20 = vadd.f32 %v3378_v60, %v3119_v0  ;;  %4658 = vmatprep.subr.bf16.mxu1 %v6629_v21  ;;  %v6382_v29 = vld [vmem:[%s6540_s12 + $0x1] ss:$0 sm:$0xff] }
 0x5ea   : > { %v3395_v14 = vadd.f32 %v3379_v13, %v3119_v0  ;;  %4624 = vmatprep.mubr.bf16.mxu1 %v3417_v39  ;;  %v3418_v44 = vpack.c.bf16 %v3406_v3, %v3405_v41  ;;  %v3284_v63 = vcombine.high %v6325_v19, %v6325_v19  ;;  %v3409_v5 = vmax.f32 %v3393_v57, 0.0 }
 0x5eb   : > { %v3396_v61 = vadd.f32 %v3380_v43, %v3119_v0  ;;  %v3410_v62 = vmax.f32 %v3394_v20, 0.0  ;;  %v3350_v37 = vrot.slane %v3286_v15, %v5427_v8  ;;  %v3186_v33 = vadd.f32 %v6272_v48, %v6112_v38  ;;  %v4921_v38 = vld [vmem:[#allocation7 + $0x78] sm:$0xff]  }
 0x5ec   : > { %v3411_v32 = vmax.f32 %v3395_v14, 0.0  ;;  %v3346_v51 = vrot.slane %v3284_v63, %v5427_v8  ;;  %v3185_v42 = vadd.f32 %v6272_v48, %v6081_v52  ;;  %4637 = vmatpush3.bf16.msra.mxu0 %v4921_v38  ;;  %v4922_v8 = vld [vmem:[#allocation7 + $0x70] sm:$0xff]   ;;  %v4923_v52 = vld [vmem:[#allocation7 + $0x68] sm:$0xff]   ;;  %v4924_v48 = vld [vmem:[#allocation7 + $0x60] sm:$0xff]   ;;  %4659 = vmatpush3.bf16.msra.mxu1 %v4930_v59 }
 0x5ed   : > { %v3412_v49 = vmax.f32 %v3396_v61, 0.0  ;;  %v3420_v18 = vpack.c.bf16 %v3410_v62, %v3409_v5  ;;  %v3382_v24 = vadd.f32 %v3350_v37, %v3186_v33  ;;  %4638 = vmatprep.subr.bf16.mxu0 %v6629_v21  ;;  %4660 = vmatprep.subr.bf16.mxu1 %v6629_v21 }
 0x5ee   : > { %v3381_v19 = vadd.f32 %v3346_v51, %v3185_v42 }
 0x5ef   : > { %v3421_v4 = vpack.c.bf16 %v3412_v49, %v3411_v32  ;;  %4625 = vmatmul.mubr.bf16.gmra.mxu1 %v3418_v44  ;;  %v3398_v2 = vadd.f32 %v3382_v24, %v3119_v0 }
 0x5f0   : > { %4628 = vmatprep.mubr.bf16.mxu1 %v3419_v1  ;;  %v3397_v34 = vadd.f32 %v3381_v19, %v3119_v0  ;;  %4639 = vmatpush3.bf16.msra.mxu0 %v4922_v8  ;;  %v4925_v0 = vld [vmem:[#allocation7 + $0x58] sm:$0xff]  }
 0x5f1   : > { %v3414_v30 = vmax.f32 %v3398_v2, 0.0  ;;  %4640 = vmatprep.subr.bf16.mxu0 %v6629_v21  ;;  %4661 = vmatpush3.bf16.msra.mxu1 %v4931_v56 }
 0x5f2   : > { %v3413_v46 = vmax.f32 %v3397_v34, 0.0  ;;  %4662 = vmatprep.subr.bf16.mxu1 %v6629_v21 }
 0x5f4   : > { %v3422_v25 = vpack.c.bf16 %v3414_v30, %v3413_v46  ;;  %4641 = vmatpush3.bf16.msra.mxu0 %v4923_v52 }
 0x5f5   : > { %4642 = vmatprep.subr.bf16.mxu0 %v6629_v21  ;;  %4663 = vmatpush3.bf16.msra.mxu1 %v4932_v36 }
 0x5f6   : > { %4664 = vmatprep.subr.bf16.mxu1 %v6629_v21 }
 0x5f7   : > { %4629 = vmatmul.mubr.bf16.gmra.mxu1 %v3420_v18 }
 0x5f8   : > { %4632 = vmatprep.mubr.bf16.mxu1 %v3421_v4  ;;  %4643 = vmatpush3.bf16.msra.mxu0 %v4924_v48 }
 0x5f9   : > { %4644 = vmatprep.subr.bf16.mxu0 %v6629_v21  ;;  %4665 = vmatpush3.bf16.msra.mxu1 %v4933_v26 }
 0x5fa   : > { %4666 = vmatprep.subr.bf16.mxu1 %v6629_v21 }
 0x5fc   : > { %4645 = vmatpush3.bf16.msra.mxu0 %v4925_v0 }
 0x5fd   : > { %4646 = vmatprep.subr.bf16.mxu0 %v6629_v21 }
 0x5ff   : > { %4633 = vmatmul.mubr.bf16.gmra.mxu1 %v3422_v25 }
 0x600   : > { %4672 = vmatprep.mubr.msk.bf16.mxu1 %vm5194_vm11, %v6629_v21  ;;  %4647 = vmatpush3.bf16.msra.mxu0 %v4926_v35 }
 0x601   : > { %4648 = vmatprep.subr.bf16.mxu0 %v6629_v21 }
 0x604   : > { %4649 = vmatpush3.bf16.msra.mxu0 %v4927_v28 }
 0x605   : > { %4650 = vmatprep.subr.bf16.mxu0 %v6629_v21 }
 0x608   : > { %4651 = vmatpush3.bf16.msra.mxu0 %v4928_v54 }
 0x609   : > { %4676 = vmatprep.subr.mxu0 %v6629_v21 }
 0x6a7   : > { %v4622_v6 = vpop.f32.mrf.mxu1 }
 0x6a8   : > { %v3539_v27 = vadd.f32 %v4622_v6, %v6382_v29 }
 0x6a9   : > { %v3530_v23 = vpop.f32.mrf.mxu1 }
 0x6aa   : > { %v3595_v40 = vmax.f32 %v3539_v27, 0.0  ;;  %v3531_v16 = vadd.f32 %v6382_v29, %v3530_v23 }
 0x6ab   : > { %v4623_v58 = vpop.f32.mrf.mxu1 }
 0x6ac   : > { %v3611_v50 = vsel %vm2485_vm13, %v3595_v40, 0.0  ;;  %v3593_v55 = vmax.f32 %v3531_v16, 0.0  ;;  %v3542_v60 = vadd.f32 %v4623_v58, %v6382_v29 }
 0x6ad   : > { %v3637_v57 = vrot.slane %v3611_v50, 4  ;;  %v3533_v13 = vpop.f32.mrf.mxu1 }
 0x6ae   : > { %v3609_v39 = vsel %vm2483_vm12, %v3593_v55, 0.0  ;;  %v3596_v41 = vmax.f32 %v3542_v60, 0.0  ;;  %v3534_v3 = vadd.f32 %v6382_v29, %v3533_v13 }
 0x6af   : > { %v3638_v43 = vadd.f32 %v3637_v57, %v3611_v50  ;;  %v3625_v15 = vrot.slane %v3609_v39, 4  ;;  %v4626_v1 = vpop.f32.mrf.mxu1 }
 0x6b0   : > { %v3612_v20 = vsel %vm2486_vm15, %v3596_v41, 0.0  ;;  %v3594_v14 = vmax.f32 %v3534_v3, 0.0  ;;  %v3555_v9 = vadd.f32 %v4626_v1, %v6382_v29 }
 0x6b1   : > { %v3639_v44 = vrot.slane %v3638_v43, 2  ;;  %v3626_v61 = vadd.f32 %v3625_v15, %v3609_v39  ;;  %v3643_v63 = vrot.slane %v3612_v20, 4  ;;  %v3546_v5 = vpop.f32.mrf.mxu1 }
 0x6b2   : > { %v3610_v10 = vsel %vm2484_vm14, %v3594_v14, 0.0  ;;  %v3599_v62 = vmax.f32 %v3555_v9, 0.0  ;;  %v3547_v32 = vadd.f32 %v6382_v29, %v3546_v5 }
 0x6b3   : > { %v3640_v49 = vadd.f32 %v3639_v44, %v3638_v43  ;;  %v3627_v18 = vrot.slane %v3626_v61, 2  ;;  %v3644_v37 = vadd.f32 %v3643_v63, %v3612_v20  ;;  %v3631_v4 = vrot.slane %v3610_v10, 4  ;;  %v4627_v33 = vpop.f32.mrf.mxu1 }
 0x6b4   : > { %v3615_v51 = vsel %vm2489_vm8, %v3599_v62, 0.0  ;;  %v3597_v42 = vmax.f32 %v3547_v32, 0.0  ;;  %v3558_v24 = vadd.f32 %v4627_v33, %v6382_v29  ;;  %vm6647_vm8 = vcmp.eq.s32.totalorder %v6168_v22, 1 }
 0x6b5   : > { %v3628_v19 = vadd.f32 %v3627_v18, %v3626_v61  ;;  %v3645_v2 = vrot.slane %v3644_v37, 2  ;;  %v3632_v34 = vadd.f32 %v3631_v4, %v3610_v10  ;;  %v3549_v30 = vpop.f32.mrf.mxu1  ;;  %v3661_v11 = vrot.slane %v3615_v51, 4  ;;  %v6635_v4 = vld [vmem:[#allocation22_spill] sm:$0xff] }
 0x6b6   : > { %v3613_v25 = vsel %vm2487_vm2, %v3597_v42, 0.0  ;;  %v3600_v38 = vmax.f32 %v3558_v24, 0.0  ;;  %v3550_v8 = vadd.f32 %v6382_v29, %v3549_v30  ;;  %v3641_v52 = vrot.slane %v3640_v49, 1 }
 0x6b7   : > { %v3633_v48 = vrot.slane %v3632_v34, 2  ;;  %v4630_v0 = vpop.f32.mrf.mxu1  ;;  %v3646_v35 = vadd.f32 %v3645_v2, %v3644_v37  ;;  %v3649_v28 = vrot.slane %v3613_v25, 4  ;;  %v3629_v26 = vrot.slane %v3628_v19, 1 }
 0x6b8   : > { %v3598_v54 = vmax.f32 %v3550_v8, 0.0  ;;  %v3616_v56 = vsel %vm2490_vm5, %v3600_v38, 0.0  ;;  %v3662_v6 = vadd.f32 %v3661_v11, %v3615_v51  ;;  %v3642_v27 = vadd.f32 %v3641_v52, %v3640_v49  ;;  %v6637_v38 = vld [vmem:[#allocation26_spill] sm:$0xff] }
 0x6b9   : > { %v3634_v53 = vadd.f32 %v3633_v48, %v3632_v34  ;;  %v3562_v36 = vpop.f32.mrf.mxu1  ;;  %v3647_v40 = vrot.slane %v3646_v35, 1  ;;  %v3650_v16 = vadd.f32 %v3649_v28, %v3613_v25  ;;  %v3667_v58 = vrot.slane %v3616_v56, 4 }
 0x6ba   : > { %v3614_v55 = vsel %vm2488_vm6, %v3598_v54, 0.0  ;;  %v3571_v57 = vadd.f32 %v4630_v0, %v6382_v29  ;;  %v3630_v39 = vadd.f32 %v3629_v26, %v3628_v19  ;;  %v3663_v41 = vrot.slane %v3662_v6, 2 }
 0x6bb   : > { %v4631_v23 = vpop.f32.mrf.mxu1  ;;  %v3635_v60 = vrot.slane %v3634_v53, 1  ;;  %v3655_v3 = vrot.slane %v3614_v55, 4  ;;  %v3563_v15 = vadd.f32 %v6382_v29, %v3562_v36  ;;  %v3723_v20 = vpack.c.bf16 %v3642_v27, %v3642_v27 }
 0x6bc   : > { %v3603_v43 = vmax.f32 %v3571_v57, 0.0  ;;  %v3648_v14 = vadd.f32 %v3647_v40, %v3646_v35  ;;  %v3651_v9 = vrot.slane %v3650_v16, 2  ;;  %v3668_v44 = vadd.f32 %v3667_v58, %v3616_v56  ;;  %v6639_v40 = vld [vmem:[#allocation23_spill] sm:$0xff] }
 0x6bd   : > { %v3565_v13 = vpop.f32.mrf.mxu1  ;;  %v3636_v61 = vadd.f32 %v3635_v60, %v3634_v53  ;;  %v3601_v10 = vmax.f32 %v3563_v15, 0.0  ;;  %v3574_v62 = vadd.f32 %v4631_v23, %v6382_v29  ;;  %v3721_v32 = vpack.c.bf16 %v3630_v39, %v3630_v39 }
 0x6be   : > { %v3619_v5 = vsel %vm2493_vm3, %v3603_v43, 0.0  ;;  %v6413_v49 = vadd.f32 %v3663_v41, %v3662_v6  ;;  %v3656_v18 = vadd.f32 %v3655_v3, %v3614_v55  ;;  %vm6636_vm12 = vcmp.eq.s32.totalorder %v6635_v4, 1  ;;  %v6641_v43 = vld [vmem:[#allocation31_spill] sm:$0xff] }
 0x6bf   : > { %v4634_v1 = vpop.f32.mrf.mxu1  ;;  %v3685_v37 = vrot.slane %v3619_v5, 4  ;;  %v3617_v33 = vsel %vm6636_vm12, %v3601_v10, 0.0  ;;  %v3604_v45 = vmax.f32 %v3574_v62, 0.0  ;;  %v6417_v42 = vunpack.c.l.b16 %v3723_v20 }
 0x6c0   : > { %v3724_v24 = vpack.c.bf16 %v3648_v14, %v3648_v14  ;;  %v3652_v19 = vadd.f32 %v3651_v9, %v3650_v16  ;;  %v3722_v2 = vpack.c.bf16 %v3636_v61, %v3636_v61  ;;  %v3669_v34 = vrot.slane %v3668_v44, 2 }
 0x6c1   : > { %v3578_v51 = vpop.f32.mrf.mxu1  ;;  %v3686_v30 = vadd.f32 %v3685_v37, %v3619_v5  ;;  %v3673_v11 = vrot.slane %v3617_v33, 4  ;;  %v3770_v46 = vunpack.c.l.b16 %v3721_v32  ;;  %v3665_v25 = vrot.slane %v6413_v49, 1  ;;  %v6643_v5 = vld [vmem:[#allocation28_spill] sm:$0xff] }
 0x6c2   : > { %vm6638_vm13 = vcmp.eq.s32.totalorder %v6637_v38, 1  ;;  %v3566_v52 = vadd.f32 %v6382_v29, %v3565_v13  ;;  %v3657_v48 = vrot.slane %v3656_v18, 2  ;;  %v6423_v53 = vunpack.c.l.b16 %v3724_v24 }
 0x6c3   : > { %v3620_v8 = vsel %vm6638_vm13, %v3604_v45, 0.0  ;;  %v3687_v0 = vrot.slane %v3686_v30, 2  ;;  %v3674_v35 = vadd.f32 %v3673_v11, %v3617_v33  ;;  %v4635_v54 = vpop.f32.mrf.mxu1  ;;  %v3653_v59 = vrot.slane %v3652_v19, 1 }
 0x6c4   : > { %v3691_v28 = vrot.slane %v3620_v8, 4  ;;  %v3602_v56 = vmax.f32 %v3566_v52, 0.0  ;;  %v3587_v36 = vadd.f32 %v4634_v1, %v6382_v29  ;;  %v3771_v26 = vunpack.c.l.b16 %v3722_v2 }
 0x6c5   : > { %v3670_v6 = vadd.f32 %v3669_v34, %v3668_v44  ;;  %v3675_v27 = vrot.slane %v3674_v35, 2  ;;  %vm6640_vm14 = vcmp.eq.s32.totalorder %v6639_v40, 1  ;;  %v3579_v50 = vadd.f32 %v6382_v29, %v3578_v51  ;;  %v3581_v41 = vpop.f32.mrf.mxu1 }
 0x6c6   : > { %v3692_v23 = vadd.f32 %v3691_v28, %v3620_v8  ;;  %v3618_v16 = vsel %vm6640_vm14, %v3602_v56, 0.0  ;;  %v3607_v58 = vmax.f32 %v3587_v36, 0.0  ;;  %v3590_v55 = vadd.f32 %v4635_v54, %v6382_v29 }
 0x6c7   : > { %v3658_v60 = vadd.f32 %v3657_v48, %v3656_v18  ;;  %v3688_v57 = vadd.f32 %v3687_v0, %v3686_v30  ;;  %v3676_v13 = vadd.f32 %v3675_v27, %v3674_v35  ;;  %v3679_v3 = vrot.slane %v3618_v16, 4 }
 0x6c8   : > { %v3693_v39 = vrot.slane %v3692_v23, 2  ;;  %vm6642_vm15 = vcmp.eq.s32.totalorder %v6641_v43, 1  ;;  %v3605_v1 = vmax.f32 %v3579_v50, 0.0  ;;  %v3608_v20 = vmax.f32 %v3590_v55, 0.0 }
 0x6c9   : > { %v3623_v15 = vsel %vm6642_vm15, %v3607_v58, 0.0  ;;  %v3654_v14 = vadd.f32 %v3653_v59, %v3652_v19  ;;  %v3677_v9 = vrot.slane %v3676_v13, 1  ;;  %v3680_v63 = vadd.f32 %v3679_v3, %v3618_v16 }
 0x6ca   : > { %v3694_v44 = vadd.f32 %v3693_v39, %v3692_v23  ;;  %v3709_v61 = vrot.slane %v3623_v15, 4  ;;  %vm6644_vm2 = vcmp.eq.s32.totalorder %v6643_v5, 1  ;;  %vm6645_vm3 = vcmp.eq.s32.totalorder %v6200_v12, 1 }
 0x6cb   : > { %v3621_v10 = vsel %vm6644_vm2, %v3605_v1, 0.0  ;;  %v3624_v62 = vsel %vm6645_vm3, %v3608_v20, 0.0  ;;  %v3582_v32 = vadd.f32 %v6382_v29, %v3581_v41  ;;  %v3671_v18 = vrot.slane %v3670_v6, 1 }
 0x6cc   : > { %v3659_v37 = vrot.slane %v3658_v60, 1  ;;  %v3689_v4 = vrot.slane %v3688_v57, 1  ;;  %v3710_v33 = vadd.f32 %v3709_v61, %v3623_v15  ;;  %v3681_v45 = vrot.slane %v3680_v63, 2 }
 0x6cd   : > { %v3697_v51 = vrot.slane %v3621_v10, 4  ;;  %v3715_v24 = vrot.slane %v3624_v62, 4  ;;  %v3606_v19 = vmax.f32 %v3582_v32, 0.0  ;;  %vm6646_vm6 = vcmask 1041409  }
 0x6ce   : > { %v3786_v2 = vsel %vm6646_vm6, %v3771_v26, %v3770_v46  ;;  %v3678_v34 = vadd.f32 %v3677_v9, %v3676_v13  ;;  %v3695_v30 = vrot.slane %v3694_v44, 1  ;;  %v3711_v11 = vrot.slane %v3710_v33, 2  ;;  %vm6648_vm5 = vmmov %vm6646_vm6 }
 0x6cf   : > { %v3682_v38 = vadd.f32 %v3681_v45, %v3680_v63  ;;  %v3698_v8 = vadd.f32 %v3697_v51, %v3621_v10  ;;  %v3716_v52 = vadd.f32 %v3715_v24, %v3624_v62  ;;  %v3622_v12 = vsel %vm6647_vm8, %v3606_v19, 0.0 }
 0x6d0   : > { %v3660_v29 = vadd.f32 %v3659_v37, %v3658_v60  ;;  %v3690_v48 = vadd.f32 %v3689_v4, %v3688_v57  ;;  %v3712_v0 = vadd.f32 %v3711_v11, %v3710_v33  ;;  %v3703_v35 = vrot.slane %v3622_v12, 4 }
 0x6d1   : > { %v3787_v28 = vsel %vm2677_vm0, %v6417_v42, %v3786_v2  ;;  %v3683_v54 = vrot.slane %v3682_v38, 1  ;;  %v3699_v59 = vrot.slane %v3698_v8, 2  ;;  %v3717_v56 = vrot.slane %v3716_v52, 2 }
 0x6d2   : > { %v3725_v46 = vpack.c.bf16 %v3654_v14, %v3654_v14  ;;  %v3729_v36 = vpack.c.bf16 %v3678_v34, %v3678_v34  ;;  %v3696_v26 = vadd.f32 %v3695_v30, %v3694_v44  ;;  %v3704_v27 = vadd.f32 %v3703_v35, %v3622_v12  ;;  %v4934_v35 = vld [vmem:[#allocation8 + $0x50] sm:$0xff]  }
 0x6d3   : > { %v3684_v23 = vadd.f32 %v3683_v54, %v3682_v38  ;;  %v3713_v40 = vrot.slane %v3712_v0, 1  ;;  %v3700_v16 = vadd.f32 %v3699_v59, %v3698_v8  ;;  %v3718_v58 = vadd.f32 %v3717_v56, %v3716_v52  ;;  %4667 = vmatpush3.bf16.msra.mxu1 %v4934_v35  ;;  %v4936_v54 = vld [vmem:[#allocation8 + $0x40] sm:$0xff]  }
 0x6d4   : > { %v3666_v22 = vadd.f32 %v3665_v25, %v6413_v49  ;;  %v3726_v50 = vpack.c.bf16 %v3660_v29, %v3660_v29  ;;  %v3731_v55 = vpack.c.bf16 %v3690_v48, %v3690_v48  ;;  %v3705_v60 = vrot.slane %v3704_v27, 2  ;;  %4668 = vmatprep.subr.bf16.mxu1 %v6629_v21 }
 0x6d5   : > { %v3672_v57 = vadd.f32 %v3671_v18, %v3670_v6  ;;  %v3730_v42 = vpack.c.bf16 %v3684_v23, %v3684_v23  ;;  %v3701_v13 = vrot.slane %v3700_v16, 1  ;;  %v3719_v39 = vrot.slane %v3718_v58, 1 }
 0x6d6   : > { %v3774_v41 = vunpack.c.l.b16 %v3725_v46  ;;  %v3788_v3 = vsel %vm2679_vm7, %v6423_v53, %v3787_v28  ;;  %v3732_v43 = vpack.c.bf16 %v3696_v26, %v3696_v26  ;;  %v3706_v15 = vadd.f32 %v3705_v60, %v3704_v27  ;;  %v4935_v28 = vld [vmem:[#allocation8 + $0x48] sm:$0xff]   ;;  %v4384_v46 = vld [vmem:[%s6542_s14 + $0x1] ss:$0 sm:$0xff] }
 0x6d7   : > { %v3778_v1 = vunpack.c.l.b16 %v3729_v36  ;;  %v3779_v20 = vunpack.c.l.b16 %v3730_v42  ;;  %v3714_v14 = vadd.f32 %v3713_v40, %v3712_v0  ;;  %v3702_v9 = vadd.f32 %v3701_v13, %v3700_v16  ;;  %4669 = vmatpush3.bf16.msra.mxu1 %v4935_v28 }
 0x6d8   : > { %v3775_v44 = vunpack.c.l.b16 %v3726_v50  ;;  %v3780_v61 = vunpack.c.l.b16 %v3731_v55  ;;  %v3720_v49 = vadd.f32 %v3719_v39, %v3718_v58  ;;  %v3707_v25 = vrot.slane %v3706_v15, 1  ;;  %4670 = vmatprep.subr.bf16.mxu1 %v6629_v21  ;;  %v4386_v55 = vld [vmem:[%s6544_s16 + $0x1] ss:$0 sm:$0xff] }
 0x6d9   : > { %v3727_v63 = vpack.c.bf16 %v3666_v22, %v3666_v22  ;;  %v3793_v6 = vsel %vm6648_vm5, %v3779_v20, %v3778_v1  ;;  %v3733_v5 = vpack.c.bf16 %v3702_v9, %v3702_v9  ;;  %v3781_v10 = vunpack.c.l.b16 %v3732_v43  ;;  %v6649_v9 = vld [vmem:[#allocation21_spill] sm:$0xff] }
 0x6da   : > { %v3794_v62 = vsel %vm2677_vm0, %v3780_v61, %v3793_v6  ;;  %v3708_v32 = vadd.f32 %v3707_v25, %v3706_v15  ;;  %v3789_v53 = vsel %vm2681_vm9, %v3774_v41, %v3788_v3  ;;  %v3728_v18 = vpack.c.bf16 %v3672_v57, %v3672_v57  ;;  %v4024_v15 = vld [vmem:[%s6535_s7] sm:$0xf] }
 0x6db   : > { %v3735_v37 = vpack.c.bf16 %v3714_v14, %v3714_v14  ;;  %v3782_v4 = vunpack.c.l.b16 %v3733_v5  ;;  %v3795_v33 = vsel %vm2679_vm7, %v3781_v10, %v3794_v62  ;;  %v3736_v45 = vpack.c.bf16 %v3720_v49, %v3720_v49  ;;  %4671 = vmatpush3.bf16.msra.mxu1 %v4936_v54 }
 0x6dc   : > { %v3734_v51 = vpack.c.bf16 %v3708_v32, %v3708_v32  ;;  %v3790_v24 = vsel %vm2683_vm1, %v3775_v44, %v3789_v53  ;;  %v3776_v19 = vunpack.c.l.b16 %v3727_v63  ;;  %v3777_v38 = vunpack.c.l.b16 %v3728_v18 }
 0x6dd   : > { %v3784_v34 = vunpack.c.l.b16 %v3735_v37  ;;  %v3796_v30 = vsel %vm2681_vm9, %v3782_v4, %v3795_v33  ;;  %v3785_v8 = vunpack.c.l.b16 %v3736_v45  ;;  %v5195_v1 = vmov 1983009808  }
 0x6de   : > { %v3783_v2 = vunpack.c.l.b16 %v3734_v51  ;;  %v3791_v11 = vsel %vm2685_vm10, %v3776_v19, %v3790_v24  ;;  %v4101_v20 = vunpack.c.l.s4 %v5195_v1 }
 0x6df   : > { %v3792_v29 = vsel %vm2687_vm4, %v3777_v38, %v3791_v11 }
 0x6e0   : > { %v3797_v52 = vsel %vm2683_vm1, %v3783_v2, %v3796_v30  ;;  %v4102_v14 = vunpack.c.0.s8 %v4101_v20 }
 0x6e1   : > { %v3798_v12 = vsel %vm2685_vm10, %v3784_v34, %v3797_v52 }
 0x6e2   : > { %v3799_v48 = vsel %vm2687_vm4, %v3785_v8, %v3798_v12 }
 0x6e3   : > { %v3800_v0 = vpack.c.b16 %v3799_v48, %v3792_v29 }
 0x6e5   : > { %4653 = vmatmul.mubr.bf16.vlgmr.msra.gmra.mxu0 %v3800_v0 }
 0x6e6   : > { %4680 = vmatprep.mubr.msk.f32.mxu0 %vm5194_vm11, %v6629_v21  ;;  %vm4025_vm11 = vcmask 130048  }
 0x7a5   : > { %v3884_v59 = vpop.f32.mrf.mxu0 }
 0x7a6   : > { %v3891_v56 = vadd.f32 %v3884_v59, %v6274_v17 }
 0x7a7   : > { %v4654_v36 = vpop.f32.mrf.mxu0 }
 0x7a8   : > { %v3901_v27 = vadd.f32 %v4384_v46, %v3891_v56 }
 0x7a9   : > { %v3887_v26 = vpop.f32.mrf.mxu0 }
 0x7aa   : > { %v3892_v23 = vadd.f32 %v3887_v26, %v6301_v47  ;;  %v3903_v58 = vmax.f32 %v3901_v27, 0.0 }
 0x7ab   : > { %v4655_v40 = vpop.f32.mrf.mxu0 }
 0x7ac   : > { %v3902_v16 = vadd.f32 %v4384_v46, %v3892_v23 }
 0x7ae   : > { %v3904_v22 = vmax.f32 %v3902_v16, 0.0 }
 0x7b0   : > { %v3905_v50 = vpack.c.bf16 %v3904_v22, %v3903_v58 }
 0x7b2   : > { %4673 = vmatmul.mubr.bf16.vlgmr.msra.gmra.mxu1 %v3905_v50 }
 0x872   : > { %v4013_v17 = vpop.f32.mrf.mxu1 }
 0x873   : > { %v4014_v57 = vadd.f32 %v4386_v55, %v4013_v17 }
 0x874   : > { %v4674_v60 = vpop.f32.mrf.mxu1 }
 0x875   : > { %v4020_v41 = vadd.f32 %v4014_v57, %v6260_v7 }
 0x876   : > { %v4016_v42 = vpop.f32.mrf.mxu1 }
 0x877   : > { %v4017_v13 = vadd.f32 %v4386_v55, %v4016_v42  ;;  %v4022_v43 = vadd.f32 %v4020_v41, %v6260_v7 }
 0x878   : > { %v4675_v39 = vpop.f32.mrf.mxu1 }
 0x879   : > { %v4021_v47 = vadd.f32 %v4017_v13, %v6262_v31 }
 0x87b   : > { %v4023_v3 = vadd.f32 %v4021_v47, %v6262_v31  ;;  %v4105_v31 = vsub.s32 %v4102_v14, %v6649_v9 }
 0x87d   : > { %4677 = vmatpush3.msra.mxu0 %v4023_v3 }
 0x87e   : > { %4678 = vmatprep.subr.mxu0 %v6629_v21 }
 0x87f   : > { %4679 = vmatpush3.msra.mxu0 %v4022_v43 }
 0x880   : > { %4681 = vmatmul.mubr.msk.f32.vlgmr.msra.gmra.mxu0 %vm4025_vm11, %v4024_v15 }
 0x940   : > { %v4095_v7 = vpop.f32.mrf.mxu0 }
 0x941   : > { %v4106_v44 = vrot.slane %v4095_v7, %v4105_v31  ;;  %4396 = vst.sshfl [vmem:[%s617_s29] sm:$0x3 pattern:$0x76325410] %v4095_v7 }
 0x942   : > { %v4682_v21 = vpop.f32.mrf.mxu0 }
 0x943   : > { %v4107_v61 = vcombine.high %v4106_v44, %v4106_v44 }
 0x945   : > { %4111 = vst [vmem:[%s617_s29 + $0x2] sm:$0x3] %v4107_v61 }
 0x946   : > { %5120 = shalt.err (!%p5117_p3)
}
 0x947   : > { %s5121_s19 = scalar_lea.hbm %s6486_s24, 64  ;;  %s5125_s0 = scalar_lea.hbm %s6650_s17, 128 }
 0x948   : > { %p5122_p9 = scmp.ne.s32.totalorder %s6486_s24, %s5121_s19  ;;  %p5126_p12 = scmp.lt.s32.totalorder %s6486_s24, %s6650_s17 }
 0x949   : > { %p5127_p10 = scmp.lt.s32.totalorder %s5125_s0, %s5121_s19 }
 0x94a   : > { %p5123_p4 = pnand %p5122_p9, %p5327_p5 }
 0x94b   : > { %p5128_p8 = por %p5127_p10, %p5126_p12 }
 0x94c   : > { %p5124_p7 = pneg %p5123_p4 }
 0x94e   : > { %p5129_p11 = pnand %p5128_p8, %p5124_p7 }
 0x950   : > { %5132 = shalt.err (!%p5129_p11)
}
 0x951   : > { %s5197_s20 = smov 32   ;;  %s5198_s28 = smov 2  }
 0x952   : > { %4699 = dma.vmem_to_hbm [thread:$0]  (%p5327_p5), %s6481_s22, 64, %s6486_s24, %s6488_s27, %s5197_s20, %s5197_s20, %s5198_s28  }
 0x953 PF: > { %s6651_s18 = sld [smem:[#allocation17_spill]] }
 0x954   : > { %s6652_s26 = sld [smem:[#allocation15_spill]] }
 0x959   : > { %p4726_p1 = scmp.ge.s32.totalorder %s6651_s18, 2 }
 0x95a   : > { %s4141_s29 = sand.u32 1, %s6652_s26  }
 0x95b   : > { %p4715_p0 = pnand %p4726_p1, %p5331_p6  ;;  %s4142_s19 = scalar_lea.sflag [#allocation4], %s4141_s29 }
 0x95d   : > { %p4716_p2 = pneg %p4715_p0 }
 0x95f   : > { %5162 = dma.done.wait (%p4716_p2), %s4142_s19, 64  }
 0x960   : > { %5164 = vsyncadd (%p4716_p2), %s4142_s19, 4294967232  ;;  %s6654_s27 = sld [smem:[#allocation18_spill]]  ;;  %s6657_s24 = smov %s5171_s25 }
 0x961   : > { %s6655_s0 = sld [smem:[#allocation16_spill]] }
 0x962   : > { %s6656_s26 = sld [smem:[#allocation19_spill]] }
 0x966   : > { %p30_p13 = scmp.ge.s32.totalorder %s6654_s27, 4  }
 0x967   : > { %s6658_s25 = smov %s6655_s0 }
 0x968   :  { %32 = sbr.rel (!%p30_p13) target bundleno = 10 (0xa), region = 151 }
 0x96d   :  { %4147 = vsyncpa [#allocation3], 1 }
 0x96e   :  { %4149 = vsyncpa [#allocation3 + $0x1], 1 }
 0x96f   :  { %4150 = vsyncpa [#allocation6], 1 }
 0x970   :  { %4151 = vsyncpa [#allocation9], 1 }
 0x971   :  { %4152 = vsyncpa [#allocation4], 1 }
 0x972   :  { %4154 = vsyncpa [#allocation4 + $0x1], 1 }

</bundles_post_ra>
